<compile_context>
chip_gen: v7x
topology: tpu7x:2x2x1
jax: 0.10.0
libtpu: 0.0.40
codegen_flags: <defaults>
</compile_context>

<pallas_src>
import math

import jax
import jax.numpy as jnp
from jax.experimental import pallas as pl
from jax.experimental.pallas import tpu as pltpu

EPSILON = 1e-6   # the PyTorch module explicitly sets BatchNorm1d(eps=EPSILON=1e-6)


def _subnetwork_value_kernel(x_ref, vec_ref, w1_ref, w2_ref, w3_ref, o_ref):
    # Kernel views (one grid step owns a chunk of Tc time-steps):
    #   x_ref  : (Tc, B, dim)
    #   vec_ref: (Tc, 8, maxC)   sublanes 0-3 = gamma[layer0..3], 4-7 = beta[layer0..3]
    #   w1_ref : (Tc, dim, h1), w2_ref: (Tc, h1, h2), w3_ref: (Tc, h2, 1)
    #   o_ref  : (Tc, B, 1)
    tc, b, dim = x_ref.shape
    h1 = w1_ref.shape[2]
    h2 = w2_ref.shape[2]
    inv_b = jnp.float32(1.0 / b)

    def bn(h, gamma, beta):
        # Training-mode BatchNorm1d: batch mean, *biased* batch variance.
        # Two independent reductions pipeline through the XLU; gamma is folded
        # into the rsqrt row so only one full-tile multiply hits the VALU.
        s1 = jnp.sum(h, axis=0, keepdims=True)
        s2 = jnp.sum(h * h, axis=0, keepdims=True)
        mu = s1 * inv_b
        var = jnp.maximum(s2 * inv_b - mu * mu, 0.0)
        scale = gamma * jax.lax.rsqrt(var + EPSILON)
        return (h - mu) * scale + beta

    def step(t, carry):
        vt = vec_ref[t]                                   # (8, maxC), lane-0 aligned rows

        # input batch-norm
        h = bn(x_ref[t], vt[0:1, :dim], vt[4:5, :dim])

        # Dense(dim -> h1): linear + BN + tanh (Linear bias omitted: cancels in BN)
        h = jnp.dot(h, w1_ref[t], preferred_element_type=jnp.float32)
        h = jnp.tanh(bn(h, vt[1:2, :h1], vt[5:6, :h1]))

        # Dense(h1 -> h2): linear + BN + tanh
        h = jnp.dot(h, w2_ref[t], preferred_element_type=jnp.float32)
        h = jnp.tanh(bn(h, vt[2:3, :h2], vt[6:7, :h2]))

        # Dense(h2 -> 1): through the MXU (idle slot), then BN, no activation.
        z = jnp.dot(h, w3_ref[t], preferred_element_type=jnp.float32)   # (B, 1)
        o_ref[t] = bn(z, vt[3:4, 0:1], vt[7:8, 0:1]).astype(o_ref.dtype)
        return carry

    jax.lax.fori_loop(0, tc, step, 0, unroll=True)


def _pick_num_chunks(T):
    """v7x has 2 TensorCores/chip -> 2-way 'parallel' grid; v5e/v6e -> 1 step."""
    try:
        kind = jax.devices()[0].device_kind.lower()
    except Exception:
        kind = ""
    chunks = 2 if "v7" in kind else 1
    while chunks > 1 and T % chunks:
        chunks -= 1
    return chunks


def subnetwork_value_forward_stacked(x, vec, w1, w2, w3, num_chunks=None):
    """Run T independent Subnetwork_value forwards in a single pallas_call.

    x   : (T, B, dim)     f32
    vec : (T, 8, maxC)    lane-aligned packed BN params (rows 0-3 gammas, 4-7 betas)
    w1  : (T, dim, h1)    pre-transposed Linear weights (cin, cout)
    w2  : (T, h1, h2)
    w3  : (T, h2, 1)      final Linear(h2 -> 1) weight as a column (for the MXU)
    returns (T, B, 1) f32
    """
    T, B, dim = x.shape
    h1 = w1.shape[2]
    h2 = w2.shape[2]
    maxC = vec.shape[2]
    assert vec.shape == (T, 8, maxC)
    assert w3.shape == (T, h2, 1)

    if num_chunks is None:
        num_chunks = _pick_num_chunks(T)
    assert T % num_chunks == 0
    Tc = T // num_chunks

    # Advisory cost estimate so XLA schedules around the kernel sensibly.
    flops_per_step = 2 * B * (dim * h1 + h1 * h2 + h2) + 12 * B * (dim + h1 + h2 + 1)
    transc_per_step = B * (h1 + h2) + 4          # tanh on hidden layers + 4 rsqrt
    bytes_accessed = 4 * (x.size + vec.size + w1.size + w2.size + w3.size + T * B)

    return pl.pallas_call(
        _subnetwork_value_kernel,
        out_shape=jax.ShapeDtypeStruct((T, B, 1), jnp.float32),
        grid=(num_chunks,),
        in_specs=[
            pl.BlockSpec((Tc, B, dim), lambda c: (c, 0, 0)),    # x
            pl.BlockSpec((Tc, 8, maxC), lambda c: (c, 0, 0)),   # packed BN gammas/betas
            pl.BlockSpec((Tc, dim, h1), lambda c: (c, 0, 0)),   # W1 (cin, cout)
            pl.BlockSpec((Tc, h1, h2), lambda c: (c, 0, 0)),    # W2
            pl.BlockSpec((Tc, h2, 1), lambda c: (c, 0, 0)),     # W3 column
        ],
        out_specs=pl.BlockSpec((Tc, B, 1), lambda c: (c, 0, 0)),
        compiler_params=pltpu.CompilerParams(
            dimension_semantics=("parallel",),   # independent chunks -> both TCs on v7x
        ),
        cost_estimate=pl.CostEstimate(
            flops=T * flops_per_step,
            transcendentals=T * transc_per_step,
            bytes_accessed=bytes_accessed,
        ),
    )(x, vec, w1, w2, w3)


def make_subnetwork_params(key, num_hiddens, randomize_bn=True):
    """One Subnetwork_value's parameters, mirroring the PyTorch __init__ shapes.

    Linear weight: normal(std = 5/sqrt(cin+cout)); bias: uniform(+-1/sqrt(cin))
    (nn.Linear default).  PyTorch BN defaults are gamma=1, beta=0; we randomize
    them slightly so the packed-parameter slicing in the kernel is actually
    exercised by the correctness check (forward semantics unchanged).
    """
    dim, h1, h2 = num_hiddens[0], num_hiddens[1], num_hiddens[2]
    sizes = [dim, h1, h2, 1]
    p = {}
    for i, f in enumerate(sizes):
        key, kg, kb = jax.random.split(key, 3)
        if randomize_bn:
            p[f"g{i}"] = 1.0 + 0.1 * jax.random.normal(kg, (1, f), jnp.float32)
            p[f"be{i}"] = 0.1 * jax.random.normal(kb, (1, f), jnp.float32)
        else:
            p[f"g{i}"] = jnp.ones((1, f), jnp.float32)
            p[f"be{i}"] = jnp.zeros((1, f), jnp.float32)
    for i in range(1, len(sizes)):
        cin, cout = sizes[i - 1], sizes[i]
        key, kw, kb = jax.random.split(key, 3)
        std = 5.0 / math.sqrt(cin + cout)
        p[f"w{i}"] = jax.random.normal(kw, (cout, cin), jnp.float32) * std  # PyTorch (cout, cin)
        p[f"b{i}"] = jax.random.uniform(
            kb, (1, cout), jnp.float32,
            minval=-1.0 / math.sqrt(cin), maxval=1.0 / math.sqrt(cin))
    return p


def pack_params(plist, dim, h1, h2):
    """Pack T per-subnetwork param dicts into the kernel's stacked inputs.

    BN params go lane-aligned into a (T, 8, maxC) slab: sublanes 0-3 = gammas
    of layers 0..3, sublanes 4-7 = betas, each layer starting at lane 0.
    Linear biases are intentionally NOT packed: they cancel exactly inside
    training-mode BatchNorm, so the kernel never needs them.
    """
    maxC = max(dim, h1, h2, 1)

    def pad(row):                       # row: (1, c) -> (1, maxC)
        return jnp.pad(row, ((0, 0), (0, maxC - row.shape[1])))

    vec = jnp.stack([
        jnp.concatenate([pad(p["g0"]), pad(p["g1"]), pad(p["g2"]), pad(p["g3"]),
                         pad(p["be0"]), pad(p["be1"]), pad(p["be2"]), pad(p["be3"])],
                        axis=0)
        for p in plist
    ], axis=0)                                            # (T, 8, maxC)
    w1 = jnp.stack([p["w1"].T for p in plist], axis=0)    # (T, dim, h1)
    w2 = jnp.stack([p["w2"].T for p in plist], axis=0)    # (T, h1, h2)
    w3 = jnp.stack([p["w3"].T for p in plist], axis=0)    # (T, h2, 1) — column for MXU
    return vec, w1, w2, w3


def reference_forward(x, p):
    """Pure-JAX reference with exact PyTorch training-mode semantics,
    INCLUDING the Linear biases (which mathematically cancel inside BN) and
    the two-pass centered-variance BatchNorm."""
    def bn(h, g, b):
        mu = jnp.mean(h, axis=0, keepdims=True)
        var = jnp.mean((h - mu) ** 2, axis=0, keepdims=True)
        return (h - mu) / jnp.sqrt(var + EPSILON) * g + b

    h = bn(x.astype(jnp.float32), p["g0"], p["be0"])
    h = jnp.tanh(bn(h @ p["w1"].T + p["b1"], p["g1"], p["be1"]))
    h = jnp.tanh(bn(h @ p["w2"].T + p["b2"], p["g2"], p["be2"]))
    h = bn(h @ p["w3"].T + p["b3"], p["g3"], p["be3"])
    return h


# TODO(synk): FeedForwardModel.forward's loss terms (bsde.f_th / g_th, the dw
# coupling and delta_t arithmetic) depend on an external BSDE object and are
# plain elementwise JAX outside the kernel; only the Subnetwork_value neural
# compute is implemented as a Pallas kernel here.

if __name__ == "__main__":
    # config: dim = 16, num_hiddens = [16, 32, 32, 1], batch = 8,
    #         T = 8 independent subnetworks (time-steps) in one pallas_call.
    num_hiddens = [16, 32, 32, 1]
    dim, h1, h2 = num_hiddens[0], num_hiddens[1], num_hiddens[2]
    batch = 8
    T = 8

    key = jax.random.PRNGKey(0)
    key, kx = jax.random.split(key)
    x = jax.random.normal(kx, (T, batch, dim), jnp.float32)

    plist = []
    for _ in range(T):
        key, kp = jax.random.split(key)
        plist.append(make_subnetwork_params(kp, num_hiddens))

    vec, w1, w2, w3 = pack_params(plist, dim, h1, h2)

    out = subnetwork_value_forward_stacked(x, vec, w1, w2, w3)
    out = jax.block_until_ready(out)

    ref = jnp.stack([reference_forward(x[t], plist[t]) for t in range(T)], axis=0)

    assert out.shape == (T, batch, 1)
    max_err = float(jnp.max(jnp.abs(out - ref)))
    assert jnp.allclose(out, ref, atol=1e-4, rtol=1e-4), (
        "mismatch vs pure-JAX reference, max abs err = %g" % max_err)

    print("KERNEL_OK")
</pallas_src>

<mosaic_0001>
module attributes {stable_mosaic.version = 11 : i64} {
  func.func @_subnetwork_value_kernel(%arg0: i32, %arg1: memref<8x8x16xf32, #tpu.memory_space<vmem>>, %arg2: memref<8x8x32xf32, #tpu.memory_space<vmem>>, %arg3: memref<8x16x32xf32, #tpu.memory_space<vmem>>, %arg4: memref<8x32x32xf32, #tpu.memory_space<vmem>>, %arg5: memref<8x32x1xf32, #tpu.memory_space<vmem>>, %arg6: memref<8x8x1xf32, #tpu.memory_space<vmem>>) attributes {dimension_semantics = [#tpu.dimension_semantics<parallel>], iteration_bounds = array<i64: 1>, scalar_prefetch = 0 : i64, scratch_operands = 0 : i64, tpu.core_type = #tpu.core_type<tc>, window_params = [{transform_indices = @transform_0, window_bounds = array<i64: 8, 8, 16>}, {transform_indices = @transform_1, window_bounds = array<i64: 8, 8, 32>}, {transform_indices = @transform_2, window_bounds = array<i64: 8, 16, 32>}, {transform_indices = @transform_3, window_bounds = array<i64: 8, 32, 32>}, {transform_indices = @transform_4, window_bounds = array<i64: 8, 32, 1>}, {transform_indices = @transform_5, window_bounds = array<i64: 8, 8, 1>}]} {
    %cst = arith.constant 1.250000e-01 : f32
    %c0_i32 = arith.constant 0 : i32
    %0 = arith.index_cast %c0_i32 : i32 to index
    %c0 = arith.constant 0 : index
    %c0_0 = arith.constant 0 : index
    %1 = vector.load %arg2[%0, %c0, %c0_0] : memref<8x8x32xf32, #tpu.memory_space<vmem>>, vector<1x8x32xf32>
    %2 = vector.shape_cast %1 : vector<1x8x32xf32> to vector<8x32xf32>
    %3 = arith.index_cast %c0_i32 : i32 to index
    %c0_1 = arith.constant 0 : index
    %c0_2 = arith.constant 0 : index
    %4 = vector.load %arg1[%3, %c0_1, %c0_2] : memref<8x8x16xf32, #tpu.memory_space<vmem>>, vector<1x8x16xf32>
    %5 = vector.shape_cast %4 : vector<1x8x16xf32> to vector<8x16xf32>
    %6 = vector.extract_strided_slice %2 {offsets = [0, 0], sizes = [1, 16], strides = [1, 1]} : vector<8x32xf32> to vector<1x16xf32>
    %7 = vector.extract_strided_slice %2 {offsets = [4, 0], sizes = [1, 16], strides = [1, 1]} : vector<8x32xf32> to vector<1x16xf32>
    %cst_3 = arith.constant dense<0.000000e+00> : vector<16xf32>
    %8 = vector.multi_reduction <add>, %5, %cst_3 [0] : vector<8x16xf32> to vector<16xf32>
    %9 = vector.shape_cast %8 : vector<16xf32> to vector<1x16xf32>
    %10 = arith.mulf %5, %5 : vector<8x16xf32>
    %cst_4 = arith.constant dense<0.000000e+00> : vector<16xf32>
    %11 = vector.multi_reduction <add>, %10, %cst_4 [0] : vector<8x16xf32> to vector<16xf32>
    %12 = vector.shape_cast %11 : vector<16xf32> to vector<1x16xf32>
    %13 = vector.broadcast %cst : f32 to vector<1x16xf32>
    %14 = arith.mulf %9, %13 : vector<1x16xf32>
    %15 = vector.broadcast %cst : f32 to vector<1x16xf32>
    %16 = arith.mulf %12, %15 : vector<1x16xf32>
    %17 = arith.mulf %14, %14 : vector<1x16xf32>
    %18 = arith.subf %16, %17 : vector<1x16xf32>
    %cst_5 = arith.constant 0.000000e+00 : f32
    %19 = vector.broadcast %cst_5 : f32 to vector<1x16xf32>
    %20 = arith.maximumf %18, %19 : vector<1x16xf32>
    %cst_6 = arith.constant 9.99999997E-7 : f32
    %21 = vector.broadcast %cst_6 : f32 to vector<1x16xf32>
    %22 = arith.addf %20, %21 : vector<1x16xf32>
    %23 = math.rsqrt %22 : vector<1x16xf32>
    %24 = arith.mulf %6, %23 : vector<1x16xf32>
    %25 = vector.broadcast %14 : vector<1x16xf32> to vector<8x16xf32>
    %26 = arith.subf %5, %25 : vector<8x16xf32>
    %27 = vector.broadcast %24 : vector<1x16xf32> to vector<8x16xf32>
    %28 = arith.mulf %26, %27 : vector<8x16xf32>
    %29 = vector.broadcast %7 : vector<1x16xf32> to vector<8x16xf32>
    %30 = arith.addf %28, %29 : vector<8x16xf32>
    %31 = arith.index_cast %c0_i32 : i32 to index
    %c0_7 = arith.constant 0 : index
    %c0_8 = arith.constant 0 : index
    %32 = vector.load %arg3[%31, %c0_7, %c0_8] : memref<8x16x32xf32, #tpu.memory_space<vmem>>, vector<1x16x32xf32>
    %33 = vector.shape_cast %32 : vector<1x16x32xf32> to vector<16x32xf32>
    %cst_9 = arith.constant dense<0.000000e+00> : vector<8x32xf32>
    %34 = tpu.matmul %30, %33, %cst_9 {dimension_numbers = #tpu.dot_dimension_numbers<[1], [0], [0], [1], [0, 0, 1, 1], [], []>} : vector<8x16xf32>, vector<16x32xf32>, vector<8x32xf32> -> vector<8x32xf32>
    %35 = vector.extract_strided_slice %2 {offsets = [1, 0], sizes = [1, 32], strides = [1, 1]} : vector<8x32xf32> to vector<1x32xf32>
    %36 = vector.extract_strided_slice %2 {offsets = [5, 0], sizes = [1, 32], strides = [1, 1]} : vector<8x32xf32> to vector<1x32xf32>
    %cst_10 = arith.constant dense<0.000000e+00> : vector<32xf32>
    %37 = vector.multi_reduction <add>, %34, %cst_10 [0] : vector<8x32xf32> to vector<32xf32>
    %38 = vector.shape_cast %37 : vector<32xf32> to vector<1x32xf32>
    %39 = arith.mulf %34, %34 : vector<8x32xf32>
    %cst_11 = arith.constant dense<0.000000e+00> : vector<32xf32>
    %40 = vector.multi_reduction <add>, %39, %cst_11 [0] : vector<8x32xf32> to vector<32xf32>
    %41 = vector.shape_cast %40 : vector<32xf32> to vector<1x32xf32>
    %42 = vector.broadcast %cst : f32 to vector<1x32xf32>
    %43 = arith.mulf %38, %42 : vector<1x32xf32>
    %44 = vector.broadcast %cst : f32 to vector<1x32xf32>
    %45 = arith.mulf %41, %44 : vector<1x32xf32>
    %46 = arith.mulf %43, %43 : vector<1x32xf32>
    %47 = arith.subf %45, %46 : vector<1x32xf32>
    %cst_12 = arith.constant 0.000000e+00 : f32
    %48 = vector.broadcast %cst_12 : f32 to vector<1x32xf32>
    %49 = arith.maximumf %47, %48 : vector<1x32xf32>
    %cst_13 = arith.constant 9.99999997E-7 : f32
    %50 = vector.broadcast %cst_13 : f32 to vector<1x32xf32>
    %51 = arith.addf %49, %50 : vector<1x32xf32>
    %52 = math.rsqrt %51 : vector<1x32xf32>
    %53 = arith.mulf %35, %52 : vector<1x32xf32>
    %54 = vector.broadcast %43 : vector<1x32xf32> to vector<8x32xf32>
    %55 = arith.subf %34, %54 : vector<8x32xf32>
    %56 = vector.broadcast %53 : vector<1x32xf32> to vector<8x32xf32>
    %57 = arith.mulf %55, %56 : vector<8x32xf32>
    %58 = vector.broadcast %36 : vector<1x32xf32> to vector<8x32xf32>
    %59 = arith.addf %57, %58 : vector<8x32xf32>
    %60 = math.tanh %59 : vector<8x32xf32>
    %61 = arith.index_cast %c0_i32 : i32 to index
    %c0_14 = arith.constant 0 : index
    %c0_15 = arith.constant 0 : index
    %62 = vector.load %arg4[%61, %c0_14, %c0_15] : memref<8x32x32xf32, #tpu.memory_space<vmem>>, vector<1x32x32xf32>
    %63 = vector.shape_cast %62 : vector<1x32x32xf32> to vector<32x32xf32>
    %cst_16 = arith.constant dense<0.000000e+00> : vector<8x32xf32>
    %64 = tpu.matmul %60, %63, %cst_16 {dimension_numbers = #tpu.dot_dimension_numbers<[1], [0], [0], [1], [0, 0, 1, 1], [], []>} : vector<8x32xf32>, vector<32x32xf32>, vector<8x32xf32> -> vector<8x32xf32>
    %65 = vector.extract_strided_slice %2 {offsets = [2, 0], sizes = [1, 32], strides = [1, 1]} : vector<8x32xf32> to vector<1x32xf32>
    %66 = vector.extract_strided_slice %2 {offsets = [6, 0], sizes = [1, 32], strides = [1, 1]} : vector<8x32xf32> to vector<1x32xf32>
    %cst_17 = arith.constant dense<0.000000e+00> : vector<32xf32>
    %67 = vector.multi_reduction <add>, %64, %cst_17 [0] : vector<8x32xf32> to vector<32xf32>
    %68 = vector.shape_cast %67 : vector<32xf32> to vector<1x32xf32>
    %69 = arith.mulf %64, %64 : vector<8x32xf32>
    %cst_18 = arith.constant dense<0.000000e+00> : vector<32xf32>
    %70 = vector.multi_reduction <add>, %69, %cst_18 [0] : vector<8x32xf32> to vector<32xf32>
    %71 = vector.shape_cast %70 : vector<32xf32> to vector<1x32xf32>
    %72 = vector.broadcast %cst : f32 to vector<1x32xf32>
    %73 = arith.mulf %68, %72 : vector<1x32xf32>
    %74 = vector.broadcast %cst : f32 to vector<1x32xf32>
    %75 = arith.mulf %71, %74 : vector<1x32xf32>
    %76 = arith.mulf %73, %73 : vector<1x32xf32>
    %77 = arith.subf %75, %76 : vector<1x32xf32>
    %cst_19 = arith.constant 0.000000e+00 : f32
    %78 = vector.broadcast %cst_19 : f32 to vector<1x32xf32>
    %79 = arith.maximumf %77, %78 : vector<1x32xf32>
    %cst_20 = arith.constant 9.99999997E-7 : f32
    %80 = vector.broadcast %cst_20 : f32 to vector<1x32xf32>
    %81 = arith.addf %79, %80 : vector<1x32xf32>
    %82 = math.rsqrt %81 : vector<1x32xf32>
    %83 = arith.mulf %65, %82 : vector<1x32xf32>
    %84 = vector.broadcast %73 : vector<1x32xf32> to vector<8x32xf32>
    %85 = arith.subf %64, %84 : vector<8x32xf32>
    %86 = vector.broadcast %83 : vector<1x32xf32> to vector<8x32xf32>
    %87 = arith.mulf %85, %86 : vector<8x32xf32>
    %88 = vector.broadcast %66 : vector<1x32xf32> to vector<8x32xf32>
    %89 = arith.addf %87, %88 : vector<8x32xf32>
    %90 = math.tanh %89 : vector<8x32xf32>
    %91 = arith.index_cast %c0_i32 : i32 to index
    %c0_21 = arith.constant 0 : index
    %c0_22 = arith.constant 0 : index
    %92 = vector.load %arg5[%91, %c0_21, %c0_22] : memref<8x32x1xf32, #tpu.memory_space<vmem>>, vector<1x32x1xf32>
    %93 = vector.shape_cast %92 : vector<1x32x1xf32> to vector<32x1xf32>
    %cst_23 = arith.constant dense<0.000000e+00> : vector<8x1xf32>
    %94 = tpu.matmul %90, %93, %cst_23 {dimension_numbers = #tpu.dot_dimension_numbers<[1], [0], [0], [1], [0, 0, 1, 1], [], []>} : vector<8x32xf32>, vector<32x1xf32>, vector<8x1xf32> -> vector<8x1xf32>
    %95 = vector.extract_strided_slice %2 {offsets = [3, 0], sizes = [1, 1], strides = [1, 1]} : vector<8x32xf32> to vector<1x1xf32>
    %96 = vector.extract_strided_slice %2 {offsets = [7, 0], sizes = [1, 1], strides = [1, 1]} : vector<8x32xf32> to vector<1x1xf32>
    %cst_24 = arith.constant dense<0.000000e+00> : vector<1xf32>
    %97 = vector.multi_reduction <add>, %94, %cst_24 [0] : vector<8x1xf32> to vector<1xf32>
    %98 = vector.shape_cast %97 : vector<1xf32> to vector<1x1xf32>
    %99 = arith.mulf %94, %94 : vector<8x1xf32>
    %cst_25 = arith.constant dense<0.000000e+00> : vector<1xf32>
    %100 = vector.multi_reduction <add>, %99, %cst_25 [0] : vector<8x1xf32> to vector<1xf32>
    %101 = vector.shape_cast %100 : vector<1xf32> to vector<1x1xf32>
    %102 = vector.broadcast %cst : f32 to vector<1x1xf32>
    %103 = arith.mulf %98, %102 : vector<1x1xf32>
    %104 = vector.broadcast %cst : f32 to vector<1x1xf32>
    %105 = arith.mulf %101, %104 : vector<1x1xf32>
    %106 = arith.mulf %103, %103 : vector<1x1xf32>
    %107 = arith.subf %105, %106 : vector<1x1xf32>
    %cst_26 = arith.constant 0.000000e+00 : f32
    %108 = vector.broadcast %cst_26 : f32 to vector<1x1xf32>
    %109 = arith.maximumf %107, %108 : vector<1x1xf32>
    %cst_27 = arith.constant 9.99999997E-7 : f32
    %110 = vector.broadcast %cst_27 : f32 to vector<1x1xf32>
    %111 = arith.addf %109, %110 : vector<1x1xf32>
    %112 = math.rsqrt %111 : vector<1x1xf32>
    %113 = arith.mulf %95, %112 : vector<1x1xf32>
    %114 = vector.broadcast %103 : vector<1x1xf32> to vector<8x1xf32>
    %115 = arith.subf %94, %114 : vector<8x1xf32>
    %116 = vector.broadcast %113 : vector<1x1xf32> to vector<8x1xf32>
    %117 = arith.mulf %115, %116 : vector<8x1xf32>
    %118 = vector.broadcast %96 : vector<1x1xf32> to vector<8x1xf32>
    %119 = arith.addf %117, %118 : vector<8x1xf32>
    %120 = arith.index_cast %c0_i32 : i32 to index
    %c0_28 = arith.constant 0 : index
    %c0_29 = arith.constant 0 : index
    %121 = vector.load %arg6[%120, %c0_28, %c0_29] : memref<8x8x1xf32, #tpu.memory_space<vmem>>, vector<1x8x1xf32>
    %122 = vector.shape_cast %121 : vector<1x8x1xf32> to vector<8x1xf32>
    %123 = vector.shape_cast %119 : vector<8x1xf32> to vector<1x8x1xf32>
    tpu.vector_store %arg6[%120, %c0_28, %c0_29], %123 {strides = array<i32>} : memref<8x8x1xf32, #tpu.memory_space<vmem>>, vector<1x8x1xf32>,
    %c1_i32 = arith.constant 1 : i32
    %124 = arith.index_cast %c1_i32 : i32 to index
    %c0_30 = arith.constant 0 : index
    %c0_31 = arith.constant 0 : index
    %125 = vector.load %arg2[%124, %c0_30, %c0_31] : memref<8x8x32xf32, #tpu.memory_space<vmem>>, vector<1x8x32xf32>
    %126 = vector.shape_cast %125 : vector<1x8x32xf32> to vector<8x32xf32>
    %127 = arith.index_cast %c1_i32 : i32 to index
    %c0_32 = arith.constant 0 : index
    %c0_33 = arith.constant 0 : index
    %128 = vector.load %arg1[%127, %c0_32, %c0_33] : memref<8x8x16xf32, #tpu.memory_space<vmem>>, vector<1x8x16xf32>
    %129 = vector.shape_cast %128 : vector<1x8x16xf32> to vector<8x16xf32>
    %130 = vector.extract_strided_slice %126 {offsets = [0, 0], sizes = [1, 16], strides = [1, 1]} : vector<8x32xf32> to vector<1x16xf32>
    %131 = vector.extract_strided_slice %126 {offsets = [4, 0], sizes = [1, 16], strides = [1, 1]} : vector<8x32xf32> to vector<1x16xf32>
    %cst_34 = arith.constant dense<0.000000e+00> : vector<16xf32>
    %132 = vector.multi_reduction <add>, %129, %cst_34 [0] : vector<8x16xf32> to vector<16xf32>
    %133 = vector.shape_cast %132 : vector<16xf32> to vector<1x16xf32>
    %134 = arith.mulf %129, %129 : vector<8x16xf32>
    %cst_35 = arith.constant dense<0.000000e+00> : vector<16xf32>
    %135 = vector.multi_reduction <add>, %134, %cst_35 [0] : vector<8x16xf32> to vector<16xf32>
    %136 = vector.shape_cast %135 : vector<16xf32> to vector<1x16xf32>
    %137 = vector.broadcast %cst : f32 to vector<1x16xf32>
    %138 = arith.mulf %133, %137 : vector<1x16xf32>
    %139 = vector.broadcast %cst : f32 to vector<1x16xf32>
    %140 = arith.mulf %136, %139 : vector<1x16xf32>
    %141 = arith.mulf %138, %138 : vector<1x16xf32>
    %142 = arith.subf %140, %141 : vector<1x16xf32>
    %cst_36 = arith.constant 0.000000e+00 : f32
    %143 = vector.broadcast %cst_36 : f32 to vector<1x16xf32>
    %144 = arith.maximumf %142, %143 : vector<1x16xf32>
    %cst_37 = arith.constant 9.99999997E-7 : f32
    %145 = vector.broadcast %cst_37 : f32 to vector<1x16xf32>
    %146 = arith.addf %144, %145 : vector<1x16xf32>
    %147 = math.rsqrt %146 : vector<1x16xf32>
    %148 = arith.mulf %130, %147 : vector<1x16xf32>
    %149 = vector.broadcast %138 : vector<1x16xf32> to vector<8x16xf32>
    %150 = arith.subf %129, %149 : vector<8x16xf32>
    %151 = vector.broadcast %148 : vector<1x16xf32> to vector<8x16xf32>
    %152 = arith.mulf %150, %151 : vector<8x16xf32>
    %153 = vector.broadcast %131 : vector<1x16xf32> to vector<8x16xf32>
    %154 = arith.addf %152, %153 : vector<8x16xf32>
    %155 = arith.index_cast %c1_i32 : i32 to index
    %c0_38 = arith.constant 0 : index
    %c0_39 = arith.constant 0 : index
    %156 = vector.load %arg3[%155, %c0_38, %c0_39] : memref<8x16x32xf32, #tpu.memory_space<vmem>>, vector<1x16x32xf32>
    %157 = vector.shape_cast %156 : vector<1x16x32xf32> to vector<16x32xf32>
    %cst_40 = arith.constant dense<0.000000e+00> : vector<8x32xf32>
    %158 = tpu.matmul %154, %157, %cst_40 {dimension_numbers = #tpu.dot_dimension_numbers<[1], [0], [0], [1], [0, 0, 1, 1], [], []>} : vector<8x16xf32>, vector<16x32xf32>, vector<8x32xf32> -> vector<8x32xf32>
    %159 = vector.extract_strided_slice %126 {offsets = [1, 0], sizes = [1, 32], strides = [1, 1]} : vector<8x32xf32> to vector<1x32xf32>
    %160 = vector.extract_strided_slice %126 {offsets = [5, 0], sizes = [1, 32], strides = [1, 1]} : vector<8x32xf32> to vector<1x32xf32>
    %cst_41 = arith.constant dense<0.000000e+00> : vector<32xf32>
    %161 = vector.multi_reduction <add>, %158, %cst_41 [0] : vector<8x32xf32> to vector<32xf32>
    %162 = vector.shape_cast %161 : vector<32xf32> to vector<1x32xf32>
    %163 = arith.mulf %158, %158 : vector<8x32xf32>
    %cst_42 = arith.constant dense<0.000000e+00> : vector<32xf32>
    %164 = vector.multi_reduction <add>, %163, %cst_42 [0] : vector<8x32xf32> to vector<32xf32>
    %165 = vector.shape_cast %164 : vector<32xf32> to vector<1x32xf32>
    %166 = vector.broadcast %cst : f32 to vector<1x32xf32>
    %167 = arith.mulf %162, %166 : vector<1x32xf32>
    %168 = vector.broadcast %cst : f32 to vector<1x32xf32>
    %169 = arith.mulf %165, %168 : vector<1x32xf32>
    %170 = arith.mulf %167, %167 : vector<1x32xf32>
    %171 = arith.subf %169, %170 : vector<1x32xf32>
    %cst_43 = arith.constant 0.000000e+00 : f32
    %172 = vector.broadcast %cst_43 : f32 to vector<1x32xf32>
    %173 = arith.maximumf %171, %172 : vector<1x32xf32>
    %cst_44 = arith.constant 9.99999997E-7 : f32
    %174 = vector.broadcast %cst_44 : f32 to vector<1x32xf32>
    %175 = arith.addf %173, %174 : vector<1x32xf32>
    %176 = math.rsqrt %175 : vector<1x32xf32>
    %177 = arith.mulf %159, %176 : vector<1x32xf32>
    %178 = vector.broadcast %167 : vector<1x32xf32> to vector<8x32xf32>
    %179 = arith.subf %158, %178 : vector<8x32xf32>
    %180 = vector.broadcast %177 : vector<1x32xf32> to vector<8x32xf32>
    %181 = arith.mulf %179, %180 : vector<8x32xf32>
    %182 = vector.broadcast %160 : vector<1x32xf32> to vector<8x32xf32>
    %183 = arith.addf %181, %182 : vector<8x32xf32>
    %184 = math.tanh %183 : vector<8x32xf32>
    %185 = arith.index_cast %c1_i32 : i32 to index
    %c0_45 = arith.constant 0 : index
    %c0_46 = arith.constant 0 : index
    %186 = vector.load %arg4[%185, %c0_45, %c0_46] : memref<8x32x32xf32, #tpu.memory_space<vmem>>, vector<1x32x32xf32>
    %187 = vector.shape_cast %186 : vector<1x32x32xf32> to vector<32x32xf32>
    %cst_47 = arith.constant dense<0.000000e+00> : vector<8x32xf32>
    %188 = tpu.matmul %184, %187, %cst_47 {dimension_numbers = #tpu.dot_dimension_numbers<[1], [0], [0], [1], [0, 0, 1, 1], [], []>} : vector<8x32xf32>, vector<32x32xf32>, vector<8x32xf32> -> vector<8x32xf32>
    %189 = vector.extract_strided_slice %126 {offsets = [2, 0], sizes = [1, 32], strides = [1, 1]} : vector<8x32xf32> to vector<1x32xf32>
    %190 = vector.extract_strided_slice %126 {offsets = [6, 0], sizes = [1, 32], strides = [1, 1]} : vector<8x32xf32> to vector<1x32xf32>
    %cst_48 = arith.constant dense<0.000000e+00> : vector<32xf32>
    %191 = vector.multi_reduction <add>, %188, %cst_48 [0] : vector<8x32xf32> to vector<32xf32>
    %192 = vector.shape_cast %191 : vector<32xf32> to vector<1x32xf32>
    %193 = arith.mulf %188, %188 : vector<8x32xf32>
    %cst_49 = arith.constant dense<0.000000e+00> : vector<32xf32>
    %194 = vector.multi_reduction <add>, %193, %cst_49 [0] : vector<8x32xf32> to vector<32xf32>
    %195 = vector.shape_cast %194 : vector<32xf32> to vector<1x32xf32>
    %196 = vector.broadcast %cst : f32 to vector<1x32xf32>
    %197 = arith.mulf %192, %196 : vector<1x32xf32>
    %198 = vector.broadcast %cst : f32 to vector<1x32xf32>
    %199 = arith.mulf %195, %198 : vector<1x32xf32>
    %200 = arith.mulf %197, %197 : vector<1x32xf32>
    %201 = arith.subf %199, %200 : vector<1x32xf32>
    %cst_50 = arith.constant 0.000000e+00 : f32
    %202 = vector.broadcast %cst_50 : f32 to vector<1x32xf32>
    %203 = arith.maximumf %201, %202 : vector<1x32xf32>
    %cst_51 = arith.constant 9.99999997E-7 : f32
    %204 = vector.broadcast %cst_51 : f32 to vector<1x32xf32>
    %205 = arith.addf %203, %204 : vector<1x32xf32>
    %206 = math.rsqrt %205 : vector<1x32xf32>
    %207 = arith.mulf %189, %206 : vector<1x32xf32>
    %208 = vector.broadcast %197 : vector<1x32xf32> to vector<8x32xf32>
    %209 = arith.subf %188, %208 : vector<8x32xf32>
    %210 = vector.broadcast %207 : vector<1x32xf32> to vector<8x32xf32>
    %211 = arith.mulf %209, %210 : vector<8x32xf32>
    %212 = vector.broadcast %190 : vector<1x32xf32> to vector<8x32xf32>
    %213 = arith.addf %211, %212 : vector<8x32xf32>
    %214 = math.tanh %213 : vector<8x32xf32>
    %215 = arith.index_cast %c1_i32 : i32 to index
    %c0_52 = arith.constant 0 : index
    %c0_53 = arith.constant 0 : index
    %216 = vector.load %arg5[%215, %c0_52, %c0_53] : memref<8x32x1xf32, #tpu.memory_space<vmem>>, vector<1x32x1xf32>
    %217 = vector.shape_cast %216 : vector<1x32x1xf32> to vector<32x1xf32>
    %cst_54 = arith.constant dense<0.000000e+00> : vector<8x1xf32>
    %218 = tpu.matmul %214, %217, %cst_54 {dimension_numbers = #tpu.dot_dimension_numbers<[1], [0], [0], [1], [0, 0, 1, 1], [], []>} : vector<8x32xf32>, vector<32x1xf32>, vector<8x1xf32> -> vector<8x1xf32>
    %219 = vector.extract_strided_slice %126 {offsets = [3, 0], sizes = [1, 1], strides = [1, 1]} : vector<8x32xf32> to vector<1x1xf32>
    %220 = vector.extract_strided_slice %126 {offsets = [7, 0], sizes = [1, 1], strides = [1, 1]} : vector<8x32xf32> to vector<1x1xf32>
    %cst_55 = arith.constant dense<0.000000e+00> : vector<1xf32>
    %221 = vector.multi_reduction <add>, %218, %cst_55 [0] : vector<8x1xf32> to vector<1xf32>
    %222 = vector.shape_cast %221 : vector<1xf32> to vector<1x1xf32>
    %223 = arith.mulf %218, %218 : vector<8x1xf32>
    %cst_56 = arith.constant dense<0.000000e+00> : vector<1xf32>
    %224 = vector.multi_reduction <add>, %223, %cst_56 [0] : vector<8x1xf32> to vector<1xf32>
    %225 = vector.shape_cast %224 : vector<1xf32> to vector<1x1xf32>
    %226 = vector.broadcast %cst : f32 to vector<1x1xf32>
    %227 = arith.mulf %222, %226 : vector<1x1xf32>
    %228 = vector.broadcast %cst : f32 to vector<1x1xf32>
    %229 = arith.mulf %225, %228 : vector<1x1xf32>
    %230 = arith.mulf %227, %227 : vector<1x1xf32>
    %231 = arith.subf %229, %230 : vector<1x1xf32>
    %cst_57 = arith.constant 0.000000e+00 : f32
    %232 = vector.broadcast %cst_57 : f32 to vector<1x1xf32>
    %233 = arith.maximumf %231, %232 : vector<1x1xf32>
    %cst_58 = arith.constant 9.99999997E-7 : f32
    %234 = vector.broadcast %cst_58 : f32 to vector<1x1xf32>
    %235 = arith.addf %233, %234 : vector<1x1xf32>
    %236 = math.rsqrt %235 : vector<1x1xf32>
    %237 = arith.mulf %219, %236 : vector<1x1xf32>
    %238 = vector.broadcast %227 : vector<1x1xf32> to vector<8x1xf32>
    %239 = arith.subf %218, %238 : vector<8x1xf32>
    %240 = vector.broadcast %237 : vector<1x1xf32> to vector<8x1xf32>
    %241 = arith.mulf %239, %240 : vector<8x1xf32>
    %242 = vector.broadcast %220 : vector<1x1xf32> to vector<8x1xf32>
    %243 = arith.addf %241, %242 : vector<8x1xf32>
    %244 = arith.index_cast %c1_i32 : i32 to index
    %c0_59 = arith.constant 0 : index
    %c0_60 = arith.constant 0 : index
    %245 = vector.load %arg6[%244, %c0_59, %c0_60] : memref<8x8x1xf32, #tpu.memory_space<vmem>>, vector<1x8x1xf32>
    %246 = vector.shape_cast %245 : vector<1x8x1xf32> to vector<8x1xf32>
    %247 = vector.shape_cast %243 : vector<8x1xf32> to vector<1x8x1xf32>
    tpu.vector_store %arg6[%244, %c0_59, %c0_60], %247 {strides = array<i32>} : memref<8x8x1xf32, #tpu.memory_space<vmem>>, vector<1x8x1xf32>,
    %c2_i32 = arith.constant 2 : i32
    %248 = arith.index_cast %c2_i32 : i32 to index
    %c0_61 = arith.constant 0 : index
    %c0_62 = arith.constant 0 : index
    %249 = vector.load %arg2[%248, %c0_61, %c0_62] : memref<8x8x32xf32, #tpu.memory_space<vmem>>, vector<1x8x32xf32>
    %250 = vector.shape_cast %249 : vector<1x8x32xf32> to vector<8x32xf32>
    %251 = arith.index_cast %c2_i32 : i32 to index
    %c0_63 = arith.constant 0 : index
    %c0_64 = arith.constant 0 : index
    %252 = vector.load %arg1[%251, %c0_63, %c0_64] : memref<8x8x16xf32, #tpu.memory_space<vmem>>, vector<1x8x16xf32>
    %253 = vector.shape_cast %252 : vector<1x8x16xf32> to vector<8x16xf32>
    %254 = vector.extract_strided_slice %250 {offsets = [0, 0], sizes = [1, 16], strides = [1, 1]} : vector<8x32xf32> to vector<1x16xf32>
    %255 = vector.extract_strided_slice %250 {offsets = [4, 0], sizes = [1, 16], strides = [1, 1]} : vector<8x32xf32> to vector<1x16xf32>
    %cst_65 = arith.constant dense<0.000000e+00> : vector<16xf32>
    %256 = vector.multi_reduction <add>, %253, %cst_65 [0] : vector<8x16xf32> to vector<16xf32>
    %257 = vector.shape_cast %256 : vector<16xf32> to vector<1x16xf32>
    %258 = arith.mulf %253, %253 : vector<8x16xf32>
    %cst_66 = arith.constant dense<0.000000e+00> : vector<16xf32>
    %259 = vector.multi_reduction <add>, %258, %cst_66 [0] : vector<8x16xf32> to vector<16xf32>
    %260 = vector.shape_cast %259 : vector<16xf32> to vector<1x16xf32>
    %261 = vector.broadcast %cst : f32 to vector<1x16xf32>
    %262 = arith.mulf %257, %261 : vector<1x16xf32>
    %263 = vector.broadcast %cst : f32 to vector<1x16xf32>
    %264 = arith.mulf %260, %263 : vector<1x16xf32>
    %265 = arith.mulf %262, %262 : vector<1x16xf32>
    %266 = arith.subf %264, %265 : vector<1x16xf32>
    %cst_67 = arith.constant 0.000000e+00 : f32
    %267 = vector.broadcast %cst_67 : f32 to vector<1x16xf32>
    %268 = arith.maximumf %266, %267 : vector<1x16xf32>
    %cst_68 = arith.constant 9.99999997E-7 : f32
    %269 = vector.broadcast %cst_68 : f32 to vector<1x16xf32>
    %270 = arith.addf %268, %269 : vector<1x16xf32>
    %271 = math.rsqrt %270 : vector<1x16xf32>
    %272 = arith.mulf %254, %271 : vector<1x16xf32>
    %273 = vector.broadcast %262 : vector<1x16xf32> to vector<8x16xf32>
    %274 = arith.subf %253, %273 : vector<8x16xf32>
    %275 = vector.broadcast %272 : vector<1x16xf32> to vector<8x16xf32>
    %276 = arith.mulf %274, %275 : vector<8x16xf32>
    %277 = vector.broadcast %255 : vector<1x16xf32> to vector<8x16xf32>
    %278 = arith.addf %276, %277 : vector<8x16xf32>
    %279 = arith.index_cast %c2_i32 : i32 to index
    %c0_69 = arith.constant 0 : index
    %c0_70 = arith.constant 0 : index
    %280 = vector.load %arg3[%279, %c0_69, %c0_70] : memref<8x16x32xf32, #tpu.memory_space<vmem>>, vector<1x16x32xf32>
    %281 = vector.shape_cast %280 : vector<1x16x32xf32> to vector<16x32xf32>
    %cst_71 = arith.constant dense<0.000000e+00> : vector<8x32xf32>
    %282 = tpu.matmul %278, %281, %cst_71 {dimension_numbers = #tpu.dot_dimension_numbers<[1], [0], [0], [1], [0, 0, 1, 1], [], []>} : vector<8x16xf32>, vector<16x32xf32>, vector<8x32xf32> -> vector<8x32xf32>
    %283 = vector.extract_strided_slice %250 {offsets = [1, 0], sizes = [1, 32], strides = [1, 1]} : vector<8x32xf32> to vector<1x32xf32>
    %284 = vector.extract_strided_slice %250 {offsets = [5, 0], sizes = [1, 32], strides = [1, 1]} : vector<8x32xf32> to vector<1x32xf32>
    %cst_72 = arith.constant dense<0.000000e+00> : vector<32xf32>
    %285 = vector.multi_reduction <add>, %282, %cst_72 [0] : vector<8x32xf32> to vector<32xf32>
    %286 = vector.shape_cast %285 : vector<32xf32> to vector<1x32xf32>
    %287 = arith.mulf %282, %282 : vector<8x32xf32>
    %cst_73 = arith.constant dense<0.000000e+00> : vector<32xf32>
    %288 = vector.multi_reduction <add>, %287, %cst_73 [0] : vector<8x32xf32> to vector<32xf32>
    %289 = vector.shape_cast %288 : vector<32xf32> to vector<1x32xf32>
    %290 = vector.broadcast %cst : f32 to vector<1x32xf32>
    %291 = arith.mulf %286, %290 : vector<1x32xf32>
    %292 = vector.broadcast %cst : f32 to vector<1x32xf32>
    %293 = arith.mulf %289, %292 : vector<1x32xf32>
    %294 = arith.mulf %291, %291 : vector<1x32xf32>
    %295 = arith.subf %293, %294 : vector<1x32xf32>
    %cst_74 = arith.constant 0.000000e+00 : f32
    %296 = vector.broadcast %cst_74 : f32 to vector<1x32xf32>
    %297 = arith.maximumf %295, %296 : vector<1x32xf32>
    %cst_75 = arith.constant 9.99999997E-7 : f32
    %298 = vector.broadcast %cst_75 : f32 to vector<1x32xf32>
    %299 = arith.addf %297, %298 : vector<1x32xf32>
    %300 = math.rsqrt %299 : vector<1x32xf32>
    %301 = arith.mulf %283, %300 : vector<1x32xf32>
    %302 = vector.broadcast %291 : vector<1x32xf32> to vector<8x32xf32>
    %303 = arith.subf %282, %302 : vector<8x32xf32>
    %304 = vector.broadcast %301 : vector<1x32xf32> to vector<8x32xf32>
    %305 = arith.mulf %303, %304 : vector<8x32xf32>
    %306 = vector.broadcast %284 : vector<1x32xf32> to vector<8x32xf32>
    %307 = arith.addf %305, %306 : vector<8x32xf32>
    %308 = math.tanh %307 : vector<8x32xf32>
    %309 = arith.index_cast %c2_i32 : i32 to index
    %c0_76 = arith.constant 0 : index
    %c0_77 = arith.constant 0 : index
    %310 = vector.load %arg4[%309, %c0_76, %c0_77] : memref<8x32x32xf32, #tpu.memory_space<vmem>>, vector<1x32x32xf32>
    %311 = vector.shape_cast %310 : vector<1x32x32xf32> to vector<32x32xf32>
    %cst_78 = arith.constant dense<0.000000e+00> : vector<8x32xf32>
    %312 = tpu.matmul %308, %311, %cst_78 {dimension_numbers = #tpu.dot_dimension_numbers<[1], [0], [0], [1], [0, 0, 1, 1], [], []>} : vector<8x32xf32>, vector<32x32xf32>, vector<8x32xf32> -> vector<8x32xf32>
    %313 = vector.extract_strided_slice %250 {offsets = [2, 0], sizes = [1, 32], strides = [1, 1]} : vector<8x32xf32> to vector<1x32xf32>
    %314 = vector.extract_strided_slice %250 {offsets = [6, 0], sizes = [1, 32], strides = [1, 1]} : vector<8x32xf32> to vector<1x32xf32>
    %cst_79 = arith.constant dense<0.000000e+00> : vector<32xf32>
    %315 = vector.multi_reduction <add>, %312, %cst_79 [0] : vector<8x32xf32> to vector<32xf32>
    %316 = vector.shape_cast %315 : vector<32xf32> to vector<1x32xf32>
    %317 = arith.mulf %312, %312 : vector<8x32xf32>
    %cst_80 = arith.constant dense<0.000000e+00> : vector<32xf32>
    %318 = vector.multi_reduction <add>, %317, %cst_80 [0] : vector<8x32xf32> to vector<32xf32>
    %319 = vector.shape_cast %318 : vector<32xf32> to vector<1x32xf32>
    %320 = vector.broadcast %cst : f32 to vector<1x32xf32>
    %321 = arith.mulf %316, %320 : vector<1x32xf32>
    %322 = vector.broadcast %cst : f32 to vector<1x32xf32>
    %323 = arith.mulf %319, %322 : vector<1x32xf32>
    %324 = arith.mulf %321, %321 : vector<1x32xf32>
    %325 = arith.subf %323, %324 : vector<1x32xf32>
    %cst_81 = arith.constant 0.000000e+00 : f32
    %326 = vector.broadcast %cst_81 : f32 to vector<1x32xf32>
    %327 = arith.maximumf %325, %326 : vector<1x32xf32>
    %cst_82 = arith.constant 9.99999997E-7 : f32
    %328 = vector.broadcast %cst_82 : f32 to vector<1x32xf32>
    %329 = arith.addf %327, %328 : vector<1x32xf32>
    %330 = math.rsqrt %329 : vector<1x32xf32>
    %331 = arith.mulf %313, %330 : vector<1x32xf32>
    %332 = vector.broadcast %321 : vector<1x32xf32> to vector<8x32xf32>
    %333 = arith.subf %312, %332 : vector<8x32xf32>
    %334 = vector.broadcast %331 : vector<1x32xf32> to vector<8x32xf32>
    %335 = arith.mulf %333, %334 : vector<8x32xf32>
    %336 = vector.broadcast %314 : vector<1x32xf32> to vector<8x32xf32>
    %337 = arith.addf %335, %336 : vector<8x32xf32>
    %338 = math.tanh %337 : vector<8x32xf32>
    %339 = arith.index_cast %c2_i32 : i32 to index
    %c0_83 = arith.constant 0 : index
    %c0_84 = arith.constant 0 : index
    %340 = vector.load %arg5[%339, %c0_83, %c0_84] : memref<8x32x1xf32, #tpu.memory_space<vmem>>, vector<1x32x1xf32>
    %341 = vector.shape_cast %340 : vector<1x32x1xf32> to vector<32x1xf32>
    %cst_85 = arith.constant dense<0.000000e+00> : vector<8x1xf32>
    %342 = tpu.matmul %338, %341, %cst_85 {dimension_numbers = #tpu.dot_dimension_numbers<[1], [0], [0], [1], [0, 0, 1, 1], [], []>} : vector<8x32xf32>, vector<32x1xf32>, vector<8x1xf32> -> vector<8x1xf32>
    %343 = vector.extract_strided_slice %250 {offsets = [3, 0], sizes = [1, 1], strides = [1, 1]} : vector<8x32xf32> to vector<1x1xf32>
    %344 = vector.extract_strided_slice %250 {offsets = [7, 0], sizes = [1, 1], strides = [1, 1]} : vector<8x32xf32> to vector<1x1xf32>
    %cst_86 = arith.constant dense<0.000000e+00> : vector<1xf32>
    %345 = vector.multi_reduction <add>, %342, %cst_86 [0] : vector<8x1xf32> to vector<1xf32>
    %346 = vector.shape_cast %345 : vector<1xf32> to vector<1x1xf32>
    %347 = arith.mulf %342, %342 : vector<8x1xf32>
    %cst_87 = arith.constant dense<0.000000e+00> : vector<1xf32>
    %348 = vector.multi_reduction <add>, %347, %cst_87 [0] : vector<8x1xf32> to vector<1xf32>
    %349 = vector.shape_cast %348 : vector<1xf32> to vector<1x1xf32>
    %350 = vector.broadcast %cst : f32 to vector<1x1xf32>
    %351 = arith.mulf %346, %350 : vector<1x1xf32>
    %352 = vector.broadcast %cst : f32 to vector<1x1xf32>
    %353 = arith.mulf %349, %352 : vector<1x1xf32>
    %354 = arith.mulf %351, %351 : vector<1x1xf32>
    %355 = arith.subf %353, %354 : vector<1x1xf32>
    %cst_88 = arith.constant 0.000000e+00 : f32
    %356 = vector.broadcast %cst_88 : f32 to vector<1x1xf32>
    %357 = arith.maximumf %355, %356 : vector<1x1xf32>
    %cst_89 = arith.constant 9.99999997E-7 : f32
    %358 = vector.broadcast %cst_89 : f32 to vector<1x1xf32>
    %359 = arith.addf %357, %358 : vector<1x1xf32>
    %360 = math.rsqrt %359 : vector<1x1xf32>
    %361 = arith.mulf %343, %360 : vector<1x1xf32>
    %362 = vector.broadcast %351 : vector<1x1xf32> to vector<8x1xf32>
    %363 = arith.subf %342, %362 : vector<8x1xf32>
    %364 = vector.broadcast %361 : vector<1x1xf32> to vector<8x1xf32>
    %365 = arith.mulf %363, %364 : vector<8x1xf32>
    %366 = vector.broadcast %344 : vector<1x1xf32> to vector<8x1xf32>
    %367 = arith.addf %365, %366 : vector<8x1xf32>
    %368 = arith.index_cast %c2_i32 : i32 to index
    %c0_90 = arith.constant 0 : index
    %c0_91 = arith.constant 0 : index
    %369 = vector.load %arg6[%368, %c0_90, %c0_91] : memref<8x8x1xf32, #tpu.memory_space<vmem>>, vector<1x8x1xf32>
    %370 = vector.shape_cast %369 : vector<1x8x1xf32> to vector<8x1xf32>
    %371 = vector.shape_cast %367 : vector<8x1xf32> to vector<1x8x1xf32>
    tpu.vector_store %arg6[%368, %c0_90, %c0_91], %371 {strides = array<i32>} : memref<8x8x1xf32, #tpu.memory_space<vmem>>, vector<1x8x1xf32>,
    %c3_i32 = arith.constant 3 : i32
    %372 = arith.index_cast %c3_i32 : i32 to index
    %c0_92 = arith.constant 0 : index
    %c0_93 = arith.constant 0 : index
    %373 = vector.load %arg2[%372, %c0_92, %c0_93] : memref<8x8x32xf32, #tpu.memory_space<vmem>>, vector<1x8x32xf32>
    %374 = vector.shape_cast %373 : vector<1x8x32xf32> to vector<8x32xf32>
    %375 = arith.index_cast %c3_i32 : i32 to index
    %c0_94 = arith.constant 0 : index
    %c0_95 = arith.constant 0 : index
    %376 = vector.load %arg1[%375, %c0_94, %c0_95] : memref<8x8x16xf32, #tpu.memory_space<vmem>>, vector<1x8x16xf32>
    %377 = vector.shape_cast %376 : vector<1x8x16xf32> to vector<8x16xf32>
    %378 = vector.extract_strided_slice %374 {offsets = [0, 0], sizes = [1, 16], strides = [1, 1]} : vector<8x32xf32> to vector<1x16xf32>
    %379 = vector.extract_strided_slice %374 {offsets = [4, 0], sizes = [1, 16], strides = [1, 1]} : vector<8x32xf32> to vector<1x16xf32>
    %cst_96 = arith.constant dense<0.000000e+00> : vector<16xf32>
    %380 = vector.multi_reduction <add>, %377, %cst_96 [0] : vector<8x16xf32> to vector<16xf32>
    %381 = vector.shape_cast %380 : vector<16xf32> to vector<1x16xf32>
    %382 = arith.mulf %377, %377 : vector<8x16xf32>
    %cst_97 = arith.constant dense<0.000000e+00> : vector<16xf32>
    %383 = vector.multi_reduction <add>, %382, %cst_97 [0] : vector<8x16xf32> to vector<16xf32>
    %384 = vector.shape_cast %383 : vector<16xf32> to vector<1x16xf32>
    %385 = vector.broadcast %cst : f32 to vector<1x16xf32>
    %386 = arith.mulf %381, %385 : vector<1x16xf32>
    %387 = vector.broadcast %cst : f32 to vector<1x16xf32>
    %388 = arith.mulf %384, %387 : vector<1x16xf32>
    %389 = arith.mulf %386, %386 : vector<1x16xf32>
    %390 = arith.subf %388, %389 : vector<1x16xf32>
    %cst_98 = arith.constant 0.000000e+00 : f32
    %391 = vector.broadcast %cst_98 : f32 to vector<1x16xf32>
    %392 = arith.maximumf %390, %391 : vector<1x16xf32>
    %cst_99 = arith.constant 9.99999997E-7 : f32
    %393 = vector.broadcast %cst_99 : f32 to vector<1x16xf32>
    %394 = arith.addf %392, %393 : vector<1x16xf32>
    %395 = math.rsqrt %394 : vector<1x16xf32>
    %396 = arith.mulf %378, %395 : vector<1x16xf32>
    %397 = vector.broadcast %386 : vector<1x16xf32> to vector<8x16xf32>
    %398 = arith.subf %377, %397 : vector<8x16xf32>
    %399 = vector.broadcast %396 : vector<1x16xf32> to vector<8x16xf32>
    %400 = arith.mulf %398, %399 : vector<8x16xf32>
    %401 = vector.broadcast %379 : vector<1x16xf32> to vector<8x16xf32>
    %402 = arith.addf %400, %401 : vector<8x16xf32>
    %403 = arith.index_cast %c3_i32 : i32 to index
    %c0_100 = arith.constant 0 : index
    %c0_101 = arith.constant 0 : index
    %404 = vector.load %arg3[%403, %c0_100, %c0_101] : memref<8x16x32xf32, #tpu.memory_space<vmem>>, vector<1x16x32xf32>
    %405 = vector.shape_cast %404 : vector<1x16x32xf32> to vector<16x32xf32>
    %cst_102 = arith.constant dense<0.000000e+00> : vector<8x32xf32>
    %406 = tpu.matmul %402, %405, %cst_102 {dimension_numbers = #tpu.dot_dimension_numbers<[1], [0], [0], [1], [0, 0, 1, 1], [], []>} : vector<8x16xf32>, vector<16x32xf32>, vector<8x32xf32> -> vector<8x32xf32>
    %407 = vector.extract_strided_slice %374 {offsets = [1, 0], sizes = [1, 32], strides = [1, 1]} : vector<8x32xf32> to vector<1x32xf32>
    %408 = vector.extract_strided_slice %374 {offsets = [5, 0], sizes = [1, 32], strides = [1, 1]} : vector<8x32xf32> to vector<1x32xf32>
    %cst_103 = arith.constant dense<0.000000e+00> : vector<32xf32>
    %409 = vector.multi_reduction <add>, %406, %cst_103 [0] : vector<8x32xf32> to vector<32xf32>
    %410 = vector.shape_cast %409 : vector<32xf32> to vector<1x32xf32>
    %411 = arith.mulf %406, %406 : vector<8x32xf32>
    %cst_104 = arith.constant dense<0.000000e+00> : vector<32xf32>
    %412 = vector.multi_reduction <add>, %411, %cst_104 [0] : vector<8x32xf32> to vector<32xf32>
    %413 = vector.shape_cast %412 : vector<32xf32> to vector<1x32xf32>
    %414 = vector.broadcast %cst : f32 to vector<1x32xf32>
    %415 = arith.mulf %410, %414 : vector<1x32xf32>
    %416 = vector.broadcast %cst : f32 to vector<1x32xf32>
    %417 = arith.mulf %413, %416 : vector<1x32xf32>
    %418 = arith.mulf %415, %415 : vector<1x32xf32>
    %419 = arith.subf %417, %418 : vector<1x32xf32>
    %cst_105 = arith.constant 0.000000e+00 : f32
    %420 = vector.broadcast %cst_105 : f32 to vector<1x32xf32>
    %421 = arith.maximumf %419, %420 : vector<1x32xf32>
    %cst_106 = arith.constant 9.99999997E-7 : f32
    %422 = vector.broadcast %cst_106 : f32 to vector<1x32xf32>
    %423 = arith.addf %421, %422 : vector<1x32xf32>
    %424 = math.rsqrt %423 : vector<1x32xf32>
    %425 = arith.mulf %407, %424 : vector<1x32xf32>
    %426 = vector.broadcast %415 : vector<1x32xf32> to vector<8x32xf32>
    %427 = arith.subf %406, %426 : vector<8x32xf32>
    %428 = vector.broadcast %425 : vector<1x32xf32> to vector<8x32xf32>
    %429 = arith.mulf %427, %428 : vector<8x32xf32>
    %430 = vector.broadcast %408 : vector<1x32xf32> to vector<8x32xf32>
    %431 = arith.addf %429, %430 : vector<8x32xf32>
    %432 = math.tanh %431 : vector<8x32xf32>
    %433 = arith.index_cast %c3_i32 : i32 to index
    %c0_107 = arith.constant 0 : index
    %c0_108 = arith.constant 0 : index
    %434 = vector.load %arg4[%433, %c0_107, %c0_108] : memref<8x32x32xf32, #tpu.memory_space<vmem>>, vector<1x32x32xf32>
    %435 = vector.shape_cast %434 : vector<1x32x32xf32> to vector<32x32xf32>
    %cst_109 = arith.constant dense<0.000000e+00> : vector<8x32xf32>
    %436 = tpu.matmul %432, %435, %cst_109 {dimension_numbers = #tpu.dot_dimension_numbers<[1], [0], [0], [1], [0, 0, 1, 1], [], []>} : vector<8x32xf32>, vector<32x32xf32>, vector<8x32xf32> -> vector<8x32xf32>
    %437 = vector.extract_strided_slice %374 {offsets = [2, 0], sizes = [1, 32], strides = [1, 1]} : vector<8x32xf32> to vector<1x32xf32>
    %438 = vector.extract_strided_slice %374 {offsets = [6, 0], sizes = [1, 32], strides = [1, 1]} : vector<8x32xf32> to vector<1x32xf32>
    %cst_110 = arith.constant dense<0.000000e+00> : vector<32xf32>
    %439 = vector.multi_reduction <add>, %436, %cst_110 [0] : vector<8x32xf32> to vector<32xf32>
    %440 = vector.shape_cast %439 : vector<32xf32> to vector<1x32xf32>
    %441 = arith.mulf %436, %436 : vector<8x32xf32>
    %cst_111 = arith.constant dense<0.000000e+00> : vector<32xf32>
    %442 = vector.multi_reduction <add>, %441, %cst_111 [0] : vector<8x32xf32> to vector<32xf32>
    %443 = vector.shape_cast %442 : vector<32xf32> to vector<1x32xf32>
    %444 = vector.broadcast %cst : f32 to vector<1x32xf32>
    %445 = arith.mulf %440, %444 : vector<1x32xf32>
    %446 = vector.broadcast %cst : f32 to vector<1x32xf32>
    %447 = arith.mulf %443, %446 : vector<1x32xf32>
    %448 = arith.mulf %445, %445 : vector<1x32xf32>
    %449 = arith.subf %447, %448 : vector<1x32xf32>
    %cst_112 = arith.constant 0.000000e+00 : f32
    %450 = vector.broadcast %cst_112 : f32 to vector<1x32xf32>
    %451 = arith.maximumf %449, %450 : vector<1x32xf32>
    %cst_113 = arith.constant 9.99999997E-7 : f32
    %452 = vector.broadcast %cst_113 : f32 to vector<1x32xf32>
    %453 = arith.addf %451, %452 : vector<1x32xf32>
    %454 = math.rsqrt %453 : vector<1x32xf32>
    %455 = arith.mulf %437, %454 : vector<1x32xf32>
    %456 = vector.broadcast %445 : vector<1x32xf32> to vector<8x32xf32>
    %457 = arith.subf %436, %456 : vector<8x32xf32>
    %458 = vector.broadcast %455 : vector<1x32xf32> to vector<8x32xf32>
    %459 = arith.mulf %457, %458 : vector<8x32xf32>
    %460 = vector.broadcast %438 : vector<1x32xf32> to vector<8x32xf32>
    %461 = arith.addf %459, %460 : vector<8x32xf32>
    %462 = math.tanh %461 : vector<8x32xf32>
    %463 = arith.index_cast %c3_i32 : i32 to index
    %c0_114 = arith.constant 0 : index
    %c0_115 = arith.constant 0 : index
    %464 = vector.load %arg5[%463, %c0_114, %c0_115] : memref<8x32x1xf32, #tpu.memory_space<vmem>>, vector<1x32x1xf32>
    %465 = vector.shape_cast %464 : vector<1x32x1xf32> to vector<32x1xf32>
    %cst_116 = arith.constant dense<0.000000e+00> : vector<8x1xf32>
    %466 = tpu.matmul %462, %465, %cst_116 {dimension_numbers = #tpu.dot_dimension_numbers<[1], [0], [0], [1], [0, 0, 1, 1], [], []>} : vector<8x32xf32>, vector<32x1xf32>, vector<8x1xf32> -> vector<8x1xf32>
    %467 = vector.extract_strided_slice %374 {offsets = [3, 0], sizes = [1, 1], strides = [1, 1]} : vector<8x32xf32> to vector<1x1xf32>
    %468 = vector.extract_strided_slice %374 {offsets = [7, 0], sizes = [1, 1], strides = [1, 1]} : vector<8x32xf32> to vector<1x1xf32>
    %cst_117 = arith.constant dense<0.000000e+00> : vector<1xf32>
    %469 = vector.multi_reduction <add>, %466, %cst_117 [0] : vector<8x1xf32> to vector<1xf32>
    %470 = vector.shape_cast %469 : vector<1xf32> to vector<1x1xf32>
    %471 = arith.mulf %466, %466 : vector<8x1xf32>
    %cst_118 = arith.constant dense<0.000000e+00> : vector<1xf32>
    %472 = vector.multi_reduction <add>, %471, %cst_118 [0] : vector<8x1xf32> to vector<1xf32>
    %473 = vector.shape_cast %472 : vector<1xf32> to vector<1x1xf32>
    %474 = vector.broadcast %cst : f32 to vector<1x1xf32>
    %475 = arith.mulf %470, %474 : vector<1x1xf32>
    %476 = vector.broadcast %cst : f32 to vector<1x1xf32>
    %477 = arith.mulf %473, %476 : vector<1x1xf32>
    %478 = arith.mulf %475, %475 : vector<1x1xf32>
    %479 = arith.subf %477, %478 : vector<1x1xf32>
    %cst_119 = arith.constant 0.000000e+00 : f32
    %480 = vector.broadcast %cst_119 : f32 to vector<1x1xf32>
    %481 = arith.maximumf %479, %480 : vector<1x1xf32>
    %cst_120 = arith.constant 9.99999997E-7 : f32
    %482 = vector.broadcast %cst_120 : f32 to vector<1x1xf32>
    %483 = arith.addf %481, %482 : vector<1x1xf32>
    %484 = math.rsqrt %483 : vector<1x1xf32>
    %485 = arith.mulf %467, %484 : vector<1x1xf32>
    %486 = vector.broadcast %475 : vector<1x1xf32> to vector<8x1xf32>
    %487 = arith.subf %466, %486 : vector<8x1xf32>
    %488 = vector.broadcast %485 : vector<1x1xf32> to vector<8x1xf32>
    %489 = arith.mulf %487, %488 : vector<8x1xf32>
    %490 = vector.broadcast %468 : vector<1x1xf32> to vector<8x1xf32>
    %491 = arith.addf %489, %490 : vector<8x1xf32>
    %492 = arith.index_cast %c3_i32 : i32 to index
    %c0_121 = arith.constant 0 : index
    %c0_122 = arith.constant 0 : index
    %493 = vector.load %arg6[%492, %c0_121, %c0_122] : memref<8x8x1xf32, #tpu.memory_space<vmem>>, vector<1x8x1xf32>
    %494 = vector.shape_cast %493 : vector<1x8x1xf32> to vector<8x1xf32>
    %495 = vector.shape_cast %491 : vector<8x1xf32> to vector<1x8x1xf32>
    tpu.vector_store %arg6[%492, %c0_121, %c0_122], %495 {strides = array<i32>} : memref<8x8x1xf32, #tpu.memory_space<vmem>>, vector<1x8x1xf32>,
    %c4_i32 = arith.constant 4 : i32
    %496 = arith.index_cast %c4_i32 : i32 to index
    %c0_123 = arith.constant 0 : index
    %c0_124 = arith.constant 0 : index
    %497 = vector.load %arg2[%496, %c0_123, %c0_124] : memref<8x8x32xf32, #tpu.memory_space<vmem>>, vector<1x8x32xf32>
    %498 = vector.shape_cast %497 : vector<1x8x32xf32> to vector<8x32xf32>
    %499 = arith.index_cast %c4_i32 : i32 to index
    %c0_125 = arith.constant 0 : index
    %c0_126 = arith.constant 0 : index
    %500 = vector.load %arg1[%499, %c0_125, %c0_126] : memref<8x8x16xf32, #tpu.memory_space<vmem>>, vector<1x8x16xf32>
    %501 = vector.shape_cast %500 : vector<1x8x16xf32> to vector<8x16xf32>
    %502 = vector.extract_strided_slice %498 {offsets = [0, 0], sizes = [1, 16], strides = [1, 1]} : vector<8x32xf32> to vector<1x16xf32>
    %503 = vector.extract_strided_slice %498 {offsets = [4, 0], sizes = [1, 16], strides = [1, 1]} : vector<8x32xf32> to vector<1x16xf32>
    %cst_127 = arith.constant dense<0.000000e+00> : vector<16xf32>
    %504 = vector.multi_reduction <add>, %501, %cst_127 [0] : vector<8x16xf32> to vector<16xf32>
    %505 = vector.shape_cast %504 : vector<16xf32> to vector<1x16xf32>
    %506 = arith.mulf %501, %501 : vector<8x16xf32>
    %cst_128 = arith.constant dense<0.000000e+00> : vector<16xf32>
    %507 = vector.multi_reduction <add>, %506, %cst_128 [0] : vector<8x16xf32> to vector<16xf32>
    %508 = vector.shape_cast %507 : vector<16xf32> to vector<1x16xf32>
    %509 = vector.broadcast %cst : f32 to vector<1x16xf32>
    %510 = arith.mulf %505, %509 : vector<1x16xf32>
    %511 = vector.broadcast %cst : f32 to vector<1x16xf32>
    %512 = arith.mulf %508, %511 : vector<1x16xf32>
    %513 = arith.mulf %510, %510 : vector<1x16xf32>
    %514 = arith.subf %512, %513 : vector<1x16xf32>
    %cst_129 = arith.constant 0.000000e+00 : f32
    %515 = vector.broadcast %cst_129 : f32 to vector<1x16xf32>
    %516 = arith.maximumf %514, %515 : vector<1x16xf32>
    %cst_130 = arith.constant 9.99999997E-7 : f32
    %517 = vector.broadcast %cst_130 : f32 to vector<1x16xf32>
    %518 = arith.addf %516, %517 : vector<1x16xf32>
    %519 = math.rsqrt %518 : vector<1x16xf32>
    %520 = arith.mulf %502, %519 : vector<1x16xf32>
    %521 = vector.broadcast %510 : vector<1x16xf32> to vector<8x16xf32>
    %522 = arith.subf %501, %521 : vector<8x16xf32>
    %523 = vector.broadcast %520 : vector<1x16xf32> to vector<8x16xf32>
    %524 = arith.mulf %522, %523 : vector<8x16xf32>
    %525 = vector.broadcast %503 : vector<1x16xf32> to vector<8x16xf32>
    %526 = arith.addf %524, %525 : vector<8x16xf32>
    %527 = arith.index_cast %c4_i32 : i32 to index
    %c0_131 = arith.constant 0 : index
    %c0_132 = arith.constant 0 : index
    %528 = vector.load %arg3[%527, %c0_131, %c0_132] : memref<8x16x32xf32, #tpu.memory_space<vmem>>, vector<1x16x32xf32>
    %529 = vector.shape_cast %528 : vector<1x16x32xf32> to vector<16x32xf32>
    %cst_133 = arith.constant dense<0.000000e+00> : vector<8x32xf32>
    %530 = tpu.matmul %526, %529, %cst_133 {dimension_numbers = #tpu.dot_dimension_numbers<[1], [0], [0], [1], [0, 0, 1, 1], [], []>} : vector<8x16xf32>, vector<16x32xf32>, vector<8x32xf32> -> vector<8x32xf32>
    %531 = vector.extract_strided_slice %498 {offsets = [1, 0], sizes = [1, 32], strides = [1, 1]} : vector<8x32xf32> to vector<1x32xf32>
    %532 = vector.extract_strided_slice %498 {offsets = [5, 0], sizes = [1, 32], strides = [1, 1]} : vector<8x32xf32> to vector<1x32xf32>
    %cst_134 = arith.constant dense<0.000000e+00> : vector<32xf32>
    %533 = vector.multi_reduction <add>, %530, %cst_134 [0] : vector<8x32xf32> to vector<32xf32>
    %534 = vector.shape_cast %533 : vector<32xf32> to vector<1x32xf32>
    %535 = arith.mulf %530, %530 : vector<8x32xf32>
    %cst_135 = arith.constant dense<0.000000e+00> : vector<32xf32>
    %536 = vector.multi_reduction <add>, %535, %cst_135 [0] : vector<8x32xf32> to vector<32xf32>
    %537 = vector.shape_cast %536 : vector<32xf32> to vector<1x32xf32>
    %538 = vector.broadcast %cst : f32 to vector<1x32xf32>
    %539 = arith.mulf %534, %538 : vector<1x32xf32>
    %540 = vector.broadcast %cst : f32 to vector<1x32xf32>
    %541 = arith.mulf %537, %540 : vector<1x32xf32>
    %542 = arith.mulf %539, %539 : vector<1x32xf32>
    %543 = arith.subf %541, %542 : vector<1x32xf32>
    %cst_136 = arith.constant 0.000000e+00 : f32
    %544 = vector.broadcast %cst_136 : f32 to vector<1x32xf32>
    %545 = arith.maximumf %543, %544 : vector<1x32xf32>
    %cst_137 = arith.constant 9.99999997E-7 : f32
    %546 = vector.broadcast %cst_137 : f32 to vector<1x32xf32>
    %547 = arith.addf %545, %546 : vector<1x32xf32>
    %548 = math.rsqrt %547 : vector<1x32xf32>
    %549 = arith.mulf %531, %548 : vector<1x32xf32>
    %550 = vector.broadcast %539 : vector<1x32xf32> to vector<8x32xf32>
    %551 = arith.subf %530, %550 : vector<8x32xf32>
    %552 = vector.broadcast %549 : vector<1x32xf32> to vector<8x32xf32>
    %553 = arith.mulf %551, %552 : vector<8x32xf32>
    %554 = vector.broadcast %532 : vector<1x32xf32> to vector<8x32xf32>
    %555 = arith.addf %553, %554 : vector<8x32xf32>
    %556 = math.tanh %555 : vector<8x32xf32>
    %557 = arith.index_cast %c4_i32 : i32 to index
    %c0_138 = arith.constant 0 : index
    %c0_139 = arith.constant 0 : index
    %558 = vector.load %arg4[%557, %c0_138, %c0_139] : memref<8x32x32xf32, #tpu.memory_space<vmem>>, vector<1x32x32xf32>
    %559 = vector.shape_cast %558 : vector<1x32x32xf32> to vector<32x32xf32>
    %cst_140 = arith.constant dense<0.000000e+00> : vector<8x32xf32>
    %560 = tpu.matmul %556, %559, %cst_140 {dimension_numbers = #tpu.dot_dimension_numbers<[1], [0], [0], [1], [0, 0, 1, 1], [], []>} : vector<8x32xf32>, vector<32x32xf32>, vector<8x32xf32> -> vector<8x32xf32>
    %561 = vector.extract_strided_slice %498 {offsets = [2, 0], sizes = [1, 32], strides = [1, 1]} : vector<8x32xf32> to vector<1x32xf32>
    %562 = vector.extract_strided_slice %498 {offsets = [6, 0], sizes = [1, 32], strides = [1, 1]} : vector<8x32xf32> to vector<1x32xf32>
    %cst_141 = arith.constant dense<0.000000e+00> : vector<32xf32>
    %563 = vector.multi_reduction <add>, %560, %cst_141 [0] : vector<8x32xf32> to vector<32xf32>
    %564 = vector.shape_cast %563 : vector<32xf32> to vector<1x32xf32>
    %565 = arith.mulf %560, %560 : vector<8x32xf32>
    %cst_142 = arith.constant dense<0.000000e+00> : vector<32xf32>
    %566 = vector.multi_reduction <add>, %565, %cst_142 [0] : vector<8x32xf32> to vector<32xf32>
    %567 = vector.shape_cast %566 : vector<32xf32> to vector<1x32xf32>
    %568 = vector.broadcast %cst : f32 to vector<1x32xf32>
    %569 = arith.mulf %564, %568 : vector<1x32xf32>
    %570 = vector.broadcast %cst : f32 to vector<1x32xf32>
    %571 = arith.mulf %567, %570 : vector<1x32xf32>
    %572 = arith.mulf %569, %569 : vector<1x32xf32>
    %573 = arith.subf %571, %572 : vector<1x32xf32>
    %cst_143 = arith.constant 0.000000e+00 : f32
    %574 = vector.broadcast %cst_143 : f32 to vector<1x32xf32>
    %575 = arith.maximumf %573, %574 : vector<1x32xf32>
    %cst_144 = arith.constant 9.99999997E-7 : f32
    %576 = vector.broadcast %cst_144 : f32 to vector<1x32xf32>
    %577 = arith.addf %575, %576 : vector<1x32xf32>
    %578 = math.rsqrt %577 : vector<1x32xf32>
    %579 = arith.mulf %561, %578 : vector<1x32xf32>
    %580 = vector.broadcast %569 : vector<1x32xf32> to vector<8x32xf32>
    %581 = arith.subf %560, %580 : vector<8x32xf32>
    %582 = vector.broadcast %579 : vector<1x32xf32> to vector<8x32xf32>
    %583 = arith.mulf %581, %582 : vector<8x32xf32>
    %584 = vector.broadcast %562 : vector<1x32xf32> to vector<8x32xf32>
    %585 = arith.addf %583, %584 : vector<8x32xf32>
    %586 = math.tanh %585 : vector<8x32xf32>
    %587 = arith.index_cast %c4_i32 : i32 to index
    %c0_145 = arith.constant 0 : index
    %c0_146 = arith.constant 0 : index
    %588 = vector.load %arg5[%587, %c0_145, %c0_146] : memref<8x32x1xf32, #tpu.memory_space<vmem>>, vector<1x32x1xf32>
    %589 = vector.shape_cast %588 : vector<1x32x1xf32> to vector<32x1xf32>
    %cst_147 = arith.constant dense<0.000000e+00> : vector<8x1xf32>
    %590 = tpu.matmul %586, %589, %cst_147 {dimension_numbers = #tpu.dot_dimension_numbers<[1], [0], [0], [1], [0, 0, 1, 1], [], []>} : vector<8x32xf32>, vector<32x1xf32>, vector<8x1xf32> -> vector<8x1xf32>
    %591 = vector.extract_strided_slice %498 {offsets = [3, 0], sizes = [1, 1], strides = [1, 1]} : vector<8x32xf32> to vector<1x1xf32>
    %592 = vector.extract_strided_slice %498 {offsets = [7, 0], sizes = [1, 1], strides = [1, 1]} : vector<8x32xf32> to vector<1x1xf32>
    %cst_148 = arith.constant dense<0.000000e+00> : vector<1xf32>
    %593 = vector.multi_reduction <add>, %590, %cst_148 [0] : vector<8x1xf32> to vector<1xf32>
    %594 = vector.shape_cast %593 : vector<1xf32> to vector<1x1xf32>
    %595 = arith.mulf %590, %590 : vector<8x1xf32>
    %cst_149 = arith.constant dense<0.000000e+00> : vector<1xf32>
    %596 = vector.multi_reduction <add>, %595, %cst_149 [0] : vector<8x1xf32> to vector<1xf32>
    %597 = vector.shape_cast %596 : vector<1xf32> to vector<1x1xf32>
    %598 = vector.broadcast %cst : f32 to vector<1x1xf32>
    %599 = arith.mulf %594, %598 : vector<1x1xf32>
    %600 = vector.broadcast %cst : f32 to vector<1x1xf32>
    %601 = arith.mulf %597, %600 : vector<1x1xf32>
    %602 = arith.mulf %599, %599 : vector<1x1xf32>
    %603 = arith.subf %601, %602 : vector<1x1xf32>
    %cst_150 = arith.constant 0.000000e+00 : f32
    %604 = vector.broadcast %cst_150 : f32 to vector<1x1xf32>
    %605 = arith.maximumf %603, %604 : vector<1x1xf32>
    %cst_151 = arith.constant 9.99999997E-7 : f32
    %606 = vector.broadcast %cst_151 : f32 to vector<1x1xf32>
    %607 = arith.addf %605, %606 : vector<1x1xf32>
    %608 = math.rsqrt %607 : vector<1x1xf32>
    %609 = arith.mulf %591, %608 : vector<1x1xf32>
    %610 = vector.broadcast %599 : vector<1x1xf32> to vector<8x1xf32>
    %611 = arith.subf %590, %610 : vector<8x1xf32>
    %612 = vector.broadcast %609 : vector<1x1xf32> to vector<8x1xf32>
    %613 = arith.mulf %611, %612 : vector<8x1xf32>
    %614 = vector.broadcast %592 : vector<1x1xf32> to vector<8x1xf32>
    %615 = arith.addf %613, %614 : vector<8x1xf32>
    %616 = arith.index_cast %c4_i32 : i32 to index
    %c0_152 = arith.constant 0 : index
    %c0_153 = arith.constant 0 : index
    %617 = vector.load %arg6[%616, %c0_152, %c0_153] : memref<8x8x1xf32, #tpu.memory_space<vmem>>, vector<1x8x1xf32>
    %618 = vector.shape_cast %617 : vector<1x8x1xf32> to vector<8x1xf32>
    %619 = vector.shape_cast %615 : vector<8x1xf32> to vector<1x8x1xf32>
    tpu.vector_store %arg6[%616, %c0_152, %c0_153], %619 {strides = array<i32>} : memref<8x8x1xf32, #tpu.memory_space<vmem>>, vector<1x8x1xf32>,
    %c5_i32 = arith.constant 5 : i32
    %620 = arith.index_cast %c5_i32 : i32 to index
    %c0_154 = arith.constant 0 : index
    %c0_155 = arith.constant 0 : index
    %621 = vector.load %arg2[%620, %c0_154, %c0_155] : memref<8x8x32xf32, #tpu.memory_space<vmem>>, vector<1x8x32xf32>
    %622 = vector.shape_cast %621 : vector<1x8x32xf32> to vector<8x32xf32>
    %623 = arith.index_cast %c5_i32 : i32 to index
    %c0_156 = arith.constant 0 : index
    %c0_157 = arith.constant 0 : index
    %624 = vector.load %arg1[%623, %c0_156, %c0_157] : memref<8x8x16xf32, #tpu.memory_space<vmem>>, vector<1x8x16xf32>
    %625 = vector.shape_cast %624 : vector<1x8x16xf32> to vector<8x16xf32>
    %626 = vector.extract_strided_slice %622 {offsets = [0, 0], sizes = [1, 16], strides = [1, 1]} : vector<8x32xf32> to vector<1x16xf32>
    %627 = vector.extract_strided_slice %622 {offsets = [4, 0], sizes = [1, 16], strides = [1, 1]} : vector<8x32xf32> to vector<1x16xf32>
    %cst_158 = arith.constant dense<0.000000e+00> : vector<16xf32>
    %628 = vector.multi_reduction <add>, %625, %cst_158 [0] : vector<8x16xf32> to vector<16xf32>
    %629 = vector.shape_cast %628 : vector<16xf32> to vector<1x16xf32>
    %630 = arith.mulf %625, %625 : vector<8x16xf32>
    %cst_159 = arith.constant dense<0.000000e+00> : vector<16xf32>
    %631 = vector.multi_reduction <add>, %630, %cst_159 [0] : vector<8x16xf32> to vector<16xf32>
    %632 = vector.shape_cast %631 : vector<16xf32> to vector<1x16xf32>
    %633 = vector.broadcast %cst : f32 to vector<1x16xf32>
    %634 = arith.mulf %629, %633 : vector<1x16xf32>
    %635 = vector.broadcast %cst : f32 to vector<1x16xf32>
    %636 = arith.mulf %632, %635 : vector<1x16xf32>
    %637 = arith.mulf %634, %634 : vector<1x16xf32>
    %638 = arith.subf %636, %637 : vector<1x16xf32>
    %cst_160 = arith.constant 0.000000e+00 : f32
    %639 = vector.broadcast %cst_160 : f32 to vector<1x16xf32>
    %640 = arith.maximumf %638, %639 : vector<1x16xf32>
    %cst_161 = arith.constant 9.99999997E-7 : f32
    %641 = vector.broadcast %cst_161 : f32 to vector<1x16xf32>
    %642 = arith.addf %640, %641 : vector<1x16xf32>
    %643 = math.rsqrt %642 : vector<1x16xf32>
    %644 = arith.mulf %626, %643 : vector<1x16xf32>
    %645 = vector.broadcast %634 : vector<1x16xf32> to vector<8x16xf32>
    %646 = arith.subf %625, %645 : vector<8x16xf32>
    %647 = vector.broadcast %644 : vector<1x16xf32> to vector<8x16xf32>
    %648 = arith.mulf %646, %647 : vector<8x16xf32>
    %649 = vector.broadcast %627 : vector<1x16xf32> to vector<8x16xf32>
    %650 = arith.addf %648, %649 : vector<8x16xf32>
    %651 = arith.index_cast %c5_i32 : i32 to index
    %c0_162 = arith.constant 0 : index
    %c0_163 = arith.constant 0 : index
    %652 = vector.load %arg3[%651, %c0_162, %c0_163] : memref<8x16x32xf32, #tpu.memory_space<vmem>>, vector<1x16x32xf32>
    %653 = vector.shape_cast %652 : vector<1x16x32xf32> to vector<16x32xf32>
    %cst_164 = arith.constant dense<0.000000e+00> : vector<8x32xf32>
    %654 = tpu.matmul %650, %653, %cst_164 {dimension_numbers = #tpu.dot_dimension_numbers<[1], [0], [0], [1], [0, 0, 1, 1], [], []>} : vector<8x16xf32>, vector<16x32xf32>, vector<8x32xf32> -> vector<8x32xf32>
    %655 = vector.extract_strided_slice %622 {offsets = [1, 0], sizes = [1, 32], strides = [1, 1]} : vector<8x32xf32> to vector<1x32xf32>
    %656 = vector.extract_strided_slice %622 {offsets = [5, 0], sizes = [1, 32], strides = [1, 1]} : vector<8x32xf32> to vector<1x32xf32>
    %cst_165 = arith.constant dense<0.000000e+00> : vector<32xf32>
    %657 = vector.multi_reduction <add>, %654, %cst_165 [0] : vector<8x32xf32> to vector<32xf32>
    %658 = vector.shape_cast %657 : vector<32xf32> to vector<1x32xf32>
    %659 = arith.mulf %654, %654 : vector<8x32xf32>
    %cst_166 = arith.constant dense<0.000000e+00> : vector<32xf32>
    %660 = vector.multi_reduction <add>, %659, %cst_166 [0] : vector<8x32xf32> to vector<32xf32>
    %661 = vector.shape_cast %660 : vector<32xf32> to vector<1x32xf32>
    %662 = vector.broadcast %cst : f32 to vector<1x32xf32>
    %663 = arith.mulf %658, %662 : vector<1x32xf32>
    %664 = vector.broadcast %cst : f32 to vector<1x32xf32>
    %665 = arith.mulf %661, %664 : vector<1x32xf32>
    %666 = arith.mulf %663, %663 : vector<1x32xf32>
    %667 = arith.subf %665, %666 : vector<1x32xf32>
    %cst_167 = arith.constant 0.000000e+00 : f32
    %668 = vector.broadcast %cst_167 : f32 to vector<1x32xf32>
    %669 = arith.maximumf %667, %668 : vector<1x32xf32>
    %cst_168 = arith.constant 9.99999997E-7 : f32
    %670 = vector.broadcast %cst_168 : f32 to vector<1x32xf32>
    %671 = arith.addf %669, %670 : vector<1x32xf32>
    %672 = math.rsqrt %671 : vector<1x32xf32>
    %673 = arith.mulf %655, %672 : vector<1x32xf32>
    %674 = vector.broadcast %663 : vector<1x32xf32> to vector<8x32xf32>
    %675 = arith.subf %654, %674 : vector<8x32xf32>
    %676 = vector.broadcast %673 : vector<1x32xf32> to vector<8x32xf32>
    %677 = arith.mulf %675, %676 : vector<8x32xf32>
    %678 = vector.broadcast %656 : vector<1x32xf32> to vector<8x32xf32>
    %679 = arith.addf %677, %678 : vector<8x32xf32>
    %680 = math.tanh %679 : vector<8x32xf32>
    %681 = arith.index_cast %c5_i32 : i32 to index
    %c0_169 = arith.constant 0 : index
    %c0_170 = arith.constant 0 : index
    %682 = vector.load %arg4[%681, %c0_169, %c0_170] : memref<8x32x32xf32, #tpu.memory_space<vmem>>, vector<1x32x32xf32>
    %683 = vector.shape_cast %682 : vector<1x32x32xf32> to vector<32x32xf32>
    %cst_171 = arith.constant dense<0.000000e+00> : vector<8x32xf32>
    %684 = tpu.matmul %680, %683, %cst_171 {dimension_numbers = #tpu.dot_dimension_numbers<[1], [0], [0], [1], [0, 0, 1, 1], [], []>} : vector<8x32xf32>, vector<32x32xf32>, vector<8x32xf32> -> vector<8x32xf32>
    %685 = vector.extract_strided_slice %622 {offsets = [2, 0], sizes = [1, 32], strides = [1, 1]} : vector<8x32xf32> to vector<1x32xf32>
    %686 = vector.extract_strided_slice %622 {offsets = [6, 0], sizes = [1, 32], strides = [1, 1]} : vector<8x32xf32> to vector<1x32xf32>
    %cst_172 = arith.constant dense<0.000000e+00> : vector<32xf32>
    %687 = vector.multi_reduction <add>, %684, %cst_172 [0] : vector<8x32xf32> to vector<32xf32>
    %688 = vector.shape_cast %687 : vector<32xf32> to vector<1x32xf32>
    %689 = arith.mulf %684, %684 : vector<8x32xf32>
    %cst_173 = arith.constant dense<0.000000e+00> : vector<32xf32>
    %690 = vector.multi_reduction <add>, %689, %cst_173 [0] : vector<8x32xf32> to vector<32xf32>
    %691 = vector.shape_cast %690 : vector<32xf32> to vector<1x32xf32>
    %692 = vector.broadcast %cst : f32 to vector<1x32xf32>
    %693 = arith.mulf %688, %692 : vector<1x32xf32>
    %694 = vector.broadcast %cst : f32 to vector<1x32xf32>
    %695 = arith.mulf %691, %694 : vector<1x32xf32>
    %696 = arith.mulf %693, %693 : vector<1x32xf32>
    %697 = arith.subf %695, %696 : vector<1x32xf32>
    %cst_174 = arith.constant 0.000000e+00 : f32
    %698 = vector.broadcast %cst_174 : f32 to vector<1x32xf32>
    %699 = arith.maximumf %697, %698 : vector<1x32xf32>
    %cst_175 = arith.constant 9.99999997E-7 : f32
    %700 = vector.broadcast %cst_175 : f32 to vector<1x32xf32>
    %701 = arith.addf %699, %700 : vector<1x32xf32>
    %702 = math.rsqrt %701 : vector<1x32xf32>
    %703 = arith.mulf %685, %702 : vector<1x32xf32>
    %704 = vector.broadcast %693 : vector<1x32xf32> to vector<8x32xf32>
    %705 = arith.subf %684, %704 : vector<8x32xf32>
    %706 = vector.broadcast %703 : vector<1x32xf32> to vector<8x32xf32>
    %707 = arith.mulf %705, %706 : vector<8x32xf32>
    %708 = vector.broadcast %686 : vector<1x32xf32> to vector<8x32xf32>
    %709 = arith.addf %707, %708 : vector<8x32xf32>
    %710 = math.tanh %709 : vector<8x32xf32>
    %711 = arith.index_cast %c5_i32 : i32 to index
    %c0_176 = arith.constant 0 : index
    %c0_177 = arith.constant 0 : index
    %712 = vector.load %arg5[%711, %c0_176, %c0_177] : memref<8x32x1xf32, #tpu.memory_space<vmem>>, vector<1x32x1xf32>
    %713 = vector.shape_cast %712 : vector<1x32x1xf32> to vector<32x1xf32>
    %cst_178 = arith.constant dense<0.000000e+00> : vector<8x1xf32>
    %714 = tpu.matmul %710, %713, %cst_178 {dimension_numbers = #tpu.dot_dimension_numbers<[1], [0], [0], [1], [0, 0, 1, 1], [], []>} : vector<8x32xf32>, vector<32x1xf32>, vector<8x1xf32> -> vector<8x1xf32>
    %715 = vector.extract_strided_slice %622 {offsets = [3, 0], sizes = [1, 1], strides = [1, 1]} : vector<8x32xf32> to vector<1x1xf32>
    %716 = vector.extract_strided_slice %622 {offsets = [7, 0], sizes = [1, 1], strides = [1, 1]} : vector<8x32xf32> to vector<1x1xf32>
    %cst_179 = arith.constant dense<0.000000e+00> : vector<1xf32>
    %717 = vector.multi_reduction <add>, %714, %cst_179 [0] : vector<8x1xf32> to vector<1xf32>
    %718 = vector.shape_cast %717 : vector<1xf32> to vector<1x1xf32>
    %719 = arith.mulf %714, %714 : vector<8x1xf32>
    %cst_180 = arith.constant dense<0.000000e+00> : vector<1xf32>
    %720 = vector.multi_reduction <add>, %719, %cst_180 [0] : vector<8x1xf32> to vector<1xf32>
    %721 = vector.shape_cast %720 : vector<1xf32> to vector<1x1xf32>
    %722 = vector.broadcast %cst : f32 to vector<1x1xf32>
    %723 = arith.mulf %718, %722 : vector<1x1xf32>
    %724 = vector.broadcast %cst : f32 to vector<1x1xf32>
    %725 = arith.mulf %721, %724 : vector<1x1xf32>
    %726 = arith.mulf %723, %723 : vector<1x1xf32>
    %727 = arith.subf %725, %726 : vector<1x1xf32>
    %cst_181 = arith.constant 0.000000e+00 : f32
    %728 = vector.broadcast %cst_181 : f32 to vector<1x1xf32>
    %729 = arith.maximumf %727, %728 : vector<1x1xf32>
    %cst_182 = arith.constant 9.99999997E-7 : f32
    %730 = vector.broadcast %cst_182 : f32 to vector<1x1xf32>
    %731 = arith.addf %729, %730 : vector<1x1xf32>
    %732 = math.rsqrt %731 : vector<1x1xf32>
    %733 = arith.mulf %715, %732 : vector<1x1xf32>
    %734 = vector.broadcast %723 : vector<1x1xf32> to vector<8x1xf32>
    %735 = arith.subf %714, %734 : vector<8x1xf32>
    %736 = vector.broadcast %733 : vector<1x1xf32> to vector<8x1xf32>
    %737 = arith.mulf %735, %736 : vector<8x1xf32>
    %738 = vector.broadcast %716 : vector<1x1xf32> to vector<8x1xf32>
    %739 = arith.addf %737, %738 : vector<8x1xf32>
    %740 = arith.index_cast %c5_i32 : i32 to index
    %c0_183 = arith.constant 0 : index
    %c0_184 = arith.constant 0 : index
    %741 = vector.load %arg6[%740, %c0_183, %c0_184] : memref<8x8x1xf32, #tpu.memory_space<vmem>>, vector<1x8x1xf32>
    %742 = vector.shape_cast %741 : vector<1x8x1xf32> to vector<8x1xf32>
    %743 = vector.shape_cast %739 : vector<8x1xf32> to vector<1x8x1xf32>
    tpu.vector_store %arg6[%740, %c0_183, %c0_184], %743 {strides = array<i32>} : memref<8x8x1xf32, #tpu.memory_space<vmem>>, vector<1x8x1xf32>,
    %c6_i32 = arith.constant 6 : i32
    %744 = arith.index_cast %c6_i32 : i32 to index
    %c0_185 = arith.constant 0 : index
    %c0_186 = arith.constant 0 : index
    %745 = vector.load %arg2[%744, %c0_185, %c0_186] : memref<8x8x32xf32, #tpu.memory_space<vmem>>, vector<1x8x32xf32>
    %746 = vector.shape_cast %745 : vector<1x8x32xf32> to vector<8x32xf32>
    %747 = arith.index_cast %c6_i32 : i32 to index
    %c0_187 = arith.constant 0 : index
    %c0_188 = arith.constant 0 : index
    %748 = vector.load %arg1[%747, %c0_187, %c0_188] : memref<8x8x16xf32, #tpu.memory_space<vmem>>, vector<1x8x16xf32>
    %749 = vector.shape_cast %748 : vector<1x8x16xf32> to vector<8x16xf32>
    %750 = vector.extract_strided_slice %746 {offsets = [0, 0], sizes = [1, 16], strides = [1, 1]} : vector<8x32xf32> to vector<1x16xf32>
    %751 = vector.extract_strided_slice %746 {offsets = [4, 0], sizes = [1, 16], strides = [1, 1]} : vector<8x32xf32> to vector<1x16xf32>
    %cst_189 = arith.constant dense<0.000000e+00> : vector<16xf32>
    %752 = vector.multi_reduction <add>, %749, %cst_189 [0] : vector<8x16xf32> to vector<16xf32>
    %753 = vector.shape_cast %752 : vector<16xf32> to vector<1x16xf32>
    %754 = arith.mulf %749, %749 : vector<8x16xf32>
    %cst_190 = arith.constant dense<0.000000e+00> : vector<16xf32>
    %755 = vector.multi_reduction <add>, %754, %cst_190 [0] : vector<8x16xf32> to vector<16xf32>
    %756 = vector.shape_cast %755 : vector<16xf32> to vector<1x16xf32>
    %757 = vector.broadcast %cst : f32 to vector<1x16xf32>
    %758 = arith.mulf %753, %757 : vector<1x16xf32>
    %759 = vector.broadcast %cst : f32 to vector<1x16xf32>
    %760 = arith.mulf %756, %759 : vector<1x16xf32>
    %761 = arith.mulf %758, %758 : vector<1x16xf32>
    %762 = arith.subf %760, %761 : vector<1x16xf32>
    %cst_191 = arith.constant 0.000000e+00 : f32
    %763 = vector.broadcast %cst_191 : f32 to vector<1x16xf32>
    %764 = arith.maximumf %762, %763 : vector<1x16xf32>
    %cst_192 = arith.constant 9.99999997E-7 : f32
    %765 = vector.broadcast %cst_192 : f32 to vector<1x16xf32>
    %766 = arith.addf %764, %765 : vector<1x16xf32>
    %767 = math.rsqrt %766 : vector<1x16xf32>
    %768 = arith.mulf %750, %767 : vector<1x16xf32>
    %769 = vector.broadcast %758 : vector<1x16xf32> to vector<8x16xf32>
    %770 = arith.subf %749, %769 : vector<8x16xf32>
    %771 = vector.broadcast %768 : vector<1x16xf32> to vector<8x16xf32>
    %772 = arith.mulf %770, %771 : vector<8x16xf32>
    %773 = vector.broadcast %751 : vector<1x16xf32> to vector<8x16xf32>
    %774 = arith.addf %772, %773 : vector<8x16xf32>
    %775 = arith.index_cast %c6_i32 : i32 to index
    %c0_193 = arith.constant 0 : index
    %c0_194 = arith.constant 0 : index
    %776 = vector.load %arg3[%775, %c0_193, %c0_194] : memref<8x16x32xf32, #tpu.memory_space<vmem>>, vector<1x16x32xf32>
    %777 = vector.shape_cast %776 : vector<1x16x32xf32> to vector<16x32xf32>
    %cst_195 = arith.constant dense<0.000000e+00> : vector<8x32xf32>
    %778 = tpu.matmul %774, %777, %cst_195 {dimension_numbers = #tpu.dot_dimension_numbers<[1], [0], [0], [1], [0, 0, 1, 1], [], []>} : vector<8x16xf32>, vector<16x32xf32>, vector<8x32xf32> -> vector<8x32xf32>
    %779 = vector.extract_strided_slice %746 {offsets = [1, 0], sizes = [1, 32], strides = [1, 1]} : vector<8x32xf32> to vector<1x32xf32>
    %780 = vector.extract_strided_slice %746 {offsets = [5, 0], sizes = [1, 32], strides = [1, 1]} : vector<8x32xf32> to vector<1x32xf32>
    %cst_196 = arith.constant dense<0.000000e+00> : vector<32xf32>
    %781 = vector.multi_reduction <add>, %778, %cst_196 [0] : vector<8x32xf32> to vector<32xf32>
    %782 = vector.shape_cast %781 : vector<32xf32> to vector<1x32xf32>
    %783 = arith.mulf %778, %778 : vector<8x32xf32>
    %cst_197 = arith.constant dense<0.000000e+00> : vector<32xf32>
    %784 = vector.multi_reduction <add>, %783, %cst_197 [0] : vector<8x32xf32> to vector<32xf32>
    %785 = vector.shape_cast %784 : vector<32xf32> to vector<1x32xf32>
    %786 = vector.broadcast %cst : f32 to vector<1x32xf32>
    %787 = arith.mulf %782, %786 : vector<1x32xf32>
    %788 = vector.broadcast %cst : f32 to vector<1x32xf32>
    %789 = arith.mulf %785, %788 : vector<1x32xf32>
    %790 = arith.mulf %787, %787 : vector<1x32xf32>
    %791 = arith.subf %789, %790 : vector<1x32xf32>
    %cst_198 = arith.constant 0.000000e+00 : f32
    %792 = vector.broadcast %cst_198 : f32 to vector<1x32xf32>
    %793 = arith.maximumf %791, %792 : vector<1x32xf32>
    %cst_199 = arith.constant 9.99999997E-7 : f32
    %794 = vector.broadcast %cst_199 : f32 to vector<1x32xf32>
    %795 = arith.addf %793, %794 : vector<1x32xf32>
    %796 = math.rsqrt %795 : vector<1x32xf32>
    %797 = arith.mulf %779, %796 : vector<1x32xf32>
    %798 = vector.broadcast %787 : vector<1x32xf32> to vector<8x32xf32>
    %799 = arith.subf %778, %798 : vector<8x32xf32>
    %800 = vector.broadcast %797 : vector<1x32xf32> to vector<8x32xf32>
    %801 = arith.mulf %799, %800 : vector<8x32xf32>
    %802 = vector.broadcast %780 : vector<1x32xf32> to vector<8x32xf32>
    %803 = arith.addf %801, %802 : vector<8x32xf32>
    %804 = math.tanh %803 : vector<8x32xf32>
    %805 = arith.index_cast %c6_i32 : i32 to index
    %c0_200 = arith.constant 0 : index
    %c0_201 = arith.constant 0 : index
    %806 = vector.load %arg4[%805, %c0_200, %c0_201] : memref<8x32x32xf32, #tpu.memory_space<vmem>>, vector<1x32x32xf32>
    %807 = vector.shape_cast %806 : vector<1x32x32xf32> to vector<32x32xf32>
    %cst_202 = arith.constant dense<0.000000e+00> : vector<8x32xf32>
    %808 = tpu.matmul %804, %807, %cst_202 {dimension_numbers = #tpu.dot_dimension_numbers<[1], [0], [0], [1], [0, 0, 1, 1], [], []>} : vector<8x32xf32>, vector<32x32xf32>, vector<8x32xf32> -> vector<8x32xf32>
    %809 = vector.extract_strided_slice %746 {offsets = [2, 0], sizes = [1, 32], strides = [1, 1]} : vector<8x32xf32> to vector<1x32xf32>
    %810 = vector.extract_strided_slice %746 {offsets = [6, 0], sizes = [1, 32], strides = [1, 1]} : vector<8x32xf32> to vector<1x32xf32>
    %cst_203 = arith.constant dense<0.000000e+00> : vector<32xf32>
    %811 = vector.multi_reduction <add>, %808, %cst_203 [0] : vector<8x32xf32> to vector<32xf32>
    %812 = vector.shape_cast %811 : vector<32xf32> to vector<1x32xf32>
    %813 = arith.mulf %808, %808 : vector<8x32xf32>
    %cst_204 = arith.constant dense<0.000000e+00> : vector<32xf32>
    %814 = vector.multi_reduction <add>, %813, %cst_204 [0] : vector<8x32xf32> to vector<32xf32>
    %815 = vector.shape_cast %814 : vector<32xf32> to vector<1x32xf32>
    %816 = vector.broadcast %cst : f32 to vector<1x32xf32>
    %817 = arith.mulf %812, %816 : vector<1x32xf32>
    %818 = vector.broadcast %cst : f32 to vector<1x32xf32>
    %819 = arith.mulf %815, %818 : vector<1x32xf32>
    %820 = arith.mulf %817, %817 : vector<1x32xf32>
    %821 = arith.subf %819, %820 : vector<1x32xf32>
    %cst_205 = arith.constant 0.000000e+00 : f32
    %822 = vector.broadcast %cst_205 : f32 to vector<1x32xf32>
    %823 = arith.maximumf %821, %822 : vector<1x32xf32>
    %cst_206 = arith.constant 9.99999997E-7 : f32
    %824 = vector.broadcast %cst_206 : f32 to vector<1x32xf32>
    %825 = arith.addf %823, %824 : vector<1x32xf32>
    %826 = math.rsqrt %825 : vector<1x32xf32>
    %827 = arith.mulf %809, %826 : vector<1x32xf32>
    %828 = vector.broadcast %817 : vector<1x32xf32> to vector<8x32xf32>
    %829 = arith.subf %808, %828 : vector<8x32xf32>
    %830 = vector.broadcast %827 : vector<1x32xf32> to vector<8x32xf32>
    %831 = arith.mulf %829, %830 : vector<8x32xf32>
    %832 = vector.broadcast %810 : vector<1x32xf32> to vector<8x32xf32>
    %833 = arith.addf %831, %832 : vector<8x32xf32>
    %834 = math.tanh %833 : vector<8x32xf32>
    %835 = arith.index_cast %c6_i32 : i32 to index
    %c0_207 = arith.constant 0 : index
    %c0_208 = arith.constant 0 : index
    %836 = vector.load %arg5[%835, %c0_207, %c0_208] : memref<8x32x1xf32, #tpu.memory_space<vmem>>, vector<1x32x1xf32>
    %837 = vector.shape_cast %836 : vector<1x32x1xf32> to vector<32x1xf32>
    %cst_209 = arith.constant dense<0.000000e+00> : vector<8x1xf32>
    %838 = tpu.matmul %834, %837, %cst_209 {dimension_numbers = #tpu.dot_dimension_numbers<[1], [0], [0], [1], [0, 0, 1, 1], [], []>} : vector<8x32xf32>, vector<32x1xf32>, vector<8x1xf32> -> vector<8x1xf32>
    %839 = vector.extract_strided_slice %746 {offsets = [3, 0], sizes = [1, 1], strides = [1, 1]} : vector<8x32xf32> to vector<1x1xf32>
    %840 = vector.extract_strided_slice %746 {offsets = [7, 0], sizes = [1, 1], strides = [1, 1]} : vector<8x32xf32> to vector<1x1xf32>
    %cst_210 = arith.constant dense<0.000000e+00> : vector<1xf32>
    %841 = vector.multi_reduction <add>, %838, %cst_210 [0] : vector<8x1xf32> to vector<1xf32>
    %842 = vector.shape_cast %841 : vector<1xf32> to vector<1x1xf32>
    %843 = arith.mulf %838, %838 : vector<8x1xf32>
    %cst_211 = arith.constant dense<0.000000e+00> : vector<1xf32>
    %844 = vector.multi_reduction <add>, %843, %cst_211 [0] : vector<8x1xf32> to vector<1xf32>
    %845 = vector.shape_cast %844 : vector<1xf32> to vector<1x1xf32>
    %846 = vector.broadcast %cst : f32 to vector<1x1xf32>
    %847 = arith.mulf %842, %846 : vector<1x1xf32>
    %848 = vector.broadcast %cst : f32 to vector<1x1xf32>
    %849 = arith.mulf %845, %848 : vector<1x1xf32>
    %850 = arith.mulf %847, %847 : vector<1x1xf32>
    %851 = arith.subf %849, %850 : vector<1x1xf32>
    %cst_212 = arith.constant 0.000000e+00 : f32
    %852 = vector.broadcast %cst_212 : f32 to vector<1x1xf32>
    %853 = arith.maximumf %851, %852 : vector<1x1xf32>
    %cst_213 = arith.constant 9.99999997E-7 : f32
    %854 = vector.broadcast %cst_213 : f32 to vector<1x1xf32>
    %855 = arith.addf %853, %854 : vector<1x1xf32>
    %856 = math.rsqrt %855 : vector<1x1xf32>
    %857 = arith.mulf %839, %856 : vector<1x1xf32>
    %858 = vector.broadcast %847 : vector<1x1xf32> to vector<8x1xf32>
    %859 = arith.subf %838, %858 : vector<8x1xf32>
    %860 = vector.broadcast %857 : vector<1x1xf32> to vector<8x1xf32>
    %861 = arith.mulf %859, %860 : vector<8x1xf32>
    %862 = vector.broadcast %840 : vector<1x1xf32> to vector<8x1xf32>
    %863 = arith.addf %861, %862 : vector<8x1xf32>
    %864 = arith.index_cast %c6_i32 : i32 to index
    %c0_214 = arith.constant 0 : index
    %c0_215 = arith.constant 0 : index
    %865 = vector.load %arg6[%864, %c0_214, %c0_215] : memref<8x8x1xf32, #tpu.memory_space<vmem>>, vector<1x8x1xf32>
    %866 = vector.shape_cast %865 : vector<1x8x1xf32> to vector<8x1xf32>
    %867 = vector.shape_cast %863 : vector<8x1xf32> to vector<1x8x1xf32>
    tpu.vector_store %arg6[%864, %c0_214, %c0_215], %867 {strides = array<i32>} : memref<8x8x1xf32, #tpu.memory_space<vmem>>, vector<1x8x1xf32>,
    %c7_i32 = arith.constant 7 : i32
    %868 = arith.index_cast %c7_i32 : i32 to index
    %c0_216 = arith.constant 0 : index
    %c0_217 = arith.constant 0 : index
    %869 = vector.load %arg2[%868, %c0_216, %c0_217] : memref<8x8x32xf32, #tpu.memory_space<vmem>>, vector<1x8x32xf32>
    %870 = vector.shape_cast %869 : vector<1x8x32xf32> to vector<8x32xf32>
    %871 = arith.index_cast %c7_i32 : i32 to index
    %c0_218 = arith.constant 0 : index
    %c0_219 = arith.constant 0 : index
    %872 = vector.load %arg1[%871, %c0_218, %c0_219] : memref<8x8x16xf32, #tpu.memory_space<vmem>>, vector<1x8x16xf32>
    %873 = vector.shape_cast %872 : vector<1x8x16xf32> to vector<8x16xf32>
    %874 = vector.extract_strided_slice %870 {offsets = [0, 0], sizes = [1, 16], strides = [1, 1]} : vector<8x32xf32> to vector<1x16xf32>
    %875 = vector.extract_strided_slice %870 {offsets = [4, 0], sizes = [1, 16], strides = [1, 1]} : vector<8x32xf32> to vector<1x16xf32>
    %cst_220 = arith.constant dense<0.000000e+00> : vector<16xf32>
    %876 = vector.multi_reduction <add>, %873, %cst_220 [0] : vector<8x16xf32> to vector<16xf32>
    %877 = vector.shape_cast %876 : vector<16xf32> to vector<1x16xf32>
    %878 = arith.mulf %873, %873 : vector<8x16xf32>
    %cst_221 = arith.constant dense<0.000000e+00> : vector<16xf32>
    %879 = vector.multi_reduction <add>, %878, %cst_221 [0] : vector<8x16xf32> to vector<16xf32>
    %880 = vector.shape_cast %879 : vector<16xf32> to vector<1x16xf32>
    %881 = vector.broadcast %cst : f32 to vector<1x16xf32>
    %882 = arith.mulf %877, %881 : vector<1x16xf32>
    %883 = vector.broadcast %cst : f32 to vector<1x16xf32>
    %884 = arith.mulf %880, %883 : vector<1x16xf32>
    %885 = arith.mulf %882, %882 : vector<1x16xf32>
    %886 = arith.subf %884, %885 : vector<1x16xf32>
    %cst_222 = arith.constant 0.000000e+00 : f32
    %887 = vector.broadcast %cst_222 : f32 to vector<1x16xf32>
    %888 = arith.maximumf %886, %887 : vector<1x16xf32>
    %cst_223 = arith.constant 9.99999997E-7 : f32
    %889 = vector.broadcast %cst_223 : f32 to vector<1x16xf32>
    %890 = arith.addf %888, %889 : vector<1x16xf32>
    %891 = math.rsqrt %890 : vector<1x16xf32>
    %892 = arith.mulf %874, %891 : vector<1x16xf32>
    %893 = vector.broadcast %882 : vector<1x16xf32> to vector<8x16xf32>
    %894 = arith.subf %873, %893 : vector<8x16xf32>
    %895 = vector.broadcast %892 : vector<1x16xf32> to vector<8x16xf32>
    %896 = arith.mulf %894, %895 : vector<8x16xf32>
    %897 = vector.broadcast %875 : vector<1x16xf32> to vector<8x16xf32>
    %898 = arith.addf %896, %897 : vector<8x16xf32>
    %899 = arith.index_cast %c7_i32 : i32 to index
    %c0_224 = arith.constant 0 : index
    %c0_225 = arith.constant 0 : index
    %900 = vector.load %arg3[%899, %c0_224, %c0_225] : memref<8x16x32xf32, #tpu.memory_space<vmem>>, vector<1x16x32xf32>
    %901 = vector.shape_cast %900 : vector<1x16x32xf32> to vector<16x32xf32>
    %cst_226 = arith.constant dense<0.000000e+00> : vector<8x32xf32>
    %902 = tpu.matmul %898, %901, %cst_226 {dimension_numbers = #tpu.dot_dimension_numbers<[1], [0], [0], [1], [0, 0, 1, 1], [], []>} : vector<8x16xf32>, vector<16x32xf32>, vector<8x32xf32> -> vector<8x32xf32>
    %903 = vector.extract_strided_slice %870 {offsets = [1, 0], sizes = [1, 32], strides = [1, 1]} : vector<8x32xf32> to vector<1x32xf32>
    %904 = vector.extract_strided_slice %870 {offsets = [5, 0], sizes = [1, 32], strides = [1, 1]} : vector<8x32xf32> to vector<1x32xf32>
    %cst_227 = arith.constant dense<0.000000e+00> : vector<32xf32>
    %905 = vector.multi_reduction <add>, %902, %cst_227 [0] : vector<8x32xf32> to vector<32xf32>
    %906 = vector.shape_cast %905 : vector<32xf32> to vector<1x32xf32>
    %907 = arith.mulf %902, %902 : vector<8x32xf32>
    %cst_228 = arith.constant dense<0.000000e+00> : vector<32xf32>
    %908 = vector.multi_reduction <add>, %907, %cst_228 [0] : vector<8x32xf32> to vector<32xf32>
    %909 = vector.shape_cast %908 : vector<32xf32> to vector<1x32xf32>
    %910 = vector.broadcast %cst : f32 to vector<1x32xf32>
    %911 = arith.mulf %906, %910 : vector<1x32xf32>
    %912 = vector.broadcast %cst : f32 to vector<1x32xf32>
    %913 = arith.mulf %909, %912 : vector<1x32xf32>
    %914 = arith.mulf %911, %911 : vector<1x32xf32>
    %915 = arith.subf %913, %914 : vector<1x32xf32>
    %cst_229 = arith.constant 0.000000e+00 : f32
    %916 = vector.broadcast %cst_229 : f32 to vector<1x32xf32>
    %917 = arith.maximumf %915, %916 : vector<1x32xf32>
    %cst_230 = arith.constant 9.99999997E-7 : f32
    %918 = vector.broadcast %cst_230 : f32 to vector<1x32xf32>
    %919 = arith.addf %917, %918 : vector<1x32xf32>
    %920 = math.rsqrt %919 : vector<1x32xf32>
    %921 = arith.mulf %903, %920 : vector<1x32xf32>
    %922 = vector.broadcast %911 : vector<1x32xf32> to vector<8x32xf32>
    %923 = arith.subf %902, %922 : vector<8x32xf32>
    %924 = vector.broadcast %921 : vector<1x32xf32> to vector<8x32xf32>
    %925 = arith.mulf %923, %924 : vector<8x32xf32>
    %926 = vector.broadcast %904 : vector<1x32xf32> to vector<8x32xf32>
    %927 = arith.addf %925, %926 : vector<8x32xf32>
    %928 = math.tanh %927 : vector<8x32xf32>
    %929 = arith.index_cast %c7_i32 : i32 to index
    %c0_231 = arith.constant 0 : index
    %c0_232 = arith.constant 0 : index
    %930 = vector.load %arg4[%929, %c0_231, %c0_232] : memref<8x32x32xf32, #tpu.memory_space<vmem>>, vector<1x32x32xf32>
    %931 = vector.shape_cast %930 : vector<1x32x32xf32> to vector<32x32xf32>
    %cst_233 = arith.constant dense<0.000000e+00> : vector<8x32xf32>
    %932 = tpu.matmul %928, %931, %cst_233 {dimension_numbers = #tpu.dot_dimension_numbers<[1], [0], [0], [1], [0, 0, 1, 1], [], []>} : vector<8x32xf32>, vector<32x32xf32>, vector<8x32xf32> -> vector<8x32xf32>
    %933 = vector.extract_strided_slice %870 {offsets = [2, 0], sizes = [1, 32], strides = [1, 1]} : vector<8x32xf32> to vector<1x32xf32>
    %934 = vector.extract_strided_slice %870 {offsets = [6, 0], sizes = [1, 32], strides = [1, 1]} : vector<8x32xf32> to vector<1x32xf32>
    %cst_234 = arith.constant dense<0.000000e+00> : vector<32xf32>
    %935 = vector.multi_reduction <add>, %932, %cst_234 [0] : vector<8x32xf32> to vector<32xf32>
    %936 = vector.shape_cast %935 : vector<32xf32> to vector<1x32xf32>
    %937 = arith.mulf %932, %932 : vector<8x32xf32>
    %cst_235 = arith.constant dense<0.000000e+00> : vector<32xf32>
    %938 = vector.multi_reduction <add>, %937, %cst_235 [0] : vector<8x32xf32> to vector<32xf32>
    %939 = vector.shape_cast %938 : vector<32xf32> to vector<1x32xf32>
    %940 = vector.broadcast %cst : f32 to vector<1x32xf32>
    %941 = arith.mulf %936, %940 : vector<1x32xf32>
    %942 = vector.broadcast %cst : f32 to vector<1x32xf32>
    %943 = arith.mulf %939, %942 : vector<1x32xf32>
    %944 = arith.mulf %941, %941 : vector<1x32xf32>
    %945 = arith.subf %943, %944 : vector<1x32xf32>
    %cst_236 = arith.constant 0.000000e+00 : f32
    %946 = vector.broadcast %cst_236 : f32 to vector<1x32xf32>
    %947 = arith.maximumf %945, %946 : vector<1x32xf32>
    %cst_237 = arith.constant 9.99999997E-7 : f32
    %948 = vector.broadcast %cst_237 : f32 to vector<1x32xf32>
    %949 = arith.addf %947, %948 : vector<1x32xf32>
    %950 = math.rsqrt %949 : vector<1x32xf32>
    %951 = arith.mulf %933, %950 : vector<1x32xf32>
    %952 = vector.broadcast %941 : vector<1x32xf32> to vector<8x32xf32>
    %953 = arith.subf %932, %952 : vector<8x32xf32>
    %954 = vector.broadcast %951 : vector<1x32xf32> to vector<8x32xf32>
    %955 = arith.mulf %953, %954 : vector<8x32xf32>
    %956 = vector.broadcast %934 : vector<1x32xf32> to vector<8x32xf32>
    %957 = arith.addf %955, %956 : vector<8x32xf32>
    %958 = math.tanh %957 : vector<8x32xf32>
    %959 = arith.index_cast %c7_i32 : i32 to index
    %c0_238 = arith.constant 0 : index
    %c0_239 = arith.constant 0 : index
    %960 = vector.load %arg5[%959, %c0_238, %c0_239] : memref<8x32x1xf32, #tpu.memory_space<vmem>>, vector<1x32x1xf32>
    %961 = vector.shape_cast %960 : vector<1x32x1xf32> to vector<32x1xf32>
    %cst_240 = arith.constant dense<0.000000e+00> : vector<8x1xf32>
    %962 = tpu.matmul %958, %961, %cst_240 {dimension_numbers = #tpu.dot_dimension_numbers<[1], [0], [0], [1], [0, 0, 1, 1], [], []>} : vector<8x32xf32>, vector<32x1xf32>, vector<8x1xf32> -> vector<8x1xf32>
    %963 = vector.extract_strided_slice %870 {offsets = [3, 0], sizes = [1, 1], strides = [1, 1]} : vector<8x32xf32> to vector<1x1xf32>
    %964 = vector.extract_strided_slice %870 {offsets = [7, 0], sizes = [1, 1], strides = [1, 1]} : vector<8x32xf32> to vector<1x1xf32>
    %cst_241 = arith.constant dense<0.000000e+00> : vector<1xf32>
    %965 = vector.multi_reduction <add>, %962, %cst_241 [0] : vector<8x1xf32> to vector<1xf32>
    %966 = vector.shape_cast %965 : vector<1xf32> to vector<1x1xf32>
    %967 = arith.mulf %962, %962 : vector<8x1xf32>
    %cst_242 = arith.constant dense<0.000000e+00> : vector<1xf32>
    %968 = vector.multi_reduction <add>, %967, %cst_242 [0] : vector<8x1xf32> to vector<1xf32>
    %969 = vector.shape_cast %968 : vector<1xf32> to vector<1x1xf32>
    %970 = vector.broadcast %cst : f32 to vector<1x1xf32>
    %971 = arith.mulf %966, %970 : vector<1x1xf32>
    %972 = vector.broadcast %cst : f32 to vector<1x1xf32>
    %973 = arith.mulf %969, %972 : vector<1x1xf32>
    %974 = arith.mulf %971, %971 : vector<1x1xf32>
    %975 = arith.subf %973, %974 : vector<1x1xf32>
    %cst_243 = arith.constant 0.000000e+00 : f32
    %976 = vector.broadcast %cst_243 : f32 to vector<1x1xf32>
    %977 = arith.maximumf %975, %976 : vector<1x1xf32>
    %cst_244 = arith.constant 9.99999997E-7 : f32
    %978 = vector.broadcast %cst_244 : f32 to vector<1x1xf32>
    %979 = arith.addf %977, %978 : vector<1x1xf32>
    %980 = math.rsqrt %979 : vector<1x1xf32>
    %981 = arith.mulf %963, %980 : vector<1x1xf32>
    %982 = vector.broadcast %971 : vector<1x1xf32> to vector<8x1xf32>
    %983 = arith.subf %962, %982 : vector<8x1xf32>
    %984 = vector.broadcast %981 : vector<1x1xf32> to vector<8x1xf32>
    %985 = arith.mulf %983, %984 : vector<8x1xf32>
    %986 = vector.broadcast %964 : vector<1x1xf32> to vector<8x1xf32>
    %987 = arith.addf %985, %986 : vector<8x1xf32>
    %988 = arith.index_cast %c7_i32 : i32 to index
    %c0_245 = arith.constant 0 : index
    %c0_246 = arith.constant 0 : index
    %989 = vector.load %arg6[%988, %c0_245, %c0_246] : memref<8x8x1xf32, #tpu.memory_space<vmem>>, vector<1x8x1xf32>
    %990 = vector.shape_cast %989 : vector<1x8x1xf32> to vector<8x1xf32>
    %991 = vector.shape_cast %987 : vector<8x1xf32> to vector<1x8x1xf32>
    tpu.vector_store %arg6[%988, %c0_245, %c0_246], %991 {strides = array<i32>} : memref<8x8x1xf32, #tpu.memory_space<vmem>>, vector<1x8x1xf32>,
    %c8_i32 = arith.constant 8 : i32
    return
  }
  func.func @transform_0(%arg0: i32) -> (i32, i32, i32) {
    %c0_i32 = arith.constant 0 : i32
    %c0_i32_0 = arith.constant 0 : i32
    %c0_i32_1 = arith.constant 0 : i32
    return %arg0, %c0_i32, %c0_i32_0 : i32, i32, i32
  }
  func.func @transform_1(%arg0: i32) -> (i32, i32, i32) {
    %c0_i32 = arith.constant 0 : i32
    %c0_i32_0 = arith.constant 0 : i32
    %c0_i32_1 = arith.constant 0 : i32
    return %arg0, %c0_i32, %c0_i32_0 : i32, i32, i32
  }
  func.func @transform_2(%arg0: i32) -> (i32, i32, i32) {
    %c0_i32 = arith.constant 0 : i32
    %c0_i32_0 = arith.constant 0 : i32
    %c0_i32_1 = arith.constant 0 : i32
    return %arg0, %c0_i32, %c0_i32_0 : i32, i32, i32
  }
  func.func @transform_3(%arg0: i32) -> (i32, i32, i32) {
    %c0_i32 = arith.constant 0 : i32
    %c0_i32_0 = arith.constant 0 : i32
    %c0_i32_1 = arith.constant 0 : i32
    return %arg0, %c0_i32, %c0_i32_0 : i32, i32, i32
  }
  func.func @transform_4(%arg0: i32) -> (i32, i32, i32) {
    %c0_i32 = arith.constant 0 : i32
    %c0_i32_0 = arith.constant 0 : i32
    %c0_i32_1 = arith.constant 0 : i32
    return %arg0, %c0_i32, %c0_i32_0 : i32, i32, i32
  }
  func.func @transform_5(%arg0: i32) -> (i32, i32, i32) {
    %c0_i32 = arith.constant 0 : i32
    %c0_i32_0 = arith.constant 0 : i32
    %c0_i32_1 = arith.constant 0 : i32
    return %arg0, %c0_i32, %c0_i32_0 : i32, i32, i32
  }
}

</mosaic_0001>

<bundles_post_ra>
// kernel: tpu_custom_call.1
= control target key start
LH: loop header
LB: loop body
LE: loop exit
PB: predicated region body
PF: predicated region fallthrough
CT: control target
= control target key end

     0   :  { %10 = vsyncpa [#allocation3], 0  ;;  %s4616_s0 = inlined_call_operand.hbm [shape: f32[8,8,16], index: 0, kind: input, shape index: {}]   ;;  %s4617_s1 = inlined_call_operand.hbm [shape: f32[8,8,32], index: 1, kind: input, shape index: {}]   ;;  %s4618_s2 = inlined_call_operand.hbm [shape: f32[8,16,32], index: 2, kind: input, shape index: {}]   ;;  %s4619_s3 = inlined_call_operand.vmem [shape: f32[8,32,32], index: 3, kind: input, shape index: {}]   ;;  %s4620_s4 = inlined_call_operand.vmem [shape: f32[8,32,1], index: 4, kind: input, shape index: {}]   ;;  %s4621_s5 = inlined_call_operand.vmem [shape: f32[8,8,1], index: 5, kind: output, shape index: {}]  }
   0x1   :  { %11 = vsyncpa [#allocation5], 0  ;;  %s3789_s18 = smov [#allocation4]   ;;  %s3790_s20 = smov [#allocation2]  }
   0x2   :  { %s29_s19 = sshll.u32 %s3789_s18, 4  ;;  %s17_s21 = sshll.u32 %s3790_s20, 4  ;;  %s30_s19 = int_to_ptr.vmem [resolvable:$true] %s29_s19  ;;  %s3827_s21 = int_to_ptr.vmem [resolvable:$true] %s17_s21 }
   0x3   :  { %s3719_s24 = scalar_lea.hbm %s4617_s1, 1024 }
   0x4   :  { %p3720_p0 = scmp.ne.s32.totalorder %s4617_s1, %s3719_s24  ;;  %p3723_p1 = scmp.lt.u32.totalorder %s3719_s24, %s4617_s1 }
   0x6   :  { %p3725_p2 = pnand %p3723_p1, %p3720_p0 }
   0x8   :  { %3728 = shalt.err (!%p3725_p2)
}
   0x9   :  { %s3729_s29 = scalar_lea.vmem %s30_s19, 1024  ;;  %p3734_p4 = scmp.lt.s32.totalorder %s30_s19, %s30_s19 }
   0xa   :  { %p3730_p3 = scmp.ne.s32.totalorder %s30_s19, %s3729_s29  ;;  %p3735_p5 = scmp.lt.s32.totalorder %s3729_s29, %s3729_s29 }
   0xc   :  { %p3736_p6 = por %p3735_p5, %p3734_p4 }
   0xe   :  { %p3737_p7 = pnand %p3736_p6, %p3730_p3 }
  0x10   :  { %3740 = shalt.err (!%p3737_p7)
}
  0x11   :  { %s3791_s30 = smov 128   ;;  %s3792_s6 = smov 8  }
  0x12   :  { %35 = dma.hbm_to_vmem [thread:$0]  %s4617_s1, 1024, %s30_s19, [#allocation5], %s3791_s30, %s3791_s30, %s3792_s6  }
  0x13   :  { %s3741_s11 = scalar_lea.hbm %s4616_s0, 1024 }
  0x14   :  { %p3742_p8 = scmp.ne.s32.totalorder %s4616_s0, %s3741_s11  ;;  %p3745_p9 = scmp.lt.u32.totalorder %s3741_s11, %s4616_s0 }
  0x16   :  { %p3747_p10 = pnand %p3745_p9, %p3742_p8 }
  0x18   :  { %3750 = shalt.err (!%p3747_p10)
}
  0x19   :  { %s3751_s16 = scalar_lea.vmem %s3827_s21, 1024  ;;  %p3756_p12 = scmp.lt.s32.totalorder %s3827_s21, %s3827_s21 }
  0x1a   :  { %p3752_p11 = scmp.ne.s32.totalorder %s3827_s21, %s3751_s16  ;;  %p3757_p13 = scmp.lt.s32.totalorder %s3751_s16, %s3751_s16 }
  0x1c   :  { %p3758_p0 = por %p3757_p13, %p3756_p12 }
  0x1e   :  { %p3759_p1 = pnand %p3758_p0, %p3752_p11 }
  0x20   :  { %3762 = shalt.err (!%p3759_p1)
}
  0x21   :  { %23 = dma.hbm_to_vmem [thread:$0]  %s4616_s0, 1024, %s3827_s21, [#allocation3], %s3791_s30, %s3791_s30, %s3792_s6  }
  0x22   :  { %s3793_s18 = smov [#allocation6]   ;;  %s3763_s23 = scalar_lea.hbm %s4618_s2, 2048 }
  0x23   :  { %s41_s19 = sshll.u32 %s3793_s18, 4  ;;  %p3764_p2 = scmp.ne.s32.totalorder %s4618_s2, %s3763_s23  ;;  %s42_s19 = int_to_ptr.vmem [resolvable:$true] %s41_s19 }
  0x24   :  { %p3767_p3 = scmp.lt.u32.totalorder %s3763_s23, %s4618_s2 }
  0x26   :  { %p3769_p4 = pnand %p3767_p3, %p3764_p2 }
  0x28   :  { %3772 = shalt.err (!%p3769_p4)
}
  0x29   :  { %s3773_s28 = scalar_lea.vmem %s42_s19, 2048  ;;  %p3778_p6 = scmp.lt.s32.totalorder %s42_s19, %s42_s19 }
  0x2a   :  { %p3774_p5 = scmp.ne.s32.totalorder %s42_s19, %s3773_s28  ;;  %p3779_p7 = scmp.lt.s32.totalorder %s3773_s28, %s3773_s28 }
  0x2c   :  { %p3780_p8 = por %p3779_p7, %p3778_p6 }
  0x2e   :  { %p3781_p9 = pnand %p3780_p8, %p3774_p5 }
  0x30   :  { %3784 = shalt.err (!%p3781_p9)
}
  0x31   :  { %47 = dma.hbm_to_vmem [thread:$0]  %s4618_s2, 2048, %s42_s19, [#allocation5], %s3791_s30, %s3791_s30, %s3792_s6  }
  0x32   :  { %3785 = dma.done.wait [#allocation3], 1024  }
  0x33   :  { %3786 = vsyncadd [#allocation3], 4294966272 }
  0x34   :  { %3787 = dma.done.wait [#allocation5], 3072  }
  0x35   :  { %3788 = vsyncadd [#allocation5], 4294964224  ;;  %v3794_v0 = vmov 0.0|0.0   ;;  %vm3795_vm0 = vmmov 0   ;;  %v3796_v1 = vmov 0.0   ;;  %vm63_vm1 = vcmask 130048  }
  0x36   :  { %3495 = vmatprep.subr.bf16.mxu0 %v3794_v0  ;;  %3267 = vmatprep.mubr.msk.f32.mxu0 %vm3795_vm0, %v3796_v1  ;;  %v98_v2 = vld [vmem:[#allocation6] sm:$0xff]  ;;  %v99_v3 = vld [vmem:[#allocation6 + $0x8] sm:$0xff]  ;;  %v88_v27 = vlaneseq  ;;  %v211_v41 = vld [vmem:[%s4619_s3 + $0x10] sm:$0xff]  ;;  %vm173_vm2 = vcmask 261120   ;;  %vm398_vm3 = vcmask 7168  }
  0x37   :  { %3498 = vmatprep.subr.bf16.mxu1 %v3794_v0  ;;  %3278 = vmatprep.mubr.msk.f32.mxu1 %vm3795_vm0, %v3796_v1  ;;  %v3496_v4 = vpack.c.bf16 %v99_v3, %v98_v2  ;;  %v62_v5 = vld [vmem:[#allocation2] sm:$0xff]  ;;  %v210_v40 = vld [vmem:[%s4619_s3 + $0x8] sm:$0xff]  ;;  %v212_v43 = vld [vmem:[%s4619_s3 + $0x18] sm:$0xff] }
  0x38   :  { %v64_v6 = vsel %vm63_vm1, %v62_v5, 0.0  ;;  %v71_v7 = vmul.f32 %v62_v5, %v62_v5  ;;  %v3888_v28 = vshrl.u32 %v88_v27, 7  ;;  %v3890_v29 = vld [vmem:[#allocation4] sm:$0xff]  ;;  %v3502_v44 = vpack.c.bf16 %v212_v43, %v211_v41  ;;  %v3919_v45 = vld [vmem:[#allocation2 + $0x8] sm:$0xff] }
  0x39   :  { %3497 = vmatpush3.bf16.msra.mxu0 %v3496_v4  ;;  %v65_v8 = vrot.slane %v64_v6, 4  ;;  %v209_v39 = vld [vmem:[%s4619_s3] sm:$0xff]  ;;  %v438_v46 = vsel %vm63_vm1, %v3919_v45, 0.0  ;;  %v445_v47 = vmul.f32 %v3919_v45, %v3919_v45  ;;  %v3938_v41 = vld [vmem:[#allocation4 + $0x8] sm:$0xff] }
  0x3a   :  { %v72_v9 = vsel %vm63_vm1, %v71_v7, 0.0  ;;  %3504 = vmatprep.subr.bf16.mxu0 %v3794_v0  ;;  %v3893_v30 = vsub.s32 0, %v3888_v28  ;;  %v3896_v31 = vsub.s32 4, %v3888_v28  ;;  %v3499_v42 = vpack.c.bf16 %v210_v40, %v209_v39 }
  0x3b   :  { %v66_v10 = vadd.f32 %v65_v8, %v64_v6  ;;  %v73_v11 = vrot.slane %v72_v9, 4  ;;  %v439_v48 = vrot.slane %v438_v46, 4  ;;  %v446_v49 = vsel %vm63_vm1, %v445_v47, 0.0  ;;  %v473_v47 = vld [vmem:[#allocation6 + $0x10] sm:$0xff] }
  0x3c   :  { %v96_v36 = vrot.slane %v3890_v29, %v3896_v31  ;;  %3500 = vmatpush3.bf16.msra.mxu1 %v3499_v42  ;;  %v447_v51 = vrot.slane %v446_v49, 4 }
  0x3d   :  { %v67_v12 = vrot.slane %v66_v10, 2  ;;  %v74_v13 = vadd.f32 %v73_v11, %v72_v9  ;;  %3501 = vmatprep.subr.bf16.mxu1 %v3794_v0  ;;  %v440_v50 = vadd.f32 %v439_v48, %v438_v46  ;;  %v474_v48 = vld [vmem:[#allocation6 + $0x18] sm:$0xff] }
  0x3e   :  { %v448_v53 = vadd.f32 %v447_v51, %v446_v49  ;;  %v3511_v51 = vpack.c.bf16 %v474_v48, %v473_v47 }
  0x3f   :  { %v68_v14 = vadd.f32 %v67_v12, %v66_v10  ;;  %v75_v15 = vrot.slane %v74_v13, 2  ;;  %v441_v52 = vrot.slane %v440_v50, 2 }
  0x40   :  { %3503 = vmatpush3.bf16.msra.mxu1 %v3502_v44  ;;  %v449_v55 = vrot.slane %v448_v53, 2 }
  0x41   :  { %v69_v16 = vrot.slane %v68_v14, 1  ;;  %v76_v17 = vadd.f32 %v75_v15, %v74_v13  ;;  %3510 = vmatprep.subr.bf16.mxu1 %v3794_v0  ;;  %v442_v54 = vadd.f32 %v441_v52, %v440_v50  ;;  %v470_v50 = vrot.slane %v3938_v41, %v3896_v31 }
  0x42   :  { %v450_v61 = vadd.f32 %v449_v55, %v448_v53 }
  0x43   :  { %v70_v18 = vadd.f32 %v69_v16, %v68_v14  ;;  %v77_v19 = vrot.slane %v76_v17, 1  ;;  %v443_v60 = vrot.slane %v442_v54, 1 }
  0x45   :  { %v78_v20 = vadd.f32 %v77_v19, %v76_v17  ;;  %v79_v21 = vmul.f32 0.125, %v70_v18  ;;  %v444_v4 = vadd.f32 %v443_v60, %v442_v54  ;;  %v322_v54 = vld [vmem:[%s4620_s4 + $0x8] sm:$0xff] }
  0x47   :  { %v80_v22 = vmul.f32 0.125, %v78_v20  ;;  %v81_v23 = vmul.f32 %v79_v21, %v79_v21  ;;  %v87_v34 = vsub.f32 %v62_v5, %v79_v21  ;;  %v451_v5 = vrot.slane %v450_v61, 1 }
  0x48   :  { %v453_v11 = vmul.f32 0.125, %v444_v4 }
  0x49   :  { %v82_v24 = vsub.f32 %v80_v22, %v81_v23  ;;  %v452_v10 = vadd.f32 %v451_v5, %v450_v61 }
  0x4a   :  { %v455_v17 = vmul.f32 %v453_v11, %v453_v11  ;;  %v461_v44 = vsub.f32 %v3919_v45, %v453_v11  ;;  %v321_v45 = vld [vmem:[%s4620_s4] sm:$0xff] }
  0x4b   :  { %v83_v25 = vmax.f32 %v82_v24, 0.0  ;;  %v454_v16 = vmul.f32 0.125, %v452_v10  ;;  %v3505_v55 = vpack.c.bf16 %v322_v54, %v321_v45 }
  0x4d   :  { %v84_v26 = vadd.f32 1e-06, %v83_v25  ;;  %v456_v22 = vsub.f32 %v454_v16, %v455_v17 }
  0x4f   :  { %3623 = vrsqrt.f32 %v84_v26  ;;  %v457_v25 = vmax.f32 %v456_v22, 0.0 }
  0x51   :  { %v458_v27 = vadd.f32 1e-06, %v457_v25 }
  0x59   :  { %v3624_v32 = vpop.eup %3623 }
  0x5a   :  { %v86_v33 = vmul.f32 %v3624_v32, %v3890_v29  ;;  %v3929_v32 = vsub.s32 1, %v3888_v28 }
  0x5c   :  { %v91_v35 = vrot.slane %v86_v33, %v3893_v30  ;;  %v3932_v33 = vsub.s32 5, %v3888_v28 }
  0x5e   :  { %v92_v37 = vmul.f32 %v91_v35, %v87_v34 }
  0x60   :  { %v97_v38 = vadd.f32 %v96_v36, %v92_v37 }
  0x62   :  { %3268 = vmatmul.mubr.msk.f32.vlgmr.msra.gmra.mrb[0].mxu0 %vm63_vm1, %v97_v38  ;;  %v206_v38 = vrot.slane %v3890_v29, %v3932_v33 }
  0x63   :  { %3289 = vmatprep.mubr.msk.f32.mxu0 %vm3795_vm0, %v3796_v1  ;;  %3506 = vmatpush3.bf16.msra.mxu0 %v3505_v55 }
  0x64   :  { %3507 = vmatprep.subr.bf16.mxu0 %v3794_v0 }
 0x135   :  { %v169_v56 = vpop.f32.mrb[0].mxu0 }
 0x136   :  { %v174_v57 = vsel %vm173_vm2, %v169_v56, 0.0  ;;  %v181_v58 = vmul.f32 %v169_v56, %v169_v56  ;;  %v3269_v59 = vpop.f32.mrb[1].mxu0 }
 0x137   :  { %v175_v62 = vrot.slane %v174_v57, 4  ;;  %v3966_v59 = vld [vmem:[#allocation2 + $0x10] sm:$0xff] }
 0x138   :  { %v182_v63 = vsel %vm173_vm2, %v181_v58, 0.0  ;;  %v814_v60 = vsel %vm63_vm1, %v3966_v59, 0.0  ;;  %v821_v61 = vmul.f32 %v3966_v59, %v3966_v59 }
 0x139   :  { %v176_v2 = vadd.f32 %v175_v62, %v174_v57  ;;  %v183_v3 = vrot.slane %v182_v63, 4  ;;  %v324_v57 = vld [vmem:[%s4620_s4 + $0x18] sm:$0xff]  ;;  %v815_v62 = vrot.slane %v814_v60, 4 }
 0x13b   :  { %v177_v6 = vrot.slane %v176_v2, 2  ;;  %v184_v7 = vadd.f32 %v183_v3, %v182_v63  ;;  %v822_v63 = vsel %vm63_vm1, %v821_v61, 0.0 }
 0x13c   :  { %v823_v3 = vrot.slane %v822_v63, 4 }
 0x13d   :  { %v178_v8 = vadd.f32 %v177_v6, %v176_v2  ;;  %v185_v9 = vrot.slane %v184_v7, 2  ;;  %v816_v2 = vadd.f32 %v815_v62, %v814_v60 }
 0x13f   :  { %v179_v12 = vrot.slane %v178_v8, 1  ;;  %v186_v13 = vadd.f32 %v185_v9, %v184_v7  ;;  %v824_v9 = vadd.f32 %v823_v3, %v822_v63 }
 0x141   :  { %v180_v14 = vadd.f32 %v179_v12, %v178_v8  ;;  %v187_v15 = vrot.slane %v186_v13, 1  ;;  %v817_v8 = vrot.slane %v816_v2, 2 }
 0x143   :  { %v188_v18 = vadd.f32 %v187_v15, %v186_v13  ;;  %v189_v19 = vmul.f32 0.125, %v180_v14 }
 0x145   :  { %v190_v20 = vmul.f32 0.125, %v188_v18  ;;  %v191_v21 = vmul.f32 %v189_v19, %v189_v19  ;;  %v197_v36 = vsub.f32 %v169_v56, %v189_v19  ;;  %v323_v56 = vld [vmem:[%s4620_s4 + $0x10] sm:$0xff]  ;;  %v818_v18 = vadd.f32 %v817_v8, %v816_v2 }
 0x146   :  { %v3508_v58 = vpack.c.bf16 %v324_v57, %v323_v56  ;;  %v825_v19 = vrot.slane %v824_v9, 2 }
 0x147   :  { %v192_v23 = vsub.f32 %v190_v20, %v191_v21 }
 0x148   :  { %3509 = vmatpush3.bf16.msra.mxu0 %v3508_v58 }
 0x149   :  { %v193_v24 = vmax.f32 %v192_v23, 0.0  ;;  %3513 = vmatprep.subr.bf16.mxu0 %v3794_v0 }
 0x14b   :  { %v194_v26 = vadd.f32 1e-06, %v193_v24 }
 0x14d   :  { %3625 = vrsqrt.f32 %v194_v26 }
 0x14e   :  { %3627 = vrsqrt.f32 %v458_v27 }
 0x157   :  { %v3626_v34 = vpop.eup %3625 }
 0x158   :  { %v196_v35 = vmul.f32 %v3626_v34, %v3890_v29  ;;  %v3628_v39 = vpop.eup %3627  ;;  %v819_v34 = vrot.slane %v818_v18, 1 }
 0x159   :  { %v460_v43 = vmul.f32 %v3628_v39, %v3938_v41 }
 0x15a   :  { %v201_v37 = vrot.slane %v196_v35, %v3929_v32  ;;  %v826_v35 = vadd.f32 %v825_v19, %v824_v9 }
 0x15b   :  { %v465_v46 = vrot.slane %v460_v43, %v3893_v30 }
 0x15c   :  { %v202_v40 = vmul.f32 %v201_v37, %v197_v36  ;;  %v827_v47 = vrot.slane %v826_v35, 1 }
 0x15d   :  { %v466_v49 = vmul.f32 %v465_v46, %v461_v44  ;;  %v820_v46 = vadd.f32 %v819_v34, %v818_v18 }
 0x15e   :  { %v207_v42 = vadd.f32 %v206_v38, %v202_v40  ;;  %v828_v55 = vadd.f32 %v827_v47, %v826_v35  ;;  %v4003_v35 = vld [vmem:[#allocation4 + $0x10] sm:$0xff]  ;;  %v849_v47 = vld [vmem:[#allocation6 + $0x20] sm:$0xff] }
 0x15f   :  { %v471_v53 = vadd.f32 %v470_v50, %v466_v49  ;;  %v829_v56 = vmul.f32 0.125, %v820_v46 }
 0x160   :  { %3629 = vtanh.f32 %v207_v42  ;;  %v830_v2 = vmul.f32 0.125, %v828_v55  ;;  %v3083_v55 = vld [vmem:[%s4620_s4 + $0x30] sm:$0xff] }
 0x161   :  { %v831_v3 = vmul.f32 %v829_v56, %v829_v56 }
 0x163   :  { %v832_v8 = vsub.f32 %v830_v2, %v831_v3 }
 0x16a   :  { %v3630_v52 = vpop.eup %3629 }
 0x16b   :  { %3279 = vmatmul.mubr.msk.f32.vlgmr.msra.gmra.mrb[0].mxu1 %vm173_vm2, %v3630_v52 }
 0x16c   :  { %3512 = vmatpush3.bf16.msra.mxu1 %v3511_v51  ;;  %3296 = vmatprep.mubr.msk.f32.mxu1 %vm3795_vm0, %v3796_v1 }
 0x16d   :  { %3519 = vmatprep.subr.bf16.mxu1 %v3794_v0 }
 0x16f   :  { %3297 = vmatmul.mubr.msk.f32.vlgmr.msra.gmra.mrb[2].mxu1 %vm63_vm1, %v471_v53 }
 0x170   :  { %3318 = vmatprep.mubr.msk.f32.mxu1 %vm3795_vm0, %v3796_v1 }
 0x23e   :  { %v3973_v4 = vpop.f32.mrb[0].mxu1 }
 0x23f   :  { %v286_v5 = vsel %vm173_vm2, %v3973_v4, 0.0  ;;  %v293_v6 = vmul.f32 %v3973_v4, %v3973_v4  ;;  %v3280_v7 = vpop.f32.mrb[1].mxu1 }
 0x240   :  { %v287_v10 = vrot.slane %v286_v5, 4 }
 0x241   :  { %v294_v11 = vsel %vm173_vm2, %v293_v6, 0.0 }
 0x242   :  { %v288_v12 = vadd.f32 %v287_v10, %v286_v5  ;;  %v295_v13 = vrot.slane %v294_v11, 4  ;;  %v3980_v14 = vpop.f32.mrb[2].mxu1  ;;  %v833_v10 = vmax.f32 %v832_v8, 0.0 }
 0x243   :  { %v548_v15 = vsel %vm173_vm2, %v3980_v14, 0.0  ;;  %v555_v16 = vmul.f32 %v3980_v14, %v3980_v14  ;;  %v3298_v17 = vpop.f32.mrb[3].mxu1 }
 0x244   :  { %v289_v20 = vrot.slane %v288_v12, 2  ;;  %v296_v21 = vadd.f32 %v295_v13, %v294_v11  ;;  %v549_v22 = vrot.slane %v548_v15, 4  ;;  %v3988_v11 = vsub.s32 2, %v3888_v28 }
 0x245   :  { %v556_v23 = vsel %vm173_vm2, %v555_v16, 0.0  ;;  %v834_v13 = vadd.f32 1e-06, %v833_v10 }
 0x246   :  { %v290_v24 = vadd.f32 %v289_v20, %v288_v12  ;;  %v297_v25 = vrot.slane %v296_v21, 2  ;;  %v550_v26 = vadd.f32 %v549_v22, %v548_v15  ;;  %v557_v27 = vrot.slane %v556_v23, 4 }
 0x247   :  { %v3991_v12 = vsub.s32 6, %v3888_v28 }
 0x248   :  { %v291_v36 = vrot.slane %v290_v24, 1  ;;  %v298_v37 = vadd.f32 %v297_v25, %v296_v21  ;;  %v551_v38 = vrot.slane %v550_v26, 2  ;;  %v558_v39 = vadd.f32 %v557_v27, %v556_v23 }
 0x249   :  { %v318_v19 = vrot.slane %v3890_v29, %v3991_v12 }
 0x24a   :  { %v292_v40 = vadd.f32 %v291_v36, %v290_v24  ;;  %v299_v42 = vrot.slane %v298_v37, 1  ;;  %v552_v43 = vadd.f32 %v551_v38, %v550_v26  ;;  %v559_v44 = vrot.slane %v558_v39, 2  ;;  %v3076_v36 = vld [vmem:[%s4619_s3 + $0x20] sm:$0xff] }
 0x24b   :  { %v580_v26 = vrot.slane %v3938_v41, %v3932_v33 }
 0x24c   :  { %v300_v48 = vadd.f32 %v299_v42, %v298_v37  ;;  %v301_v49 = vmul.f32 0.125, %v292_v40  ;;  %v553_v50 = vrot.slane %v552_v43, 1  ;;  %v560_v51 = vadd.f32 %v559_v44, %v558_v39  ;;  %v3077_v37 = vld [vmem:[%s4619_s3 + $0x28] sm:$0xff]  ;;  %v3078_v39 = vld [vmem:[%s4619_s3 + $0x30] sm:$0xff]  ;;  %v3079_v40 = vld [vmem:[%s4619_s3 + $0x38] sm:$0xff] }
 0x24d   :  { %v3514_v38 = vpack.c.bf16 %v3077_v37, %v3076_v36  ;;  %v3517_v46 = vpack.c.bf16 %v3079_v40, %v3078_v39 }
 0x24e   :  { %v302_v52 = vmul.f32 0.125, %v300_v48  ;;  %v303_v53 = vmul.f32 %v301_v49, %v301_v49  ;;  %v554_v45 = vadd.f32 %v553_v50, %v552_v43  ;;  %v561_v54 = vrot.slane %v560_v51, 1  ;;  %v850_v48 = vld [vmem:[#allocation6 + $0x28] sm:$0xff] }
 0x24f   :  { %v309_v17 = vsub.f32 %v3973_v4, %v301_v49  ;;  %v837_v43 = vsub.f32 %v3966_v59, %v829_v56  ;;  %v846_v50 = vrot.slane %v4003_v35, %v3896_v31  ;;  %v3084_v56 = vld [vmem:[%s4620_s4 + $0x38] sm:$0xff] }
 0x250   :  { %v304_v57 = vsub.f32 %v302_v52, %v303_v53  ;;  %v563_v58 = vmul.f32 0.125, %v554_v45  ;;  %v562_v60 = vadd.f32 %v561_v54, %v560_v51  ;;  %v3526_v51 = vpack.c.bf16 %v850_v48, %v849_v47  ;;  %v3081_v53 = vld [vmem:[%s4620_s4 + $0x20] sm:$0xff]  ;;  %v3082_v45 = vld [vmem:[%s4620_s4 + $0x28] sm:$0xff] }
 0x251   :  { %v3520_v54 = vpack.c.bf16 %v3082_v45, %v3081_v53 }
 0x252   :  { %v305_v61 = vmax.f32 %v304_v57, 0.0  ;;  %v565_v62 = vmul.f32 %v563_v58, %v563_v58  ;;  %v564_v63 = vmul.f32 0.125, %v562_v60  ;;  %v571_v24 = vsub.f32 %v3980_v14, %v563_v58  ;;  %v4048_v58 = vld [vmem:[#allocation2 + $0x18] sm:$0xff] }
 0x253   :  { %3521 = vmatpush3.bf16.msra.mxu1 %v3520_v54  ;;  %v3523_v57 = vpack.c.bf16 %v3084_v56, %v3083_v55  ;;  %v1190_v60 = vsel %vm63_vm1, %v4048_v58, 0.0 }
 0x254   :  { %v306_v5 = vadd.f32 1e-06, %v305_v61  ;;  %v566_v6 = vsub.f32 %v564_v63, %v565_v62  ;;  %3522 = vmatprep.subr.bf16.mxu1 %v3794_v0  ;;  %v1197_v61 = vmul.f32 %v4048_v58, %v4048_v58 }
 0x256   :  { %3631 = vrsqrt.f32 %v306_v5  ;;  %v567_v7 = vmax.f32 %v566_v6, 0.0  ;;  %v1191_v5 = vrot.slane %v1190_v60, 4 }
 0x257   :  { %3524 = vmatpush3.bf16.msra.mxu1 %v3523_v57 }
 0x258   :  { %v568_v9 = vadd.f32 1e-06, %v567_v7  ;;  %3528 = vmatprep.subr.bf16.mxu1 %v3794_v0  ;;  %v1198_v7 = vsel %vm63_vm1, %v1197_v61, 0.0 }
 0x25a   :  { %3633 = vrsqrt.f32 %v568_v9 }
 0x25b   :  { %3635 = vrsqrt.f32 %v834_v13  ;;  %v1192_v13 = vadd.f32 %v1191_v5, %v1190_v60 }
 0x260   :  { %v3632_v15 = vpop.eup %3631 }
 0x261   :  { %v308_v16 = vmul.f32 %v3632_v15, %v3890_v29  ;;  %v1199_v15 = vrot.slane %v1198_v7, 4 }
 0x263   :  { %v313_v18 = vrot.slane %v308_v16, %v3988_v11 }
 0x264   :  { %v3634_v20 = vpop.eup %3633 }
 0x265   :  { %v314_v21 = vmul.f32 %v313_v18, %v309_v17  ;;  %v570_v22 = vmul.f32 %v3634_v20, %v3938_v41  ;;  %v3636_v27 = vpop.eup %3635 }
 0x266   :  { %v836_v14 = vmul.f32 %v3636_v27, %v4003_v35 }
 0x267   :  { %v319_v23 = vadd.f32 %v318_v19, %v314_v21  ;;  %v575_v25 = vrot.slane %v570_v22, %v3929_v32 }
 0x268   :  { %v841_v44 = vrot.slane %v836_v14, %v3893_v30 }
 0x269   :  { %3637 = vtanh.f32 %v319_v23  ;;  %v576_v4 = vmul.f32 %v575_v25, %v571_v24  ;;  %v1193_v24 = vrot.slane %v1192_v13, 2  ;;  %v1200_v25 = vadd.f32 %v1199_v15, %v1198_v7 }
 0x26a   :  { %v842_v49 = vmul.f32 %v841_v44, %v837_v43 }
 0x26b   :  { %v581_v34 = vadd.f32 %v580_v26, %v576_v4  ;;  %v1194_v44 = vadd.f32 %v1193_v24, %v1192_v13 }
 0x26c   :  { %v847_v52 = vadd.f32 %v846_v50, %v842_v49 }
 0x26d   :  { %3639 = vtanh.f32 %v581_v34  ;;  %v1195_v61 = vrot.slane %v1194_v44, 1 }
 0x273   :  { %v3638_v42 = vpop.eup %3637 }
 0x274   :  { %3290 = vmatmul.mubr.msk.f32.vlgmr.msra.gmra.mrb[2].mxu0 %vm173_vm2, %v3638_v42 }
 0x275   :  { %3515 = vmatpush3.bf16.msra.mxu0 %v3514_v38  ;;  %3307 = vmatprep.mubr.msk.f32.mxu0 %vm3795_vm0, %v3796_v1 }
 0x276   :  { %3516 = vmatprep.subr.bf16.mxu0 %v3794_v0 }
 0x277   :  { %v3640_v59 = vpop.eup %3639 }
 0x279   :  { %3518 = vmatpush3.bf16.msra.mxu0 %v3517_v46  ;;  %v1201_v46 = vrot.slane %v1200_v25, 2 }
 0x27a   :  { %3525 = vmatprep.subr.bf16.mxu0 %v3794_v0 }
 0x27c   :  { %3308 = vmatmul.mubr.msk.f32.vlgmr.msra.gmra.mrb[4].mxu0 %vm173_vm2, %v3640_v59 }
 0x27d   :  { %3527 = vmatpush3.bf16.msra.mxu0 %v3526_v51  ;;  %3325 = vmatprep.mubr.msk.f32.mxu0 %vm3795_vm0, %v3796_v1 }
 0x27e   :  { %3534 = vmatprep.subr.bf16.mxu0 %v3794_v0 }
 0x280   :  { %3326 = vmatmul.mubr.msk.f32.vlgmr.msra.gmra.mrb[6].mxu0 %vm63_vm1, %v847_v52 }
 0x281   :  { %3347 = vmatprep.mubr.msk.f32.mxu0 %vm3795_vm0, %v3796_v1 }
 0x347   :  { %v4054_v62 = vpop.f32.mrb[2].mxu0 }
 0x348   :  { %v399_v63 = vsel %vm398_vm3, %v4054_v62, 0.0  ;;  %v406_v2 = vmul.f32 %v4054_v62, %v4054_v62  ;;  %v3291_v3 = vpop.f32.mrb[3].mxu0 }
 0x349   :  { %v400_v6 = vrot.slane %v399_v63, 4 }
 0x34a   :  { %v407_v8 = vsel %vm398_vm3, %v406_v2, 0.0 }
 0x34b   :  { %v401_v9 = vadd.f32 %v400_v6, %v399_v63  ;;  %v408_v10 = vrot.slane %v407_v8, 4  ;;  %v1202_v63 = vadd.f32 %v1201_v46, %v1200_v25  ;;  %v4081_v46 = vsub.s32 3, %v3888_v28 }
 0x34d   :  { %v402_v16 = vrot.slane %v401_v9, 2  ;;  %v409_v17 = vadd.f32 %v408_v10, %v407_v8 }
 0x34f   :  { %v403_v18 = vadd.f32 %v402_v16, %v401_v9  ;;  %v410_v19 = vrot.slane %v409_v17, 2  ;;  %v4062_v20 = vpop.f32.mrb[4].mxu0  ;;  %v1196_v16 = vadd.f32 %v1195_v61, %v1194_v44 }
 0x350   :  { %v661_v21 = vsel %vm173_vm2, %v4062_v20, 0.0  ;;  %v668_v22 = vmul.f32 %v4062_v20, %v4062_v20  ;;  %v3309_v23 = vpop.f32.mrb[5].mxu0 }
 0x351   :  { %v404_v26 = vrot.slane %v403_v18, 1  ;;  %v411_v4 = vadd.f32 %v410_v19, %v409_v17  ;;  %v662_v27 = vrot.slane %v661_v21, 4  ;;  %v1203_v17 = vrot.slane %v1202_v63, 1 }
 0x352   :  { %v669_v34 = vsel %vm173_vm2, %v668_v22, 0.0 }
 0x353   :  { %v405_v36 = vadd.f32 %v404_v26, %v403_v18  ;;  %v412_v37 = vrot.slane %v411_v4, 1  ;;  %v663_v14 = vadd.f32 %v662_v27, %v661_v21  ;;  %v670_v38 = vrot.slane %v669_v34, 4  ;;  %v4069_v39 = vpop.f32.mrb[6].mxu0 }
 0x354   :  { %v924_v40 = vsel %vm173_vm2, %v4069_v39, 0.0  ;;  %v931_v42 = vmul.f32 %v4069_v39, %v4069_v39  ;;  %v3327_v43 = vpop.f32.mrb[7].mxu0  ;;  %v1204_v26 = vadd.f32 %v1203_v17, %v1202_v63 }
 0x355   :  { %v413_v47 = vadd.f32 %v412_v37, %v411_v4  ;;  %v414_v48 = vmul.f32 0.125, %v405_v36  ;;  %v664_v49 = vrot.slane %v663_v14, 2  ;;  %v671_v50 = vadd.f32 %v670_v38, %v669_v34 }
 0x356   :  { %v925_v51 = vrot.slane %v924_v40, 4  ;;  %v932_v59 = vsel %vm173_vm2, %v931_v42, 0.0  ;;  %v4076_v4 = vmul.f32 0.125, %v1196_v16  ;;  %v3089_v16 = vld [vmem:[%s4619_s3 + $0x48] sm:$0xff] }
 0x357   :  { %v415_v52 = vmul.f32 0.125, %v413_v47  ;;  %v416_v53 = vmul.f32 %v414_v48, %v414_v48  ;;  %v665_v45 = vadd.f32 %v664_v49, %v663_v14  ;;  %v672_v54 = vrot.slane %v671_v50, 2 }
 0x358   :  { %v926_v55 = vadd.f32 %v925_v51, %v924_v40  ;;  %v933_v56 = vrot.slane %v932_v59, 4  ;;  %v1206_v40 = vmul.f32 0.125, %v1204_v26  ;;  %v1207_v42 = vmul.f32 %v4076_v4, %v4076_v4  ;;  %v1226_v26 = vld [vmem:[#allocation6 + $0x38] sm:$0xff] }
 0x359   :  { %v417_v57 = vsub.f32 %v415_v52, %v416_v53  ;;  %v666_v60 = vrot.slane %v665_v45, 1  ;;  %v673_v2 = vadd.f32 %v672_v54, %v671_v50  ;;  %v4084_v47 = vsub.s32 7, %v3888_v28 }
 0x35a   :  { %v927_v3 = vrot.slane %v926_v55, 2  ;;  %v934_v5 = vadd.f32 %v933_v56, %v932_v59  ;;  %v1208_v51 = vsub.f32 %v1206_v40, %v1207_v42  ;;  %v422_v53 = vsub.f32 %v4054_v62, %v414_v48  ;;  %v3095_v40 = vld [vmem:[%s4620_s4 + $0x50] sm:$0xff]  ;;  %v3096_v42 = vld [vmem:[%s4620_s4 + $0x58] sm:$0xff] }
 0x35b   :  { %v418_v6 = vmax.f32 %v417_v57, 0.0  ;;  %v667_v7 = vadd.f32 %v666_v60, %v665_v45  ;;  %v674_v8 = vrot.slane %v673_v2, 1  ;;  %v431_v54 = vrot.slane %v3890_v29, %v4084_v47 }
 0x35c   :  { %v928_v9 = vadd.f32 %v927_v3, %v926_v55  ;;  %v935_v10 = vrot.slane %v934_v5, 2  ;;  %v1209_v55 = vmax.f32 %v1208_v51, 0.0 }
 0x35d   :  { %v419_v13 = vadd.f32 1e-06, %v418_v6  ;;  %v676_v15 = vmul.f32 0.125, %v667_v7  ;;  %v675_v18 = vadd.f32 %v674_v8, %v673_v2 }
 0x35e   :  { %v929_v19 = vrot.slane %v928_v9, 1  ;;  %v936_v21 = vadd.f32 %v935_v10, %v934_v5  ;;  %v1210_v28 = vadd.f32 1e-06, %v1209_v55 }
 0x35f   :  { %3641 = vrsqrt.f32 %v419_v13  ;;  %v678_v22 = vmul.f32 %v676_v15, %v676_v15  ;;  %v677_v23 = vmul.f32 0.125, %v675_v18  ;;  %v684_v62 = vsub.f32 %v4062_v20, %v676_v15  ;;  %v4105_v13 = vld [vmem:[#allocation4 + $0x18] sm:$0xff]  ;;  %v3088_v15 = vld [vmem:[%s4619_s3 + $0x40] sm:$0xff]  ;;  %v3090_v18 = vld [vmem:[%s4619_s3 + $0x50] sm:$0xff] }
 0x360   :  { %v930_v24 = vadd.f32 %v929_v19, %v928_v9  ;;  %v937_v25 = vrot.slane %v936_v21, 1  ;;  %v956_v20 = vrot.slane %v4003_v35, %v3932_v33  ;;  %v3529_v17 = vpack.c.bf16 %v3089_v16, %v3088_v15  ;;  %v3091_v19 = vld [vmem:[%s4619_s3 + $0x58] sm:$0xff] }
 0x361   :  { %v679_v27 = vsub.f32 %v677_v23, %v678_v22  ;;  %v1213_v22 = vsub.f32 %v4048_v58, %v4076_v4 }
 0x362   :  { %v938_v34 = vadd.f32 %v937_v25, %v936_v21  ;;  %v939_v36 = vmul.f32 0.125, %v930_v24  ;;  %v3532_v24 = vpack.c.bf16 %v3091_v19, %v3090_v18  ;;  %v1225_v25 = vld [vmem:[#allocation6 + $0x30] sm:$0xff] }
 0x363   :  { %v680_v37 = vmax.f32 %v679_v27, 0.0 }
 0x364   :  { %v940_v14 = vmul.f32 0.125, %v938_v34  ;;  %v941_v38 = vmul.f32 %v939_v36, %v939_v36  ;;  %v947_v6 = vsub.f32 %v4069_v39, %v939_v36  ;;  %v1222_v34 = vrot.slane %v4105_v13, %v3896_v31 }
 0x365   :  { %v681_v43 = vadd.f32 1e-06, %v680_v37  ;;  %v3541_v36 = vpack.c.bf16 %v1226_v26, %v1225_v25  ;;  %v3093_v37 = vld [vmem:[%s4620_s4 + $0x40] sm:$0xff] }
 0x366   :  { %v942_v44 = vsub.f32 %v940_v14, %v941_v38  ;;  %v3094_v14 = vld [vmem:[%s4620_s4 + $0x48] sm:$0xff] }
 0x367   :  { %3643 = vrsqrt.f32 %v681_v43  ;;  %v3535_v38 = vpack.c.bf16 %v3094_v14, %v3093_v37  ;;  %v3538_v43 = vpack.c.bf16 %v3096_v42, %v3095_v40 }
 0x368   :  { %v943_v49 = vmax.f32 %v942_v44, 0.0  ;;  %v4151_v44 = vld [vmem:[#allocation2 + $0x20] sm:$0xff] }
 0x369   :  { %v3642_v50 = vpop.eup %3641  ;;  %3536 = vmatpush3.bf16.msra.mxu0 %v3535_v38 }
 0x36a   :  { %v421_v59 = vmul.f32 %v3642_v50, %v3890_v29  ;;  %v944_v52 = vadd.f32 1e-06, %v943_v49  ;;  %v693_v29 = vrot.slane %v3938_v41, %v3991_v12  ;;  %3537 = vmatprep.subr.bf16.mxu0 %v3794_v0  ;;  %v1566_v49 = vsel %vm63_vm1, %v4151_v44, 0.0 }
 0x36b   :  { %v1573_v50 = vmul.f32 %v4151_v44, %v4151_v44 }
 0x36c   :  { %v426_v45 = vrot.slane %v421_v59, %v4081_v46  ;;  %3645 = vrsqrt.f32 %v944_v52 }
 0x36d   :  { %3647 = vrsqrt.f32 %v1210_v28  ;;  %3539 = vmatpush3.bf16.msra.mxu0 %v3538_v43  ;;  %v1574_v55 = vsel %vm63_vm1, %v1573_v50, 0.0 }
 0x36e   :  { %v427_v56 = vmul.f32 %v426_v45, %v422_v53  ;;  %3543 = vmatprep.subr.bf16.mxu0 %v3794_v0  ;;  %v1567_v45 = vrot.slane %v1566_v49, 4 }
 0x370   :  { %v432_v57 = vadd.f32 %v431_v54, %v427_v56 }
 0x371   :  { %v3644_v60 = vpop.eup %3643 }
 0x372   :  { %433 = vst.msk [vmem:[%s4621_s5] sm:$0xff] %vm398_vm3, %v432_v57  ;;  %v683_v61 = vmul.f32 %v3644_v60, %v3938_v41  ;;  %v1568_v60 = vadd.f32 %v1567_v45, %v1566_v49 }
 0x374   :  { %v688_v48 = vrot.slane %v683_v61, %v3988_v11  ;;  %v1575_v61 = vrot.slane %v1574_v55, 4 }
 0x376   :  { %v3646_v63 = vpop.eup %3645  ;;  %v689_v2 = vmul.f32 %v688_v48, %v684_v62 }
 0x377   :  { %v946_v3 = vmul.f32 %v3646_v63, %v4003_v35  ;;  %v3648_v9 = vpop.eup %3647 }
 0x378   :  { %v694_v5 = vadd.f32 %v693_v29, %v689_v2  ;;  %v1212_v39 = vmul.f32 %v3648_v9, %v4105_v13 }
 0x379   :  { %v951_v7 = vrot.slane %v946_v3, %v3929_v32 }
 0x37a   :  { %3649 = vtanh.f32 %v694_v5  ;;  %v1217_v23 = vrot.slane %v1212_v39, %v3893_v30 }
 0x37b   :  { %v952_v8 = vmul.f32 %v951_v7, %v947_v6  ;;  %v1569_v7 = vrot.slane %v1568_v60, 2 }
 0x37c   :  { %v1218_v27 = vmul.f32 %v1217_v23, %v1213_v22 }
 0x37d   :  { %v957_v10 = vadd.f32 %v956_v20, %v952_v8  ;;  %v1576_v8 = vadd.f32 %v1575_v61, %v1574_v55 }
 0x37e   :  { %v1223_v4 = vadd.f32 %v1222_v34, %v1218_v27 }
 0x37f   :  { %3651 = vtanh.f32 %v957_v10  ;;  %v1577_v25 = vrot.slane %v1576_v8, 2 }
 0x384   :  { %v3650_v21 = vpop.eup %3649 }
 0x385   :  { %3319 = vmatmul.mubr.msk.f32.vlgmr.msra.gmra.mrb[4].mxu1 %vm173_vm2, %v3650_v21 }
 0x386   :  { %3530 = vmatpush3.bf16.msra.mxu1 %v3529_v17  ;;  %3336 = vmatprep.mubr.msk.f32.mxu1 %vm3795_vm0, %v3796_v1 }
 0x387   :  { %3531 = vmatprep.subr.bf16.mxu1 %v3794_v0 }
 0x389   :  { %v3652_v58 = vpop.eup %3651 }
 0x38a   :  { %3533 = vmatpush3.bf16.msra.mxu1 %v3532_v24  ;;  %v1570_v24 = vadd.f32 %v1569_v7, %v1568_v60 }
 0x38b   :  { %3540 = vmatprep.subr.bf16.mxu1 %v3794_v0 }
 0x38d   :  { %3337 = vmatmul.mubr.msk.f32.vlgmr.msra.gmra.mrb[6].mxu1 %vm173_vm2, %v3652_v58 }
 0x38e   :  { %3542 = vmatpush3.bf16.msra.mxu1 %v3541_v36  ;;  %3354 = vmatprep.mubr.msk.f32.mxu1 %vm3795_vm0, %v3796_v1 }
 0x38f   :  { %3549 = vmatprep.subr.bf16.mxu1 %v3794_v0 }
 0x391   :  { %3355 = vmatmul.mubr.msk.f32.vlgmr.msra.gmra.mrb[8].mxu1 %vm63_vm1, %v1223_v4 }
 0x392   :  { %3376 = vmatprep.mubr.msk.f32.mxu1 %vm3795_vm0, %v3796_v1 }
 0x458   :  { %v4157_v51 = vpop.f32.mrb[4].mxu1 }
 0x459   :  { %v774_v59 = vsel %vm398_vm3, %v4157_v51, 0.0  ;;  %v781_v52 = vmul.f32 %v4157_v51, %v4157_v51  ;;  %v3320_v53 = vpop.f32.mrb[5].mxu1 }
 0x45a   :  { %v775_v54 = vrot.slane %v774_v59, 4 }
 0x45b   :  { %v782_v56 = vsel %vm398_vm3, %v781_v52, 0.0  ;;  %v1578_v52 = vadd.f32 %v1577_v25, %v1576_v8 }
 0x45c   :  { %v776_v57 = vadd.f32 %v775_v54, %v774_v59  ;;  %v783_v28 = vrot.slane %v782_v56, 4  ;;  %v1571_v59 = vrot.slane %v1570_v24, 1 }
 0x45e   :  { %v777_v62 = vrot.slane %v776_v57, 2  ;;  %v784_v48 = vadd.f32 %v783_v28, %v782_v56 }
 0x460   :  { %v778_v29 = vadd.f32 %v777_v62, %v776_v57  ;;  %v785_v63 = vrot.slane %v784_v48, 2  ;;  %v4165_v2 = vpop.f32.mrb[6].mxu1 }
 0x461   :  { %v1037_v3 = vsel %vm173_vm2, %v4165_v2, 0.0  ;;  %v1044_v5 = vmul.f32 %v4165_v2, %v4165_v2  ;;  %v3338_v6 = vpop.f32.mrb[7].mxu1 }
 0x462   :  { %v779_v20 = vrot.slane %v778_v29, 1  ;;  %v786_v9 = vadd.f32 %v785_v63, %v784_v48  ;;  %v1038_v10 = vrot.slane %v1037_v3, 4  ;;  %v1572_v48 = vadd.f32 %v1571_v59, %v1570_v24 }
 0x463   :  { %v1045_v15 = vsel %vm173_vm2, %v1044_v5, 0.0 }
 0x464   :  { %v780_v16 = vadd.f32 %v779_v20, %v778_v29  ;;  %v787_v39 = vrot.slane %v786_v9, 1  ;;  %v1039_v17 = vadd.f32 %v1038_v10, %v1037_v3  ;;  %v1046_v18 = vrot.slane %v1045_v15, 4  ;;  %v4172_v19 = vpop.f32.mrb[8].mxu1 }
 0x465   :  { %v1300_v21 = vsel %vm173_vm2, %v4172_v19, 0.0  ;;  %v1307_v22 = vmul.f32 %v4172_v19, %v4172_v19  ;;  %v3356_v23 = vpop.f32.mrb[9].mxu1  ;;  %v1579_v29 = vrot.slane %v1578_v52, 1  ;;  %v1581_v10 = vmul.f32 0.125, %v1572_v48  ;;  %v3101_v48 = vld [vmem:[%s4619_s3 + $0x68] sm:$0xff] }
 0x466   :  { %v788_v26 = vadd.f32 %v787_v39, %v786_v9  ;;  %v789_v27 = vmul.f32 0.125, %v780_v16  ;;  %v1040_v34 = vrot.slane %v1039_v17, 2  ;;  %v1047_v36 = vadd.f32 %v1046_v18, %v1045_v15 }
 0x467   :  { %v1301_v58 = vrot.slane %v1300_v21, 4  ;;  %v1308_v4 = vsel %vm173_vm2, %v1307_v22, 0.0  ;;  %v1580_v9 = vadd.f32 %v1579_v29, %v1578_v52  ;;  %v1583_v23 = vmul.f32 %v1581_v10, %v1581_v10 }
 0x468   :  { %v790_v37 = vmul.f32 0.125, %v788_v26  ;;  %v791_v14 = vmul.f32 %v789_v27, %v789_v27  ;;  %v1041_v38 = vadd.f32 %v1040_v34, %v1039_v17  ;;  %v1048_v40 = vrot.slane %v1047_v36, 2 }
 0x469   :  { %v1302_v42 = vadd.f32 %v1301_v58, %v1300_v21  ;;  %v1309_v43 = vrot.slane %v1308_v4, 4  ;;  %v1582_v22 = vmul.f32 0.125, %v1580_v9  ;;  %v1602_v9 = vld [vmem:[#allocation6 + $0x48] sm:$0xff] }
 0x46a   :  { %v792_v49 = vsub.f32 %v790_v37, %v791_v14  ;;  %v1042_v50 = vrot.slane %v1041_v38, 1  ;;  %v1049_v53 = vadd.f32 %v1048_v40, %v1047_v36  ;;  %v797_v37 = vsub.f32 %v4157_v51, %v789_v27 }
 0x46b   :  { %v1303_v45 = vrot.slane %v1302_v42, 2  ;;  %v1310_v54 = vadd.f32 %v1309_v43, %v1308_v4  ;;  %v1584_v36 = vsub.f32 %v1582_v22, %v1583_v23  ;;  %v3107_v22 = vld [vmem:[%s4620_s4 + $0x70] sm:$0xff]  ;;  %v3108_v23 = vld [vmem:[%s4620_s4 + $0x78] sm:$0xff] }
 0x46c   :  { %v793_v55 = vmax.f32 %v792_v49, 0.0  ;;  %v1043_v56 = vadd.f32 %v1042_v50, %v1041_v38  ;;  %v1050_v57 = vrot.slane %v1049_v53, 1  ;;  %v806_v38 = vrot.slane %v3938_v41, %v4084_v47 }
 0x46d   :  { %v1304_v28 = vadd.f32 %v1303_v45, %v1302_v42  ;;  %v1311_v60 = vrot.slane %v1310_v54, 2  ;;  %v1585_v40 = vmax.f32 %v1584_v36, 0.0 }
 0x46e   :  { %v794_v61 = vadd.f32 1e-06, %v793_v55  ;;  %v1052_v62 = vmul.f32 0.125, %v1043_v56  ;;  %v1051_v63 = vadd.f32 %v1050_v57, %v1049_v53 }
 0x46f   :  { %v1305_v3 = vrot.slane %v1304_v28, 1  ;;  %v1312_v5 = vadd.f32 %v1311_v60, %v1310_v54  ;;  %v1586_v49 = vadd.f32 1e-06, %v1585_v40 }
 0x470   :  { %3653 = vrsqrt.f32 %v794_v61  ;;  %v1054_v6 = vmul.f32 %v1052_v62, %v1052_v62  ;;  %v1053_v7 = vmul.f32 0.125, %v1051_v63  ;;  %v1060_v51 = vsub.f32 %v4165_v2, %v1052_v62  ;;  %v4198_v61 = vld [vmem:[#allocation4 + $0x20] sm:$0xff]  ;;  %v3102_v63 = vld [vmem:[%s4619_s3 + $0x70] sm:$0xff] }
 0x471   :  { %v1306_v20 = vadd.f32 %v1305_v3, %v1304_v28  ;;  %v1313_v8 = vrot.slane %v1312_v5, 1  ;;  %v1332_v2 = vrot.slane %v4105_v13, %v3932_v33  ;;  %v3100_v62 = vld [vmem:[%s4619_s3 + $0x60] sm:$0xff]  ;;  %v3103_v3 = vld [vmem:[%s4619_s3 + $0x78] sm:$0xff] }
 0x472   :  { %v1055_v15 = vsub.f32 %v1053_v7, %v1054_v6  ;;  %v3544_v29 = vpack.c.bf16 %v3101_v48, %v3100_v62  ;;  %v1589_v6 = vsub.f32 %v4151_v44, %v1581_v10 }
 0x473   :  { %v1314_v16 = vadd.f32 %v1313_v8, %v1312_v5  ;;  %v1315_v39 = vmul.f32 0.125, %v1306_v20  ;;  %v3547_v20 = vpack.c.bf16 %v3103_v3, %v3102_v63  ;;  %v1601_v8 = vld [vmem:[#allocation6 + $0x40] sm:$0xff] }
 0x474   :  { %v1056_v17 = vmax.f32 %v1055_v15, 0.0 }
 0x475   :  { %v1316_v18 = vmul.f32 0.125, %v1314_v16  ;;  %v1317_v21 = vmul.f32 %v1315_v39, %v1315_v39  ;;  %v1323_v55 = vsub.f32 %v4172_v19, %v1315_v39  ;;  %v1598_v16 = vrot.slane %v4198_v61, %v3896_v31 }
 0x476   :  { %v1057_v24 = vadd.f32 1e-06, %v1056_v17  ;;  %v3556_v39 = vpack.c.bf16 %v1602_v9, %v1601_v8  ;;  %v3105_v17 = vld [vmem:[%s4620_s4 + $0x60] sm:$0xff] }
 0x477   :  { %v1318_v25 = vsub.f32 %v1316_v18, %v1317_v21  ;;  %v3106_v18 = vld [vmem:[%s4620_s4 + $0x68] sm:$0xff] }
 0x478   :  { %3655 = vrsqrt.f32 %v1057_v24  ;;  %v3550_v21 = vpack.c.bf16 %v3106_v18, %v3105_v17  ;;  %v3553_v24 = vpack.c.bf16 %v3108_v23, %v3107_v22 }
 0x479   :  { %v1319_v26 = vmax.f32 %v1318_v25, 0.0  ;;  %v4243_v25 = vld [vmem:[#allocation2 + $0x28] sm:$0xff] }
 0x47a   :  { %v3654_v34 = vpop.eup %3653  ;;  %3551 = vmatpush3.bf16.msra.mxu1 %v3550_v21 }
 0x47b   :  { %v796_v58 = vmul.f32 %v3654_v34, %v3938_v41  ;;  %v1320_v4 = vadd.f32 1e-06, %v1319_v26  ;;  %v1069_v41 = vrot.slane %v4003_v35, %v3991_v12  ;;  %3552 = vmatprep.subr.bf16.mxu1 %v3794_v0  ;;  %v1942_v26 = vsel %vm63_vm1, %v4243_v25, 0.0 }
 0x47c   :  { %v1949_v34 = vmul.f32 %v4243_v25, %v4243_v25 }
 0x47d   :  { %v801_v14 = vrot.slane %v796_v58, %v4081_v46  ;;  %3657 = vrsqrt.f32 %v1320_v4 }
 0x47e   :  { %3659 = vrsqrt.f32 %v1586_v49  ;;  %3554 = vmatpush3.bf16.msra.mxu1 %v3553_v24  ;;  %v1950_v40 = vsel %vm63_vm1, %v1949_v34, 0.0 }
 0x47f   :  { %v802_v42 = vmul.f32 %v801_v14, %v797_v37  ;;  %3558 = vmatprep.subr.bf16.mxu1 %v3794_v0  ;;  %v1943_v14 = vrot.slane %v1942_v26, 4 }
 0x481   :  { %v807_v43 = vadd.f32 %v806_v38, %v802_v42 }
 0x482   :  { %v3656_v50 = vpop.eup %3655 }
 0x483   :  { %3086 = vst.msk [vmem:[%s4621_s5 + $0x8] sm:$0xff] %vm398_vm3, %v807_v43  ;;  %v1059_v59 = vmul.f32 %v3656_v50, %v4003_v35  ;;  %v1944_v50 = vadd.f32 %v1943_v14, %v1942_v26 }
 0x485   :  { %v1064_v27 = vrot.slane %v1059_v59, %v3988_v11  ;;  %v1951_v59 = vrot.slane %v1950_v40, 4 }
 0x487   :  { %v3658_v52 = vpop.eup %3657  ;;  %v1065_v53 = vmul.f32 %v1064_v27, %v1060_v51 }
 0x488   :  { %v1322_v45 = vmul.f32 %v3658_v52, %v4105_v13  ;;  %v3660_v28 = vpop.eup %3659 }
 0x489   :  { %v1070_v54 = vadd.f32 %v1069_v41, %v1065_v53  ;;  %v1588_v19 = vmul.f32 %v3660_v28, %v4198_v61 }
 0x48a   :  { %v1327_v56 = vrot.slane %v1322_v45, %v3929_v32 }
 0x48b   :  { %3661 = vtanh.f32 %v1070_v54  ;;  %v1593_v7 = vrot.slane %v1588_v19, %v3893_v30 }
 0x48c   :  { %v1328_v57 = vmul.f32 %v1327_v56, %v1323_v55  ;;  %v1945_v56 = vrot.slane %v1944_v50, 2 }
 0x48d   :  { %v1594_v15 = vmul.f32 %v1593_v7, %v1589_v6 }
 0x48e   :  { %v1333_v60 = vadd.f32 %v1332_v2, %v1328_v57  ;;  %v1952_v57 = vadd.f32 %v1951_v59, %v1950_v40 }
 0x48f   :  { %v1599_v10 = vadd.f32 %v1598_v16, %v1594_v15 }
 0x490   :  { %3663 = vtanh.f32 %v1333_v60  ;;  %v1953_v8 = vrot.slane %v1952_v57, 2 }
 0x495   :  { %v3662_v5 = vpop.eup %3661 }
 0x496   :  { %3348 = vmatmul.mubr.msk.f32.vlgmr.msra.gmra.mrb[8].mxu0 %vm173_vm2, %v3662_v5 }
 0x497   :  { %3545 = vmatpush3.bf16.msra.mxu0 %v3544_v29  ;;  %3365 = vmatprep.mubr.msk.f32.mxu0 %vm3795_vm0, %v3796_v1 }
 0x498   :  { %3546 = vmatprep.subr.bf16.mxu0 %v3794_v0 }
 0x49a   :  { %v3664_v44 = vpop.eup %3663 }
 0x49b   :  { %3548 = vmatpush3.bf16.msra.mxu0 %v3547_v20  ;;  %v1946_v20 = vadd.f32 %v1945_v56, %v1944_v50 }
 0x49c   :  { %3555 = vmatprep.subr.bf16.mxu0 %v3794_v0 }
 0x49e   :  { %3366 = vmatmul.mubr.msk.f32.vlgmr.msra.gmra.mrb[10].mxu0 %vm173_vm2, %v3664_v44 }
 0x49f   :  { %3557 = vmatpush3.bf16.msra.mxu0 %v3556_v39  ;;  %3383 = vmatprep.mubr.msk.f32.mxu0 %vm3795_vm0, %v3796_v1 }
 0x4a0   :  { %3564 = vmatprep.subr.bf16.mxu0 %v3794_v0 }
 0x4a2   :  { %3384 = vmatmul.mubr.msk.f32.vlgmr.msra.gmra.mrb[12].mxu0 %vm63_vm1, %v1599_v10 }
 0x4a3   :  { %3405 = vmatprep.mubr.msk.f32.mxu0 %vm3795_vm0, %v3796_v1 }
 0x569   :  { %v4249_v36 = vpop.f32.mrb[8].mxu0 }
 0x56a   :  { %v1150_v58 = vsel %vm398_vm3, %v4249_v36, 0.0  ;;  %v1157_v4 = vmul.f32 %v4249_v36, %v4249_v36  ;;  %v3349_v37 = vpop.f32.mrb[9].mxu0 }
 0x56b   :  { %v1151_v38 = vrot.slane %v1150_v58, 4 }
 0x56c   :  { %v1158_v42 = vsel %vm398_vm3, %v1157_v4, 0.0  ;;  %v1954_v4 = vadd.f32 %v1953_v8, %v1952_v57 }
 0x56d   :  { %v1152_v43 = vadd.f32 %v1151_v38, %v1150_v58  ;;  %v1159_v49 = vrot.slane %v1158_v42, 4  ;;  %v1947_v58 = vrot.slane %v1946_v20, 1 }
 0x56f   :  { %v1153_v51 = vrot.slane %v1152_v43, 2  ;;  %v1160_v27 = vadd.f32 %v1159_v49, %v1158_v42 }
 0x571   :  { %v1154_v41 = vadd.f32 %v1153_v51, %v1152_v43  ;;  %v1161_v52 = vrot.slane %v1160_v27, 2  ;;  %v4257_v53 = vpop.f32.mrb[10].mxu0 }
 0x572   :  { %v1413_v45 = vsel %vm173_vm2, %v4257_v53, 0.0  ;;  %v1420_v54 = vmul.f32 %v4257_v53, %v4257_v53  ;;  %v3367_v55 = vpop.f32.mrb[11].mxu0 }
 0x573   :  { %v1155_v2 = vrot.slane %v1154_v41, 1  ;;  %v1162_v28 = vadd.f32 %v1161_v52, %v1160_v27  ;;  %v1414_v60 = vrot.slane %v1413_v45, 4  ;;  %v1948_v27 = vadd.f32 %v1947_v58, %v1946_v20 }
 0x574   :  { %v1421_v62 = vsel %vm173_vm2, %v1420_v54, 0.0 }
 0x575   :  { %v1156_v48 = vadd.f32 %v1155_v2, %v1154_v41  ;;  %v1163_v19 = vrot.slane %v1162_v28, 1  ;;  %v1415_v29 = vadd.f32 %v1414_v60, %v1413_v45  ;;  %v1422_v63 = vrot.slane %v1421_v62, 4  ;;  %v4264_v3 = vpop.f32.mrb[12].mxu0 }
 0x576   :  { %v1676_v5 = vsel %vm173_vm2, %v4264_v3, 0.0  ;;  %v1683_v6 = vmul.f32 %v4264_v3, %v4264_v3  ;;  %v3385_v7 = vpop.f32.mrb[13].mxu0  ;;  %v1955_v41 = vrot.slane %v1954_v4, 1  ;;  %v1957_v60 = vmul.f32 0.125, %v1948_v27  ;;  %v3113_v27 = vld [vmem:[%s4619_s3 + $0x88] sm:$0xff] }
 0x577   :  { %v1164_v9 = vadd.f32 %v1163_v19, %v1162_v28  ;;  %v1165_v15 = vmul.f32 0.125, %v1156_v48  ;;  %v1416_v16 = vrot.slane %v1415_v29, 2  ;;  %v1423_v39 = vadd.f32 %v1422_v63, %v1421_v62 }
 0x578   :  { %v1677_v44 = vrot.slane %v1676_v5, 4  ;;  %v1684_v10 = vsel %vm173_vm2, %v1683_v6, 0.0  ;;  %v1956_v28 = vadd.f32 %v1955_v41, %v1954_v4  ;;  %v1959_v7 = vmul.f32 %v1957_v60, %v1957_v60 }
 0x579   :  { %v1166_v17 = vmul.f32 0.125, %v1164_v9  ;;  %v1167_v18 = vmul.f32 %v1165_v15, %v1165_v15  ;;  %v1417_v21 = vadd.f32 %v1416_v16, %v1415_v29  ;;  %v1424_v22 = vrot.slane %v1423_v39, 2 }
 0x57a   :  { %v1678_v23 = vadd.f32 %v1677_v44, %v1676_v5  ;;  %v1685_v24 = vrot.slane %v1684_v10, 4  ;;  %v1958_v6 = vmul.f32 0.125, %v1956_v28  ;;  %v1978_v28 = vld [vmem:[#allocation6 + $0x58] sm:$0xff] }
 0x57b   :  { %v1168_v26 = vsub.f32 %v1166_v17, %v1167_v18  ;;  %v1418_v34 = vrot.slane %v1417_v21, 1  ;;  %v1425_v37 = vadd.f32 %v1424_v22, %v1423_v39  ;;  %v1173_v17 = vsub.f32 %v4249_v36, %v1165_v15 }
 0x57c   :  { %v1679_v14 = vrot.slane %v1678_v23, 2  ;;  %v1686_v38 = vadd.f32 %v1685_v24, %v1684_v10  ;;  %v1960_v39 = vsub.f32 %v1958_v6, %v1959_v7  ;;  %v3119_v6 = vld [vmem:[%s4620_s4 + $0x90] sm:$0xff]  ;;  %v3120_v7 = vld [vmem:[%s4620_s4 + $0x98] sm:$0xff] }
 0x57d   :  { %v1169_v40 = vmax.f32 %v1168_v26, 0.0  ;;  %v1419_v42 = vadd.f32 %v1418_v34, %v1417_v21  ;;  %v1426_v43 = vrot.slane %v1425_v37, 1  ;;  %v1182_v21 = vrot.slane %v4003_v35, %v4084_v47 }
 0x57e   :  { %v1680_v49 = vadd.f32 %v1679_v14, %v1678_v23  ;;  %v1687_v50 = vrot.slane %v1686_v38, 2  ;;  %v1961_v22 = vmax.f32 %v1960_v39, 0.0 }
 0x57f   :  { %v1170_v59 = vadd.f32 1e-06, %v1169_v40  ;;  %v1428_v51 = vmul.f32 0.125, %v1419_v42  ;;  %v1427_v52 = vadd.f32 %v1426_v43, %v1425_v37 }
 0x580   :  { %v1681_v45 = vrot.slane %v1680_v49, 1  ;;  %v1688_v54 = vadd.f32 %v1687_v50, %v1686_v38  ;;  %v1962_v26 = vadd.f32 1e-06, %v1961_v22 }
 0x581   :  { %3665 = vrsqrt.f32 %v1170_v59  ;;  %v1430_v55 = vmul.f32 %v1428_v51, %v1428_v51  ;;  %v1429_v56 = vmul.f32 0.125, %v1427_v52  ;;  %v1436_v36 = vsub.f32 %v4257_v53, %v1428_v51  ;;  %v4290_v59 = vld [vmem:[#allocation4 + $0x28] sm:$0xff]  ;;  %v3112_v51 = vld [vmem:[%s4619_s3 + $0x80] sm:$0xff]  ;;  %v3114_v52 = vld [vmem:[%s4619_s3 + $0x90] sm:$0xff] }
 0x582   :  { %v1682_v2 = vadd.f32 %v1681_v45, %v1680_v49  ;;  %v1689_v57 = vrot.slane %v1688_v54, 1  ;;  %v1708_v53 = vrot.slane %v4198_v61, %v3932_v33  ;;  %v3559_v41 = vpack.c.bf16 %v3113_v27, %v3112_v51  ;;  %v3115_v45 = vld [vmem:[%s4619_s3 + $0x98] sm:$0xff] }
 0x583   :  { %v1431_v62 = vsub.f32 %v1429_v56, %v1430_v55  ;;  %v1965_v55 = vsub.f32 %v4243_v25, %v1957_v60 }
 0x584   :  { %v1690_v48 = vadd.f32 %v1689_v57, %v1688_v54  ;;  %v1691_v19 = vmul.f32 0.125, %v1682_v2  ;;  %v3562_v2 = vpack.c.bf16 %v3115_v45, %v3114_v52  ;;  %v1977_v57 = vld [vmem:[#allocation6 + $0x50] sm:$0xff] }
 0x585   :  { %v1432_v29 = vmax.f32 %v1431_v62, 0.0 }
 0x586   :  { %v1692_v63 = vmul.f32 0.125, %v1690_v48  ;;  %v1693_v5 = vmul.f32 %v1691_v19, %v1691_v19  ;;  %v1699_v40 = vsub.f32 %v4264_v3, %v1691_v19  ;;  %v1974_v48 = vrot.slane %v4290_v59, %v3896_v31 }
 0x587   :  { %v1433_v20 = vadd.f32 1e-06, %v1432_v29  ;;  %v3571_v19 = vpack.c.bf16 %v1978_v28, %v1977_v57  ;;  %v3117_v29 = vld [vmem:[%s4620_s4 + $0x80] sm:$0xff] }
 0x588   :  { %v1694_v8 = vsub.f32 %v1692_v63, %v1693_v5  ;;  %v3118_v63 = vld [vmem:[%s4620_s4 + $0x88] sm:$0xff] }
 0x589   :  { %3667 = vrsqrt.f32 %v1433_v20  ;;  %v3565_v5 = vpack.c.bf16 %v3118_v63, %v3117_v29  ;;  %v3568_v20 = vpack.c.bf16 %v3120_v7, %v3119_v6 }
 0x58a   :  { %v1695_v9 = vmax.f32 %v1694_v8, 0.0  ;;  %v4335_v8 = vld [vmem:[#allocation2 + $0x30] sm:$0xff] }
 0x58b   :  { %v3666_v16 = vpop.eup %3665  ;;  %3566 = vmatpush3.bf16.msra.mxu0 %v3565_v5 }
 0x58c   :  { %v1172_v44 = vmul.f32 %v3666_v16, %v4003_v35  ;;  %v1696_v10 = vadd.f32 1e-06, %v1695_v9  ;;  %v1445_v35 = vrot.slane %v4105_v13, %v3991_v12  ;;  %3567 = vmatprep.subr.bf16.mxu0 %v3794_v0  ;;  %v2318_v9 = vsel %vm63_vm1, %v4335_v8, 0.0 }
 0x58d   :  { %v2325_v16 = vmul.f32 %v4335_v8, %v4335_v8 }
 0x58e   :  { %v1177_v18 = vrot.slane %v1172_v44, %v4081_v46  ;;  %3669 = vrsqrt.f32 %v1696_v10 }
 0x58f   :  { %3671 = vrsqrt.f32 %v1962_v26  ;;  %3569 = vmatpush3.bf16.msra.mxu0 %v3568_v20  ;;  %v2326_v22 = vsel %vm63_vm1, %v2325_v16, 0.0 }
 0x590   :  { %v1178_v23 = vmul.f32 %v1177_v18, %v1173_v17  ;;  %3573 = vmatprep.subr.bf16.mxu0 %v3794_v0  ;;  %v2319_v18 = vrot.slane %v2318_v9, 4 }
 0x592   :  { %v1183_v24 = vadd.f32 %v1182_v21, %v1178_v23 }
 0x593   :  { %v3668_v34 = vpop.eup %3667 }
 0x594   :  { %3098 = vst.msk [vmem:[%s4621_s5 + $0x10] sm:$0xff] %vm398_vm3, %v1183_v24  ;;  %v1435_v58 = vmul.f32 %v3668_v34, %v4105_v13  ;;  %v2320_v34 = vadd.f32 %v2319_v18, %v2318_v9 }
 0x596   :  { %v1440_v15 = vrot.slane %v1435_v58, %v3988_v11  ;;  %v2327_v58 = vrot.slane %v2326_v22, 4 }
 0x598   :  { %v3670_v4 = vpop.eup %3669  ;;  %v1441_v37 = vmul.f32 %v1440_v15, %v1436_v36 }
 0x599   :  { %v1698_v14 = vmul.f32 %v3670_v4, %v4198_v61  ;;  %v3672_v49 = vpop.eup %3671 }
 0x59a   :  { %v1446_v38 = vadd.f32 %v1445_v35, %v1441_v37  ;;  %v1964_v3 = vmul.f32 %v3672_v49, %v4290_v59 }
 0x59b   :  { %v1703_v42 = vrot.slane %v1698_v14, %v3929_v32 }
 0x59c   :  { %3673 = vtanh.f32 %v1446_v38  ;;  %v1969_v56 = vrot.slane %v1964_v3, %v3893_v30 }
 0x59d   :  { %v1704_v43 = vmul.f32 %v1703_v42, %v1699_v40  ;;  %v2321_v42 = vrot.slane %v2320_v34, 2 }
 0x59e   :  { %v1970_v62 = vmul.f32 %v1969_v56, %v1965_v55 }
 0x59f   :  { %v1709_v50 = vadd.f32 %v1708_v53, %v1704_v43  ;;  %v2328_v43 = vadd.f32 %v2327_v58, %v2326_v22 }
 0x5a0   :  { %v1975_v60 = vadd.f32 %v1974_v48, %v1970_v62 }
 0x5a1   :  { %3675 = vtanh.f32 %v1709_v50  ;;  %v2329_v57 = vrot.slane %v2328_v43, 2 }
 0x5a6   :  { %v3674_v54 = vpop.eup %3673 }
 0x5a7   :  { %3377 = vmatmul.mubr.msk.f32.vlgmr.msra.gmra.mrb[10].mxu1 %vm173_vm2, %v3674_v54 }
 0x5a8   :  { %3560 = vmatpush3.bf16.msra.mxu1 %v3559_v41  ;;  %3394 = vmatprep.mubr.msk.f32.mxu1 %vm3795_vm0, %v3796_v1 }
 0x5a9   :  { %3561 = vmatprep.subr.bf16.mxu1 %v3794_v0 }
 0x5ab   :  { %v3676_v25 = vpop.eup %3675 }
 0x5ac   :  { %3563 = vmatpush3.bf16.msra.mxu1 %v3562_v2  ;;  %v2322_v2 = vadd.f32 %v2321_v42, %v2320_v34 }
 0x5ad   :  { %3570 = vmatprep.subr.bf16.mxu1 %v3794_v0 }
 0x5af   :  { %3395 = vmatmul.mubr.msk.f32.vlgmr.msra.gmra.mrb[12].mxu1 %vm173_vm2, %v3676_v25 }
 0x5b0   :  { %3572 = vmatpush3.bf16.msra.mxu1 %v3571_v19  ;;  %3412 = vmatprep.mubr.msk.f32.mxu1 %vm3795_vm0, %v3796_v1 }
 0x5b1   :  { %3579 = vmatprep.subr.bf16.mxu1 %v3794_v0 }
 0x5b3   :  { %3413 = vmatmul.mubr.msk.f32.vlgmr.msra.gmra.mrb[14].mxu1 %vm63_vm1, %v1975_v60 }
 0x5b4   :  { %3434 = vmatprep.mubr.msk.f32.mxu1 %vm3795_vm0, %v3796_v1 }
 0x67a   :  { %v4341_v39 = vpop.f32.mrb[10].mxu1 }
 0x67b   :  { %v1526_v44 = vsel %vm398_vm3, %v4341_v39, 0.0  ;;  %v1533_v10 = vmul.f32 %v4341_v39, %v4341_v39  ;;  %v3378_v17 = vpop.f32.mrb[11].mxu1 }
 0x67c   :  { %v1527_v21 = vrot.slane %v1526_v44, 4 }
 0x67d   :  { %v1534_v23 = vsel %vm398_vm3, %v1533_v10, 0.0  ;;  %v2330_v10 = vadd.f32 %v2329_v57, %v2328_v43 }
 0x67e   :  { %v1528_v24 = vadd.f32 %v1527_v21, %v1526_v44  ;;  %v1535_v26 = vrot.slane %v1534_v23, 4  ;;  %v2323_v44 = vrot.slane %v2322_v2, 1 }
 0x680   :  { %v1529_v36 = vrot.slane %v1528_v24, 2  ;;  %v1536_v15 = vadd.f32 %v1535_v26, %v1534_v23 }
 0x682   :  { %v1530_v35 = vadd.f32 %v1529_v36, %v1528_v24  ;;  %v1537_v4 = vrot.slane %v1536_v15, 2  ;;  %v4349_v37 = vpop.f32.mrb[12].mxu1 }
 0x683   :  { %v1789_v14 = vsel %vm173_vm2, %v4349_v37, 0.0  ;;  %v1796_v38 = vmul.f32 %v4349_v37, %v4349_v37  ;;  %v3396_v40 = vpop.f32.mrb[13].mxu1 }
 0x684   :  { %v1531_v53 = vrot.slane %v1530_v35, 1  ;;  %v1538_v49 = vadd.f32 %v1537_v4, %v1536_v15  ;;  %v1790_v50 = vrot.slane %v1789_v14, 4  ;;  %v2324_v15 = vadd.f32 %v2323_v44, %v2322_v2 }
 0x685   :  { %v1797_v51 = vsel %vm173_vm2, %v1796_v38, 0.0 }
 0x686   :  { %v1532_v27 = vadd.f32 %v1531_v53, %v1530_v35  ;;  %v1539_v3 = vrot.slane %v1538_v49, 1  ;;  %v1791_v41 = vadd.f32 %v1790_v50, %v1789_v14  ;;  %v1798_v52 = vrot.slane %v1797_v51, 4  ;;  %v4356_v45 = vpop.f32.mrb[14].mxu1 }
 0x687   :  { %v2052_v54 = vsel %vm173_vm2, %v4356_v45, 0.0  ;;  %v2059_v55 = vmul.f32 %v4356_v45, %v4356_v45  ;;  %v3414_v56 = vpop.f32.mrb[15].mxu1  ;;  %v2331_v35 = vrot.slane %v2330_v10, 1  ;;  %v2333_v50 = vmul.f32 0.125, %v2324_v15  ;;  %v3125_v15 = vld [vmem:[%s4619_s3 + $0xa8] sm:$0xff] }
 0x688   :  { %v1540_v28 = vadd.f32 %v1539_v3, %v1538_v49  ;;  %v1541_v62 = vmul.f32 0.125, %v1532_v27  ;;  %v1792_v48 = vrot.slane %v1791_v41, 2  ;;  %v1799_v19 = vadd.f32 %v1798_v52, %v1797_v51 }
 0x689   :  { %v2053_v25 = vrot.slane %v2052_v54, 4  ;;  %v2060_v60 = vsel %vm173_vm2, %v2059_v55, 0.0  ;;  %v2332_v49 = vadd.f32 %v2331_v35, %v2330_v10  ;;  %v2335_v56 = vmul.f32 %v2333_v50, %v2333_v50 }
 0x68a   :  { %v1542_v29 = vmul.f32 0.125, %v1540_v28  ;;  %v1543_v63 = vmul.f32 %v1541_v62, %v1541_v62  ;;  %v1793_v5 = vadd.f32 %v1792_v48, %v1791_v41  ;;  %v1800_v6 = vrot.slane %v1799_v19, 2 }
 0x68b   :  { %v2054_v7 = vadd.f32 %v2053_v25, %v2052_v54  ;;  %v2061_v20 = vrot.slane %v2060_v60, 4  ;;  %v2334_v55 = vmul.f32 0.125, %v2332_v49  ;;  %v2354_v49 = vld [vmem:[#allocation6 + $0x68] sm:$0xff] }
 0x68c   :  { %v1544_v9 = vsub.f32 %v1542_v29, %v1543_v63  ;;  %v1794_v16 = vrot.slane %v1793_v5, 1  ;;  %v1801_v17 = vadd.f32 %v1800_v6, %v1799_v19  ;;  %v1549_v29 = vsub.f32 %v4341_v39, %v1541_v62 }
 0x68d   :  { %v2055_v18 = vrot.slane %v2054_v7, 2  ;;  %v2062_v21 = vadd.f32 %v2061_v20, %v2060_v60  ;;  %v2336_v19 = vsub.f32 %v2334_v55, %v2335_v56  ;;  %v3131_v55 = vld [vmem:[%s4620_s4 + $0xb0] sm:$0xff]  ;;  %v3132_v56 = vld [vmem:[%s4620_s4 + $0xb8] sm:$0xff] }
 0x68e   :  { %v1545_v22 = vmax.f32 %v1544_v9, 0.0  ;;  %v1795_v23 = vadd.f32 %v1794_v16, %v1793_v5  ;;  %v1802_v24 = vrot.slane %v1801_v17, 1  ;;  %v1558_v5 = vrot.slane %v4105_v13, %v4084_v47 }
 0x68f   :  { %v2056_v26 = vadd.f32 %v2055_v18, %v2054_v7  ;;  %v2063_v34 = vrot.slane %v2062_v21, 2  ;;  %v2337_v6 = vmax.f32 %v2336_v19, 0.0 }
 0x690   :  { %v1546_v58 = vadd.f32 1e-06, %v1545_v22  ;;  %v1804_v36 = vmul.f32 0.125, %v1795_v23  ;;  %v1803_v4 = vadd.f32 %v1802_v24, %v1801_v17 }
 0x691   :  { %v2057_v14 = vrot.slane %v2056_v26, 1  ;;  %v2064_v38 = vadd.f32 %v2063_v34, %v2062_v21  ;;  %v2338_v9 = vadd.f32 1e-06, %v2337_v6 }
 0x692   :  { %3677 = vrsqrt.f32 %v1546_v58  ;;  %v1806_v40 = vmul.f32 %v1804_v36, %v1804_v36  ;;  %v1805_v42 = vmul.f32 0.125, %v1803_v4  ;;  %v1812_v39 = vsub.f32 %v4349_v37, %v1804_v36  ;;  %v4382_v58 = vld [vmem:[#allocation4 + $0x30] sm:$0xff]  ;;  %v3124_v36 = vld [vmem:[%s4619_s3 + $0xa0] sm:$0xff] }
 0x693   :  { %v2058_v53 = vadd.f32 %v2057_v14, %v2056_v26  ;;  %v2065_v43 = vrot.slane %v2064_v38, 1  ;;  %v2084_v37 = vrot.slane %v4290_v59, %v3932_v33  ;;  %v3574_v35 = vpack.c.bf16 %v3125_v15, %v3124_v36  ;;  %v3126_v4 = vld [vmem:[%s4619_s3 + $0xb0] sm:$0xff]  ;;  %v3127_v14 = vld [vmem:[%s4619_s3 + $0xb8] sm:$0xff] }
 0x694   :  { %v1807_v51 = vsub.f32 %v1805_v42, %v1806_v40  ;;  %v2341_v40 = vsub.f32 %v4335_v8, %v2333_v50 }
 0x695   :  { %v2066_v27 = vadd.f32 %v2065_v43, %v2064_v38  ;;  %v2067_v3 = vmul.f32 0.125, %v2058_v53  ;;  %v3577_v53 = vpack.c.bf16 %v3127_v14, %v3126_v4  ;;  %v2353_v43 = vld [vmem:[#allocation6 + $0x60] sm:$0xff] }
 0x696   :  { %v1808_v41 = vmax.f32 %v1807_v51, 0.0 }
 0x697   :  { %v2068_v52 = vmul.f32 0.125, %v2066_v27  ;;  %v2069_v54 = vmul.f32 %v2067_v3, %v2067_v3  ;;  %v2075_v22 = vsub.f32 %v4356_v45, %v2067_v3  ;;  %v2350_v27 = vrot.slane %v4382_v58, %v3896_v31 }
 0x698   :  { %v1809_v2 = vadd.f32 1e-06, %v1808_v41  ;;  %v3586_v3 = vpack.c.bf16 %v2354_v49, %v2353_v43  ;;  %v3129_v41 = vld [vmem:[%s4620_s4 + $0xa0] sm:$0xff] }
 0x699   :  { %v2070_v57 = vsub.f32 %v2068_v52, %v2069_v54  ;;  %v3130_v52 = vld [vmem:[%s4620_s4 + $0xa8] sm:$0xff] }
 0x69a   :  { %3679 = vrsqrt.f32 %v1809_v2  ;;  %v3580_v54 = vpack.c.bf16 %v3130_v52, %v3129_v41  ;;  %v3583_v2 = vpack.c.bf16 %v3132_v56, %v3131_v55 }
 0x69b   :  { %v2071_v28 = vmax.f32 %v2070_v57, 0.0  ;;  %v4427_v57 = vld [vmem:[#allocation2 + $0x38] sm:$0xff] }
 0x69c   :  { %v3678_v48 = vpop.eup %3677  ;;  %3581 = vmatpush3.bf16.msra.mxu1 %v3580_v54 }
 0x69d   :  { %v1548_v25 = vmul.f32 %v3678_v48, %v4105_v13  ;;  %v2072_v60 = vadd.f32 1e-06, %v2071_v28  ;;  %v1821_v13 = vrot.slane %v4198_v61, %v3991_v12  ;;  %3582 = vmatprep.subr.bf16.mxu1 %v3794_v0  ;;  %v2694_v28 = vsel %vm63_vm1, %v4427_v57, 0.0 }
 0x69e   :  { %v2701_v48 = vmul.f32 %v4427_v57, %v4427_v57 }
 0x69f   :  { %v1553_v63 = vrot.slane %v1548_v25, %v4081_v46  ;;  %3681 = vrsqrt.f32 %v2072_v60 }
 0x6a0   :  { %3683 = vrsqrt.f32 %v2338_v9  ;;  %3584 = vmatpush3.bf16.msra.mxu1 %v3583_v2  ;;  %v2702_v6 = vsel %vm63_vm1, %v2701_v48, 0.0 }
 0x6a1   :  { %v1554_v7 = vmul.f32 %v1553_v63, %v1549_v29  ;;  %3588 = vmatprep.subr.bf16.mxu1 %v3794_v0  ;;  %v2695_v63 = vrot.slane %v2694_v28, 4 }
 0x6a3   :  { %v1559_v20 = vadd.f32 %v1558_v5, %v1554_v7 }
 0x6a4   :  { %v3680_v16 = vpop.eup %3679 }
 0x6a5   :  { %3110 = vst.msk [vmem:[%s4621_s5 + $0x18] sm:$0xff] %vm398_vm3, %v1559_v20  ;;  %v1811_v44 = vmul.f32 %v3680_v16, %v4198_v61  ;;  %v2696_v16 = vadd.f32 %v2695_v63, %v2694_v28 }
 0x6a7   :  { %v1816_v62 = vrot.slane %v1811_v44, %v3988_v11  ;;  %v2703_v44 = vrot.slane %v2702_v6, 4 }
 0x6a9   :  { %v3682_v10 = vpop.eup %3681  ;;  %v1817_v17 = vmul.f32 %v1816_v62, %v1812_v39 }
 0x6aa   :  { %v2074_v18 = vmul.f32 %v3682_v10, %v4290_v59  ;;  %v3684_v26 = vpop.eup %3683 }
 0x6ab   :  { %v1822_v21 = vadd.f32 %v1821_v13, %v1817_v17  ;;  %v2340_v45 = vmul.f32 %v3684_v26, %v4382_v58 }
 0x6ac   :  { %v2079_v23 = vrot.slane %v2074_v18, %v3929_v32 }
 0x6ad   :  { %3685 = vtanh.f32 %v1822_v21  ;;  %v2345_v42 = vrot.slane %v2340_v45, %v3893_v30 }
 0x6ae   :  { %v2080_v24 = vmul.f32 %v2079_v23, %v2075_v22  ;;  %v2697_v23 = vrot.slane %v2696_v16, 2 }
 0x6af   :  { %v2346_v51 = vmul.f32 %v2345_v42, %v2341_v40 }
 0x6b0   :  { %v2085_v34 = vadd.f32 %v2084_v37, %v2080_v24  ;;  %v2704_v24 = vadd.f32 %v2703_v44, %v2702_v6 }
 0x6b1   :  { %v2351_v50 = vadd.f32 %v2350_v27, %v2346_v51 }
 0x6b2   :  { %3687 = vtanh.f32 %v2085_v34  ;;  %v2705_v43 = vrot.slane %v2704_v24, 2 }
 0x6b7   :  { %v3686_v38 = vpop.eup %3685 }
 0x6b8   :  { %3406 = vmatmul.mubr.msk.f32.vlgmr.msra.gmra.mrb[14].mxu0 %vm173_vm2, %v3686_v38 }
 0x6b9   :  { %3575 = vmatpush3.bf16.msra.mxu0 %v3574_v35  ;;  %3423 = vmatprep.mubr.msk.f32.mxu0 %vm3795_vm0, %v3796_v1 }
 0x6ba   :  { %3576 = vmatprep.subr.bf16.mxu0 %v3794_v0 }
 0x6bc   :  { %v3688_v8 = vpop.eup %3687 }
 0x6bd   :  { %3578 = vmatpush3.bf16.msra.mxu0 %v3577_v53  ;;  %v2698_v53 = vadd.f32 %v2697_v23, %v2696_v16 }
 0x6be   :  { %3585 = vmatprep.subr.bf16.mxu0 %v3794_v0 }
 0x6c0   :  { %3424 = vmatmul.mubr.msk.f32.vlgmr.msra.gmra.mrb[16].mxu0 %vm173_vm2, %v3688_v8 }
 0x6c1   :  { %3587 = vmatpush3.bf16.msra.mxu0 %v3586_v3  ;;  %3441 = vmatprep.mubr.msk.f32.mxu0 %vm3795_vm0, %v3796_v1 }
 0x6c2   :  { %3594 = vmatprep.subr.bf16.mxu0 %v3794_v0 }
 0x6c4   :  { %3442 = vmatmul.mubr.msk.f32.vlgmr.msra.gmra.mrb[18].mxu0 %vm63_vm1, %v2351_v50 }
 0x6c5   :  { %3463 = vmatprep.mubr.msk.f32.mxu0 %vm3795_vm0, %v3796_v1 }
 0x78b   :  { %v4433_v19 = vpop.f32.mrb[14].mxu0 }
 0x78c   :  { %v1902_v25 = vsel %vm398_vm3, %v4433_v19, 0.0  ;;  %v1909_v60 = vmul.f32 %v4433_v19, %v4433_v19  ;;  %v3407_v29 = vpop.f32.mrb[15].mxu0 }
 0x78d   :  { %v1903_v5 = vrot.slane %v1902_v25, 4 }
 0x78e   :  { %v1910_v7 = vsel %vm398_vm3, %v1909_v60, 0.0  ;;  %v2706_v60 = vadd.f32 %v2705_v43, %v2704_v24 }
 0x78f   :  { %v1904_v20 = vadd.f32 %v1903_v5, %v1902_v25  ;;  %v1911_v9 = vrot.slane %v1910_v7, 4  ;;  %v2699_v25 = vrot.slane %v2698_v53, 1 }
 0x791   :  { %v1905_v39 = vrot.slane %v1904_v20, 2  ;;  %v1912_v62 = vadd.f32 %v1911_v9, %v1910_v7 }
 0x793   :  { %v1906_v13 = vadd.f32 %v1905_v39, %v1904_v20  ;;  %v1913_v10 = vrot.slane %v1912_v62, 2  ;;  %v4441_v17 = vpop.f32.mrb[16].mxu0 }
 0x794   :  { %v2165_v18 = vsel %vm173_vm2, %v4441_v17, 0.0  ;;  %v2172_v21 = vmul.f32 %v4441_v17, %v4441_v17  ;;  %v3425_v22 = vpop.f32.mrb[17].mxu0 }
 0x795   :  { %v1907_v37 = vrot.slane %v1906_v13, 1  ;;  %v1914_v26 = vadd.f32 %v1913_v10, %v1912_v62  ;;  %v2166_v34 = vrot.slane %v2165_v18, 4  ;;  %v2700_v62 = vadd.f32 %v2699_v25, %v2698_v53 }
 0x796   :  { %v2173_v36 = vsel %vm173_vm2, %v2172_v21, 0.0 }
 0x797   :  { %v1908_v15 = vadd.f32 %v1907_v37, %v1906_v13  ;;  %v1915_v45 = vrot.slane %v1914_v26, 1  ;;  %v2167_v35 = vadd.f32 %v2166_v34, %v2165_v18  ;;  %v2174_v4 = vrot.slane %v2173_v36, 4  ;;  %v4448_v14 = vpop.f32.mrb[18].mxu0 }
 0x798   :  { %v2428_v38 = vsel %vm173_vm2, %v4448_v14, 0.0  ;;  %v2435_v40 = vmul.f32 %v4448_v14, %v4448_v14  ;;  %v3443_v42 = vpop.f32.mrb[19].mxu0  ;;  %v2707_v13 = vrot.slane %v2706_v60, 1  ;;  %v2709_v34 = vmul.f32 0.125, %v2700_v62  ;;  %v3137_v62 = vld [vmem:[%s4619_s3 + $0xc8] sm:$0xff] }
 0x799   :  { %v1916_v49 = vadd.f32 %v1915_v45, %v1914_v26  ;;  %v1917_v51 = vmul.f32 0.125, %v1908_v15  ;;  %v2168_v27 = vrot.slane %v2167_v35, 2  ;;  %v2175_v3 = vadd.f32 %v2174_v4, %v2173_v36 }
 0x79a   :  { %v2429_v8 = vrot.slane %v2428_v38, 4  ;;  %v2436_v50 = vsel %vm173_vm2, %v2435_v40, 0.0  ;;  %v2708_v26 = vadd.f32 %v2707_v13, %v2706_v60  ;;  %v2711_v42 = vmul.f32 %v2709_v34, %v2709_v34 }
 0x79b   :  { %v1918_v41 = vmul.f32 0.125, %v1916_v49  ;;  %v1919_v52 = vmul.f32 %v1917_v51, %v1917_v51  ;;  %v2169_v54 = vadd.f32 %v2168_v27, %v2167_v35  ;;  %v2176_v55 = vrot.slane %v2175_v3, 2 }
 0x79c   :  { %v2430_v56 = vadd.f32 %v2429_v8, %v2428_v38  ;;  %v2437_v2 = vrot.slane %v2436_v50, 4  ;;  %v2710_v40 = vmul.f32 0.125, %v2708_v26  ;;  %v2730_v26 = vld [vmem:[#allocation6 + $0x78] sm:$0xff] }
 0x79d   :  { %v1920_v28 = vsub.f32 %v1918_v41, %v1919_v52  ;;  %v2170_v48 = vrot.slane %v2169_v54, 1  ;;  %v2177_v29 = vadd.f32 %v2176_v55, %v2175_v3  ;;  %v1925_v41 = vsub.f32 %v4433_v19, %v1917_v51 }
 0x79e   :  { %v2431_v63 = vrot.slane %v2430_v56, 2  ;;  %v2438_v5 = vadd.f32 %v2437_v2, %v2436_v50  ;;  %v2712_v3 = vsub.f32 %v2710_v40, %v2711_v42 }
 0x79f   :  { %v1921_v6 = vmax.f32 %v1920_v28, 0.0  ;;  %v2171_v7 = vadd.f32 %v2170_v48, %v2169_v54  ;;  %v2178_v20 = vrot.slane %v2177_v29, 1  ;;  %v1934_v54 = vrot.slane %v4198_v61, %v4084_v47 }
 0x7a0   :  { %v2432_v9 = vadd.f32 %v2431_v63, %v2430_v56  ;;  %v2439_v16 = vrot.slane %v2438_v5, 2  ;;  %v2713_v55 = vmax.f32 %v2712_v3, 0.0 }
 0x7a1   :  { %v1922_v44 = vadd.f32 1e-06, %v1921_v6  ;;  %v2180_v39 = vmul.f32 0.125, %v2171_v7  ;;  %v2179_v10 = vadd.f32 %v2178_v20, %v2177_v29 }
 0x7a2   :  { %v2433_v18 = vrot.slane %v2432_v9, 1  ;;  %v2440_v21 = vadd.f32 %v2439_v16, %v2438_v5  ;;  %v2714_v28 = vadd.f32 1e-06, %v2713_v55 }
 0x7a3   :  { %3689 = vrsqrt.f32 %v1922_v44  ;;  %v2182_v22 = vmul.f32 %v2180_v39, %v2180_v39  ;;  %v2181_v23 = vmul.f32 0.125, %v2179_v10  ;;  %v2188_v19 = vsub.f32 %v4441_v17, %v2180_v39  ;;  %v4474_v44 = vld [vmem:[#allocation4 + $0x38] sm:$0xff]  ;;  %v3136_v39 = vld [vmem:[%s4619_s3 + $0xc0] sm:$0xff]  ;;  %v3138_v10 = vld [vmem:[%s4619_s3 + $0xd0] sm:$0xff] }
 0x7a4   :  { %v2434_v37 = vadd.f32 %v2433_v18, %v2432_v9  ;;  %v2441_v24 = vrot.slane %v2440_v21, 1  ;;  %v2460_v17 = vrot.slane %v4382_v58, %v3932_v33  ;;  %v3589_v13 = vpack.c.bf16 %v3137_v62, %v3136_v39  ;;  %v3139_v18 = vld [vmem:[%s4619_s3 + $0xd8] sm:$0xff] }
 0x7a5   :  { %v2183_v36 = vsub.f32 %v2181_v23, %v2182_v22  ;;  %v2717_v22 = vsub.f32 %v4427_v57, %v2709_v34  ;;  %v3142_v34 = vld [vmem:[%s4620_s4 + $0xc8] sm:$0xff] }
 0x7a6   :  { %v2442_v15 = vadd.f32 %v2441_v24, %v2440_v21  ;;  %v2443_v45 = vmul.f32 0.125, %v2434_v37  ;;  %v3592_v37 = vpack.c.bf16 %v3139_v18, %v3138_v10  ;;  %v2729_v24 = vld [vmem:[#allocation6 + $0x70] sm:$0xff] }
 0x7a7   :  { %v2184_v35 = vmax.f32 %v2183_v36, 0.0 }
 0x7a8   :  { %v2444_v4 = vmul.f32 0.125, %v2442_v15  ;;  %v2445_v38 = vmul.f32 %v2443_v45, %v2443_v45  ;;  %v2451_v6 = vsub.f32 %v4448_v14, %v2443_v45  ;;  %v2726_v15 = vrot.slane %v4474_v44, %v3896_v31  ;;  %v3141_v31 = vld [vmem:[%s4620_s4 + $0xc0] sm:$0xff] }
 0x7a9   :  { %v2185_v53 = vadd.f32 1e-06, %v2184_v35  ;;  %v3601_v45 = vpack.c.bf16 %v2730_v26, %v2729_v24  ;;  %v3595_v35 = vpack.c.bf16 %v3142_v34, %v3141_v31 }
 0x7aa   :  { %v2446_v43 = vsub.f32 %v2444_v4, %v2445_v38  ;;  %v3143_v4 = vld [vmem:[%s4620_s4 + $0xd0] sm:$0xff]  ;;  %v3144_v38 = vld [vmem:[%s4620_s4 + $0xd8] sm:$0xff] }
 0x7ab   :  { %3691 = vrsqrt.f32 %v2185_v53  ;;  %3596 = vmatpush3.bf16.msra.mxu0 %v3595_v35  ;;  %v3598_v40 = vpack.c.bf16 %v3144_v38, %v3143_v4 }
 0x7ac   :  { %v2447_v49 = vmax.f32 %v2446_v43, 0.0  ;;  %3597 = vmatprep.subr.bf16.mxu0 %v3794_v0 }
 0x7ad   :  { %v3690_v27 = vpop.eup %3689 }
 0x7ae   :  { %v1924_v8 = vmul.f32 %v3690_v27, %v4198_v61  ;;  %v2448_v50 = vadd.f32 1e-06, %v2447_v49  ;;  %v2197_v61 = vrot.slane %v4290_v59, %v3991_v12 }
 0x7af   :  { %3599 = vmatpush3.bf16.msra.mxu0 %v3598_v40 }
 0x7b0   :  { %v1929_v52 = vrot.slane %v1924_v8, %v4081_v46  ;;  %3693 = vrsqrt.f32 %v2448_v50  ;;  %3603 = vmatprep.subr.bf16.mxu0 %v3794_v0 }
 0x7b1   :  { %3695 = vrsqrt.f32 %v2714_v28 }
 0x7b2   :  { %v1930_v56 = vmul.f32 %v1929_v52, %v1925_v41 }
 0x7b4   :  { %v1935_v2 = vadd.f32 %v1934_v54, %v1930_v56 }
 0x7b5   :  { %v3692_v48 = vpop.eup %3691 }
 0x7b6   :  { %3122 = vst.msk [vmem:[%s4621_s5 + $0x20] sm:$0xff] %vm398_vm3, %v1935_v2  ;;  %v2187_v25 = vmul.f32 %v3692_v48, %v4290_v59 }
 0x7b8   :  { %v2192_v51 = vrot.slane %v2187_v25, %v3988_v11 }
 0x7ba   :  { %v3694_v60 = vpop.eup %3693  ;;  %v2193_v29 = vmul.f32 %v2192_v51, %v2188_v19 }
 0x7bb   :  { %v2450_v63 = vmul.f32 %v3694_v60, %v4382_v58  ;;  %v3696_v9 = vpop.eup %3695 }
 0x7bc   :  { %v2198_v5 = vadd.f32 %v2197_v61, %v2193_v29  ;;  %v2716_v14 = vmul.f32 %v3696_v9, %v4474_v44 }
 0x7bd   :  { %v2455_v7 = vrot.slane %v2450_v63, %v3929_v32 }
 0x7be   :  { %3697 = vtanh.f32 %v2198_v5  ;;  %v2721_v23 = vrot.slane %v2716_v14, %v3893_v30 }
 0x7bf   :  { %v2456_v20 = vmul.f32 %v2455_v7, %v2451_v6 }
 0x7c0   :  { %v2722_v36 = vmul.f32 %v2721_v23, %v2717_v22 }
 0x7c1   :  { %v2461_v16 = vadd.f32 %v2460_v17, %v2456_v20 }
 0x7c2   :  { %v2727_v30 = vadd.f32 %v2726_v15, %v2722_v36 }
 0x7c3   :  { %3699 = vtanh.f32 %v2461_v16 }
 0x7c8   :  { %v3698_v21 = vpop.eup %3697 }
 0x7c9   :  { %3435 = vmatmul.mubr.msk.f32.vlgmr.msra.gmra.mrb[16].mxu1 %vm173_vm2, %v3698_v21 }
 0x7ca   :  { %3590 = vmatpush3.bf16.msra.mxu1 %v3589_v13  ;;  %3452 = vmatprep.mubr.msk.f32.mxu1 %vm3795_vm0, %v3796_v1 }
 0x7cb   :  { %3591 = vmatprep.subr.bf16.mxu1 %v3794_v0 }
 0x7cd   :  { %v3700_v57 = vpop.eup %3699 }
 0x7ce   :  { %3593 = vmatpush3.bf16.msra.mxu1 %v3592_v37 }
 0x7cf   :  { %3600 = vmatprep.subr.bf16.mxu1 %v3794_v0 }
 0x7d1   :  { %3453 = vmatmul.mubr.msk.f32.vlgmr.msra.gmra.mrb[18].mxu1 %vm173_vm2, %v3700_v57 }
 0x7d2   :  { %3602 = vmatpush3.bf16.msra.mxu1 %v3601_v45  ;;  %3470 = vmatprep.mubr.msk.f32.mxu1 %vm3795_vm0, %v3796_v1 }
 0x7d3   :  { %3609 = vmatprep.subr.bf16.mxu1 %v3794_v0 }
 0x7d5   :  { %3471 = vmatmul.mubr.msk.f32.vlgmr.msra.gmra.mrb[20].mxu1 %vm63_vm1, %v2727_v30 }
 0x7d6   :  { %3492 = vmatprep.mubr.msk.f32.mxu1 %vm3795_vm0, %v3796_v1 }
 0x89c   :  { %v4519_v42 = vpop.f32.mrb[16].mxu1 }
 0x89d   :  { %v2278_v53 = vsel %vm398_vm3, %v4519_v42, 0.0  ;;  %v2285_v43 = vmul.f32 %v4519_v42, %v4519_v42  ;;  %v3436_v49 = vpop.f32.mrb[17].mxu1 }
 0x89e   :  { %v2279_v27 = vrot.slane %v2278_v53, 4 }
 0x89f   :  { %v2286_v3 = vsel %vm398_vm3, %v2285_v43, 0.0 }
 0x8a0   :  { %v2280_v8 = vadd.f32 %v2279_v27, %v2278_v53  ;;  %v2287_v50 = vrot.slane %v2286_v3, 4 }
 0x8a2   :  { %v2281_v41 = vrot.slane %v2280_v8, 2  ;;  %v2288_v52 = vadd.f32 %v2287_v50, %v2286_v3 }
 0x8a4   :  { %v2282_v54 = vadd.f32 %v2281_v41, %v2280_v8  ;;  %v2289_v55 = vrot.slane %v2288_v52, 2  ;;  %v4526_v56 = vpop.f32.mrb[18].mxu1 }
 0x8a5   :  { %v2541_v2 = vsel %vm173_vm2, %v4526_v56, 0.0  ;;  %v2548_v28 = vmul.f32 %v4526_v56, %v4526_v56  ;;  %v3454_v48 = vpop.f32.mrb[19].mxu1 }
 0x8a6   :  { %v2283_v25 = vrot.slane %v2282_v54, 1  ;;  %v2290_v19 = vadd.f32 %v2289_v55, %v2288_v52  ;;  %v2542_v51 = vrot.slane %v2541_v2, 4 }
 0x8a7   :  { %v2549_v61 = vsel %vm173_vm2, %v2548_v28, 0.0 }
 0x8a8   :  { %v2284_v60 = vadd.f32 %v2283_v25, %v2282_v54  ;;  %v2291_v29 = vrot.slane %v2290_v19, 1  ;;  %v2543_v63 = vadd.f32 %v2542_v51, %v2541_v2  ;;  %v2550_v5 = vrot.slane %v2549_v61, 4  ;;  %v4533_v6 = vpop.f32.mrb[20].mxu1 }
 0x8a9   :  { %v2804_v7 = vsel %vm173_vm2, %v4533_v6, 0.0  ;;  %v2811_v20 = vmul.f32 %v4533_v6, %v4533_v6  ;;  %v3472_v17 = vpop.f32.mrb[21].mxu1 }
 0x8aa   :  { %v2292_v9 = vadd.f32 %v2291_v29, %v2290_v19  ;;  %v2293_v16 = vmul.f32 0.125, %v2284_v60  ;;  %v2544_v39 = vrot.slane %v2543_v63, 2  ;;  %v2551_v62 = vadd.f32 %v2550_v5, %v2549_v61 }
 0x8ab   :  { %v2805_v14 = vrot.slane %v2804_v7, 4  ;;  %v2812_v13 = vsel %vm173_vm2, %v2811_v20, 0.0 }
 0x8ac   :  { %v2294_v10 = vmul.f32 0.125, %v2292_v9  ;;  %v2295_v18 = vmul.f32 %v2293_v16, %v2293_v16  ;;  %v2545_v21 = vadd.f32 %v2544_v39, %v2543_v63  ;;  %v2552_v22 = vrot.slane %v2551_v62, 2 }
 0x8ad   :  { %v2806_v23 = vadd.f32 %v2805_v14, %v2804_v7  ;;  %v2813_v37 = vrot.slane %v2812_v13, 4  ;;  %v2301_v60 = vsub.f32 %v4519_v42, %v2293_v16  ;;  %v2310_v63 = vrot.slane %v4290_v59, %v4084_v47 }
 0x8ae   :  { %v2296_v24 = vsub.f32 %v2294_v10, %v2295_v18  ;;  %v2546_v26 = vrot.slane %v2545_v21, 1  ;;  %v2553_v36 = vadd.f32 %v2552_v22, %v2551_v62  ;;  %v2573_v16 = vrot.slane %v4382_v58, %v3991_v12  ;;  %v3148_v22 = vld [vmem:[%s4619_s3 + $0xe0] sm:$0xff] }
 0x8af   :  { %v2807_v15 = vrot.slane %v2806_v23, 2  ;;  %v2814_v45 = vadd.f32 %v2813_v37, %v2812_v13 }
 0x8b0   :  { %v2297_v57 = vmax.f32 %v2296_v24, 0.0  ;;  %v2547_v30 = vadd.f32 %v2546_v26, %v2545_v21  ;;  %v2554_v31 = vrot.slane %v2553_v36, 1  ;;  %v2836_v21 = vrot.slane %v4474_v44, %v3932_v33 }
 0x8b1   :  { %v2808_v34 = vadd.f32 %v2807_v15, %v2806_v23  ;;  %v2815_v35 = vrot.slane %v2814_v45, 2  ;;  %v3149_v23 = vld [vmem:[%s4619_s3 + $0xe8] sm:$0xff] }
 0x8b2   :  { %v2298_v4 = vadd.f32 1e-06, %v2297_v57  ;;  %v2556_v38 = vmul.f32 0.125, %v2547_v30  ;;  %v2555_v40 = vadd.f32 %v2554_v31, %v2553_v36  ;;  %v3604_v37 = vpack.c.bf16 %v3149_v23, %v3148_v22  ;;  %v3153_v36 = vld [vmem:[%s4620_s4 + $0xe0] sm:$0xff]  ;;  %v3154_v15 = vld [vmem:[%s4620_s4 + $0xe8] sm:$0xff] }
 0x8b3   :  { %v2809_v53 = vrot.slane %v2808_v34, 1  ;;  %v2816_v43 = vadd.f32 %v2815_v35, %v2814_v45  ;;  %v3155_v45 = vld [vmem:[%s4620_s4 + $0xf0] sm:$0xff]  ;;  %v3610_v57 = vpack.c.bf16 %v3154_v15, %v3153_v36 }
 0x8b4   :  { %3701 = vrsqrt.f32 %v2298_v4  ;;  %v2558_v49 = vmul.f32 %v2556_v38, %v2556_v38  ;;  %v2557_v27 = vmul.f32 0.125, %v2555_v40  ;;  %v2564_v9 = vsub.f32 %v4526_v56, %v2556_v38 }
 0x8b5   :  { %v2810_v3 = vadd.f32 %v2809_v53, %v2808_v34  ;;  %v2817_v8 = vrot.slane %v2816_v43, 1  ;;  %3611 = vmatpush3.bf16.msra.mxu1 %v3610_v57 }
 0x8b6   :  { %v2559_v50 = vsub.f32 %v2557_v27, %v2558_v49  ;;  %3612 = vmatprep.subr.bf16.mxu1 %v3794_v0 }
 0x8b7   :  { %v2818_v41 = vadd.f32 %v2817_v8, %v2816_v43  ;;  %v2819_v52 = vmul.f32 0.125, %v2810_v3 }
 0x8b8   :  { %v2560_v54 = vmax.f32 %v2559_v50, 0.0 }
 0x8b9   :  { %v2820_v55 = vmul.f32 0.125, %v2818_v41  ;;  %v2821_v2 = vmul.f32 %v2819_v52, %v2819_v52  ;;  %v2827_v13 = vsub.f32 %v4533_v6, %v2819_v52  ;;  %v3151_v6 = vld [vmem:[%s4619_s3 + $0xf8] sm:$0xff] }
 0x8ba   :  { %v2561_v28 = vadd.f32 1e-06, %v2560_v54 }
 0x8bb   :  { %v2822_v48 = vsub.f32 %v2820_v55, %v2821_v2 }
 0x8bc   :  { %3703 = vrsqrt.f32 %v2561_v28 }
 0x8bd   :  { %v2823_v25 = vmax.f32 %v2822_v48, 0.0 }
 0x8be   :  { %v3702_v19 = vpop.eup %3701 }
 0x8bf   :  { %v2300_v51 = vmul.f32 %v3702_v19, %v4290_v59  ;;  %v2824_v61 = vadd.f32 1e-06, %v2823_v25 }
 0x8c1   :  { %v2305_v29 = vrot.slane %v2300_v51, %v4081_v46  ;;  %3705 = vrsqrt.f32 %v2824_v61 }
 0x8c3   :  { %v2306_v5 = vmul.f32 %v2305_v29, %v2301_v60 }
 0x8c5   :  { %v2311_v7 = vadd.f32 %v2310_v63, %v2306_v5 }
 0x8c6   :  { %v3704_v20 = vpop.eup %3703 }
 0x8c7   :  { %3134 = vst.msk [vmem:[%s4621_s5 + $0x28] sm:$0xff] %vm398_vm3, %v2311_v7  ;;  %v2563_v17 = vmul.f32 %v3704_v20, %v4382_v58 }
 0x8c9   :  { %v2568_v42 = vrot.slane %v2563_v17, %v3988_v11 }
 0x8cb   :  { %v3706_v39 = vpop.eup %3705  ;;  %v2569_v59 = vmul.f32 %v2568_v42, %v2564_v9 }
 0x8cc   :  { %v2826_v62 = vmul.f32 %v3706_v39, %v4474_v44 }
 0x8cd   :  { %v2574_v14 = vadd.f32 %v2573_v16, %v2569_v59 }
 0x8ce   :  { %v2831_v10 = vrot.slane %v2826_v62, %v3929_v32  ;;  %v3150_v32 = vld [vmem:[%s4619_s3 + $0xf0] sm:$0xff] }
 0x8cf   :  { %3707 = vtanh.f32 %v2574_v14  ;;  %v3607_v24 = vpack.c.bf16 %v3151_v6, %v3150_v32 }
 0x8d0   :  { %v2832_v18 = vmul.f32 %v2831_v10, %v2827_v13 }
 0x8d2   :  { %v2837_v56 = vadd.f32 %v2836_v21, %v2832_v18 }
 0x8d4   :  { %3709 = vtanh.f32 %v2837_v56 }
 0x8d9   :  { %v3708_v33 = vpop.eup %3707 }
 0x8da   :  { %3464 = vmatmul.mubr.msk.f32.vlgmr.msra.gmra.mrb[20].mxu0 %vm173_vm2, %v3708_v33 }
 0x8db   :  { %3605 = vmatpush3.bf16.msra.mxu0 %v3604_v37  ;;  %3481 = vmatprep.mubr.msk.f32.mxu0 %vm3795_vm0, %v3796_v1  ;;  %v3156_v1 = vld [vmem:[%s4620_s4 + $0xf8] sm:$0xff] }
 0x8dc   :  { %3606 = vmatprep.subr.bf16.mxu0 %v3794_v0  ;;  %v3613_v30 = vpack.c.bf16 %v3156_v1, %v3155_v45 }
 0x8de   :  { %v3710_v26 = vpop.eup %3709  ;;  %3614 = vmatpush3.bf16.msra.mxu1 %v3613_v30  ;;  %v2949_v30 = vrot.slane %v4474_v44, %v3991_v12 }
 0x8df   :  { %3608 = vmatpush3.bf16.msra.mxu0 %v3607_v24  ;;  %v2686_v24 = vrot.slane %v4382_v58, %v4084_v47 }
 0x8e2   :  { %3482 = vmatmul.mubr.msk.f32.vlgmr.msra.gmra.mrb[22].mxu0 %vm173_vm2, %v3710_v26 }
 0x9ad   :  { %v2650_v31 = vpop.f32.mrb[20].mxu0 }
 0x9ae   :  { %v2654_v34 = vsel %vm398_vm3, %v2650_v31, 0.0  ;;  %v2661_v35 = vmul.f32 %v2650_v31, %v2650_v31  ;;  %v3465_v4 = vpop.f32.mrb[21].mxu0 }
 0x9af   :  { %v2655_v38 = vrot.slane %v2654_v34, 4 }
 0x9b0   :  { %v2662_v40 = vsel %vm398_vm3, %v2661_v35, 0.0 }
 0x9b1   :  { %v2656_v53 = vadd.f32 %v2655_v38, %v2654_v34  ;;  %v2663_v43 = vrot.slane %v2662_v40, 4 }
 0x9b3   :  { %v2657_v49 = vrot.slane %v2656_v53, 2  ;;  %v2664_v27 = vadd.f32 %v2663_v43, %v2662_v40 }
 0x9b5   :  { %v2658_v3 = vadd.f32 %v2657_v49, %v2656_v53  ;;  %v2665_v8 = vrot.slane %v2664_v27, 2  ;;  %v2913_v50 = vpop.f32.mrb[22].mxu0 }
 0x9b6   :  { %v2917_v41 = vsel %vm173_vm2, %v2913_v50, 0.0  ;;  %v2924_v52 = vmul.f32 %v2913_v50, %v2913_v50  ;;  %v3483_v0 = vpop.f32.mrb[23].mxu0 }
 0x9b7   :  { %v2659_v54 = vrot.slane %v2658_v3, 1  ;;  %v2666_v55 = vadd.f32 %v2665_v8, %v2664_v27  ;;  %v2918_v2 = vrot.slane %v2917_v41, 4 }
 0x9b8   :  { %v2925_v28 = vsel %vm173_vm2, %v2924_v52, 0.0 }
 0x9b9   :  { %v2660_v48 = vadd.f32 %v2659_v54, %v2658_v3  ;;  %v2667_v25 = vrot.slane %v2666_v55, 1  ;;  %v2919_v19 = vadd.f32 %v2918_v2, %v2917_v41  ;;  %v2926_v51 = vrot.slane %v2925_v28, 4 }
 0x9bb   :  { %v2668_v61 = vadd.f32 %v2667_v25, %v2666_v55  ;;  %v2669_v60 = vmul.f32 0.125, %v2660_v48  ;;  %v2920_v29 = vrot.slane %v2919_v19, 2  ;;  %v2927_v63 = vadd.f32 %v2926_v51, %v2925_v28 }
 0x9bd   :  { %v2670_v5 = vmul.f32 0.125, %v2668_v61  ;;  %v2671_v7 = vmul.f32 %v2669_v60, %v2669_v60  ;;  %v2921_v20 = vadd.f32 %v2920_v29, %v2919_v19  ;;  %v2928_v17 = vrot.slane %v2927_v63, 2 }
 0x9be   :  { %v2677_v6 = vsub.f32 %v2650_v31, %v2669_v60 }
 0x9bf   :  { %v2672_v9 = vsub.f32 %v2670_v5, %v2671_v7  ;;  %v2922_v42 = vrot.slane %v2921_v20, 1  ;;  %v2929_v16 = vadd.f32 %v2928_v17, %v2927_v63  ;;  %v3062_v63 = vrot.slane %v4474_v44, %v4084_v47 }
 0x9c1   :  { %v2673_v39 = vmax.f32 %v2672_v9, 0.0  ;;  %v2923_v59 = vadd.f32 %v2922_v42, %v2921_v20  ;;  %v2930_v62 = vrot.slane %v2929_v16, 1 }
 0x9c3   :  { %v2674_v14 = vadd.f32 1e-06, %v2673_v39  ;;  %v2932_v13 = vmul.f32 0.125, %v2923_v59  ;;  %v2931_v10 = vadd.f32 %v2930_v62, %v2929_v16 }
 0x9c5   :  { %3711 = vrsqrt.f32 %v2674_v14  ;;  %v2934_v18 = vmul.f32 %v2932_v13, %v2932_v13  ;;  %v2933_v21 = vmul.f32 0.125, %v2931_v10  ;;  %v2940_v57 = vsub.f32 %v2913_v50, %v2932_v13 }
 0x9c7   :  { %v2935_v56 = vsub.f32 %v2933_v21, %v2934_v18 }
 0x9c9   :  { %v2936_v22 = vmax.f32 %v2935_v56, 0.0 }
 0x9cb   :  { %v2937_v23 = vadd.f32 1e-06, %v2936_v22 }
 0x9cd   :  { %3713 = vrsqrt.f32 %v2937_v23 }
 0x9cf   :  { %v3712_v37 = vpop.eup %3711 }
 0x9d0   :  { %v2676_v32 = vmul.f32 %v3712_v37, %v4382_v58 }
 0x9d2   :  { %v2681_v33 = vrot.slane %v2676_v32, %v4081_v46 }
 0x9d4   :  { %v2682_v26 = vmul.f32 %v2681_v33, %v2677_v6 }
 0x9d6   :  { %v2687_v36 = vadd.f32 %v2686_v24, %v2682_v26 }
 0x9d7   :  { %v3714_v15 = vpop.eup %3713 }
 0x9d8   :  { %3146 = vst.msk [vmem:[%s4621_s5 + $0x30] sm:$0xff] %vm398_vm3, %v2687_v36  ;;  %v2939_v45 = vmul.f32 %v3714_v15, %v4474_v44 }
 0x9da   :  { %v2944_v1 = vrot.slane %v2939_v45, %v3988_v11 }
 0x9dc   :  { %v2945_v31 = vmul.f32 %v2944_v1, %v2940_v57 }
 0x9de   :  { %v2950_v34 = vadd.f32 %v2949_v30, %v2945_v31 }
 0x9e0   :  { %3715 = vtanh.f32 %v2950_v34 }
 0x9ea   :  { %v3716_v58 = vpop.eup %3715 }
 0x9eb   :  { %3493 = vmatmul.mubr.msk.f32.vlgmr.msra.gmra.mrb[22].mxu1 %vm173_vm2, %v3716_v58 }
 0xabe   :  { %v3026_v35 = vpop.f32.mrb[22].mxu1 }
 0xabf   :  { %v3030_v4 = vsel %vm398_vm3, %v3026_v35, 0.0  ;;  %v3037_v38 = vmul.f32 %v3026_v35, %v3026_v35  ;;  %v3494_v40 = vpop.f32.mrb[23].mxu1 }
 0xac0   :  { %v3031_v53 = vrot.slane %v3030_v4, 4 }
 0xac1   :  { %v3038_v43 = vsel %vm398_vm3, %v3037_v38, 0.0 }
 0xac2   :  { %v3032_v49 = vadd.f32 %v3031_v53, %v3030_v4  ;;  %v3039_v27 = vrot.slane %v3038_v43, 4 }
 0xac4   :  { %v3033_v11 = vrot.slane %v3032_v49, 2  ;;  %v3040_v3 = vadd.f32 %v3039_v27, %v3038_v43 }
 0xac6   :  { %v3034_v8 = vadd.f32 %v3033_v11, %v3032_v49  ;;  %v3041_v12 = vrot.slane %v3040_v3, 2 }
 0xac8   :  { %v3035_v50 = vrot.slane %v3034_v8, 1  ;;  %v3042_v41 = vadd.f32 %v3041_v12, %v3040_v3 }
 0xaca   :  { %v3036_v52 = vadd.f32 %v3035_v50, %v3034_v8  ;;  %v3043_v0 = vrot.slane %v3042_v41, 1 }
 0xacc   :  { %v3044_v54 = vadd.f32 %v3043_v0, %v3042_v41  ;;  %v3045_v55 = vmul.f32 0.125, %v3036_v52 }
 0xace   :  { %v3046_v2 = vmul.f32 0.125, %v3044_v54  ;;  %v3047_v28 = vmul.f32 %v3045_v55, %v3045_v55  ;;  %v3053_v60 = vsub.f32 %v3026_v35, %v3045_v55 }
 0xad0   :  { %v3048_v48 = vsub.f32 %v3046_v2, %v3047_v28 }
 0xad2   :  { %v3049_v25 = vmax.f32 %v3048_v48, 0.0 }
 0xad4   :  { %v3050_v19 = vadd.f32 1e-06, %v3049_v25 }
 0xad6   :  { %3717 = vrsqrt.f32 %v3050_v19 }
 0xae0   :  { %v3718_v51 = vpop.eup %3717 }
 0xae1   :  { %v3052_v61 = vmul.f32 %v3718_v51, %v4474_v44 }
 0xae3   :  { %v3057_v29 = vrot.slane %v3052_v61, %v4081_v46 }
 0xae5   :  { %v3058_v5 = vmul.f32 %v3057_v29, %v3053_v60 }
 0xae7   :  { %v3063_v7 = vadd.f32 %v3062_v63, %v3058_v5 }
 0xae9   :  { %3158 = vst.msk [vmem:[%s4621_s5 + $0x38] sm:$0xff] %vm398_vm3, %v3063_v7 }
 0xaea   :  { %3070 = vsyncpa [#allocation3], 1 }
 0xaeb   :  { %3071 = vsyncpa [#allocation5], 1 }

</bundles_post_ra>
